<compile_context>
chip_gen: v5e
topology: v5e:2x2
jax: 0.10.0
libtpu: 0.0.40
codegen_flags: <defaults>
</compile_context>

<pallas_src>
import jax
import jax.numpy as jnp
from jax.experimental import pallas as pl
from jax.experimental.pallas import tpu as pltpu


def _round_up(x, m):
    return (x + m - 1) // m * m


def featgen_kernel(x_ref, nz_ref, w1_ref, b1_ref, w2_ref, b2_ref, w3_ref, b3_ref,
                   o_ref):
    tile = x_ref.shape[0]

    def sub_block(r0, rn):
        rows = pl.ds(r0, rn)
        # Sampling: x + N(0,1) noise (noise supplied as an input stream).
        xb = (x_ref[rows, :] + nz_ref[rows, :]).astype(jnp.bfloat16)

        # fc1 + ReLU   (latent_dim -> 256); bf16 MXU inputs, f32 accumulation.
        h1 = jnp.dot(xb, w1_ref[...], preferred_element_type=jnp.float32)
        h1 = jnp.maximum(h1 + b1_ref[...], 0.0).astype(jnp.bfloat16)

        # fc2 + ReLU   (256 -> 2048); bias+ReLU+bf16 cast fused so only the bf16
        # copy of the widest intermediate is materialized.
        h2 = jnp.dot(h1, w2_ref[...], preferred_element_type=jnp.float32)
        h2 = jnp.maximum(h2 + b2_ref[...], 0.0).astype(jnp.bfloat16)

        # F.dropout with training=False is the identity (module in eval mode).
        # TODO(synk): training-mode dropout would need in-kernel pltpu PRNG; the
        # RNG stream cannot match torch's anyway.

        # fc_flat + tanh   (2048 -> out_pad)
        h3 = jnp.dot(h2, w3_ref[...], preferred_element_type=jnp.float32)
        o_ref[rows, :] = jnp.tanh(h3 + b3_ref[...])

    # Statically unroll the row tile into <=128-row sub-blocks: breaks the single
    # serial dot->relu->dot->relu->dot->tanh chain so MXU / VPU / EUP overlap.
    r0 = 0
    while r0 < tile:
        rn = min(128, tile - r0)
        sub_block(r0, rn)
        r0 += rn


def prepare_params(params):
    """One-time parameter prep (do NOT run per call):
    cast weights to bf16 for the MXU and pad fc_flat's output dim up to a
    multiple of 128 lanes so output stores are unmasked."""
    w1, b1, w2, b2, w3, b3 = params
    out_dim = w3.shape[1]
    out_pad = max(128, _round_up(out_dim, 128))
    if out_pad != out_dim:
        w3 = jnp.zeros((w3.shape[0], out_pad), w3.dtype).at[:, :out_dim].set(w3)
        b3 = jnp.zeros((1, out_pad), b3.dtype).at[:, :out_dim].set(b3)
    prepared = (w1.astype(jnp.bfloat16), b1,
                w2.astype(jnp.bfloat16), b2,
                w3.astype(jnp.bfloat16), b3)
    return prepared, out_dim


def _choose_tile(N, tile_n):
    n8 = _round_up(N, 8)
    tile = min(tile_n, n8)
    # v7x megacore: a big-enough batch should produce >= 2 "parallel" grid steps
    # so both TensorCores get work (no effect on single-TC v5e/v6e).
    if n8 >= 256 and _round_up(n8, tile) // tile < 2:
        tile = max(128, _round_up(pl.cdiv(n8, 2), 8))
    n_pad = _round_up(n8, tile)
    return tile, n_pad


def feat_generator(x, noise, prepared, out_dim, *, tile_n=512):
    """x, noise: [N, latent_dim] f32.  prepared: output of prepare_params.
    Returns [N, out_dim] f32."""
    w1b, b1, w2b, b2, w3b, b3 = prepared
    N, latent_dim = x.shape
    out_pad = w3b.shape[1]

    tile, n_pad = _choose_tile(N, tile_n)
    if n_pad != N:
        pad = ((0, n_pad - N), (0, 0))
        x = jnp.pad(x, pad)
        noise = jnp.pad(noise, pad)

    grid = (n_pad // tile,)
    resident = lambda shp: pl.BlockSpec(shp, lambda i: (0, 0))  # weights stay in VMEM

    flops = 2 * n_pad * (latent_dim * w1b.shape[1]
                         + w2b.shape[0] * w2b.shape[1]
                         + w3b.shape[0] * out_pad)
    bytes_accessed = (2 * n_pad * latent_dim * 4
                      + (w1b.size + w2b.size + w3b.size) * 2
                      + (b1.size + b2.size + b3.size) * 4
                      + n_pad * out_pad * 4)

    out = pl.pallas_call(
        featgen_kernel,
        out_shape=jax.ShapeDtypeStruct((n_pad, out_pad), jnp.float32),
        grid_spec=pltpu.PrefetchScalarGridSpec(
            num_scalar_prefetch=0,
            grid=grid,
            in_specs=[
                pl.BlockSpec((tile, latent_dim), lambda i: (i, 0)),  # x
                pl.BlockSpec((tile, latent_dim), lambda i: (i, 0)),  # noise
                resident(w1b.shape), resident(b1.shape),
                resident(w2b.shape), resident(b2.shape),
                resident(w3b.shape), resident(b3.shape),
            ],
            out_specs=pl.BlockSpec((tile, out_pad), lambda i: (i, 0)),
        ),
        compiler_params=pltpu.CompilerParams(
            dimension_semantics=("parallel",),
            vmem_limit_bytes=32 * 1024 * 1024),
        cost_estimate=pl.CostEstimate(
            flops=flops,
            transcendentals=n_pad * out_pad,
            bytes_accessed=bytes_accessed),
    )(x, noise, w1b, b1, w2b, b2, w3b, b3)

    return out[:N, :out_dim]


def feat_generator_ref(x, noise, params):
    """Pure-JAX reference (f32) of the module forward in eval mode."""
    w1, b1, w2, b2, w3, b3 = params
    h = x + noise
    h = jax.nn.relu(h @ w1 + b1)
    h = jax.nn.relu(h @ w2 + b2)
    return jnp.tanh(h @ w3 + b3)


def init_params(key, latent_dim, num_pred, feat_shape):
    """Deterministic init mimicking nn.Linear default (uniform +/- 1/sqrt(fan_in))."""
    def linear(k, fan_in, fan_out):
        kw, kb = jax.random.split(k)
        bound = 1.0 / jnp.sqrt(fan_in)
        w = jax.random.uniform(kw, (fan_in, fan_out), jnp.float32, -bound, bound)
        b = jax.random.uniform(kb, (1, fan_out), jnp.float32, -bound, bound)
        return w, b

    k1, k2, k3 = jax.random.split(key, 3)
    w1, b1 = linear(k1, latent_dim, 256)
    w2, b2 = linear(k2, 256, 2048)
    w3, b3 = linear(k3, 2048, num_pred * feat_shape)
    return (w1, b1, w2, b2, w3, b3)


if __name__ == "__main__":
    latent_dim = 32
    num_pred = 4
    feat_shape = 64          # output dim = 4 * 64 = 256

    key = jax.random.PRNGKey(0)
    k_x, k_noise, k_params, k_x2, k_n2 = jax.random.split(key, 5)
    params = init_params(k_params, latent_dim, num_pred, feat_shape)
    # One-time weight prep (bf16 cast + lane padding) hoisted out of the call path.
    prepared, out_dim = prepare_params(params)

    # Small batch: whole batch processed in a single grid step.
    batch = 8
    x = jax.random.normal(k_x, (batch, latent_dim), dtype=jnp.float32)
    noise = jax.random.normal(k_noise, (batch, latent_dim), dtype=jnp.float32)
    out = jax.block_until_ready(feat_generator(x, noise, prepared, out_dim))
    ref = feat_generator_ref(x, noise, params)
    assert out.shape == (batch, out_dim), out.shape
    assert bool(jnp.all(jnp.isfinite(out)))
    assert bool(jnp.all(jnp.abs(out) <= 1.0))
    assert bool(jnp.max(jnp.abs(out - ref)) < 5e-2)

    # Larger batch: exercises the megacore-aware multi-step grid (2 x 256-row tiles).
    batch2 = 512
    x2 = jax.random.normal(k_x2, (batch2, latent_dim), dtype=jnp.float32)
    n2 = jax.random.normal(k_n2, (batch2, latent_dim), dtype=jnp.float32)
    out2 = jax.block_until_ready(feat_generator(x2, n2, prepared, out_dim))
    ref2 = feat_generator_ref(x2, n2, params)
    assert out2.shape == (batch2, out_dim), out2.shape
    assert bool(jnp.max(jnp.abs(out2 - ref2)) < 5e-2)

    print("KERNEL_OK")
</pallas_src>

<mosaic_0001>
module attributes {stable_mosaic.version = 11 : i64} {
  func.func @featgen_kernel(%arg0: i32, %arg1: memref<8x32xf32, #tpu.memory_space<vmem>>, %arg2: memref<8x32xf32, #tpu.memory_space<vmem>>, %arg3: memref<32x256xbf16, #tpu.memory_space<vmem>>, %arg4: memref<1x256xf32, #tpu.memory_space<vmem>>, %arg5: memref<256x2048xbf16, #tpu.memory_space<vmem>>, %arg6: memref<1x2048xf32, #tpu.memory_space<vmem>>, %arg7: memref<2048x256xbf16, #tpu.memory_space<vmem>>, %arg8: memref<1x256xf32, #tpu.memory_space<vmem>>, %arg9: memref<8x256xf32, #tpu.memory_space<vmem>>) attributes {dimension_semantics = [#tpu.dimension_semantics<parallel>], iteration_bounds = array<i64: 1>, scalar_prefetch = 0 : i64, scratch_operands = 0 : i64, tpu.core_type = #tpu.core_type<tc>, window_params = [{transform_indices = @transform_0, window_bounds = array<i64: 8, 32>}, {transform_indices = @transform_1, window_bounds = array<i64: 8, 32>}, {pipeline_mode = #tpu.pipeline_mode<synchronous>, transform_indices = @transform_2, window_bounds = array<i64: 32, 256>}, {pipeline_mode = #tpu.pipeline_mode<synchronous>, transform_indices = @transform_3, window_bounds = array<i64: 1, 256>}, {pipeline_mode = #tpu.pipeline_mode<synchronous>, transform_indices = @transform_4, window_bounds = array<i64: 256, 2048>}, {pipeline_mode = #tpu.pipeline_mode<synchronous>, transform_indices = @transform_5, window_bounds = array<i64: 1, 2048>}, {pipeline_mode = #tpu.pipeline_mode<synchronous>, transform_indices = @transform_6, window_bounds = array<i64: 2048, 256>}, {pipeline_mode = #tpu.pipeline_mode<synchronous>, transform_indices = @transform_7, window_bounds = array<i64: 1, 256>}, {transform_indices = @transform_8, window_bounds = array<i64: 8, 256>}]} {
    %c0 = arith.constant 0 : index
    %c0_0 = arith.constant 0 : index
    %0 = vector.load %arg1[%c0, %c0_0] : memref<8x32xf32, #tpu.memory_space<vmem>>, vector<8x32xf32>
    %c0_1 = arith.constant 0 : index
    %c0_2 = arith.constant 0 : index
    %1 = vector.load %arg2[%c0_1, %c0_2] : memref<8x32xf32, #tpu.memory_space<vmem>>, vector<8x32xf32>
    %2 = arith.addf %0, %1 : vector<8x32xf32>
    %3 = arith.truncf %2 : vector<8x32xf32> to vector<8x32xbf16>
    %c0_3 = arith.constant 0 : index
    %c0_4 = arith.constant 0 : index
    %4 = vector.load %arg3[%c0_3, %c0_4] : memref<32x256xbf16, #tpu.memory_space<vmem>>, vector<32x256xbf16>
    %cst = arith.constant dense<0.000000e+00> : vector<8x256xf32>
    %5 = tpu.matmul %3, %4, %cst {dimension_numbers = #tpu.dot_dimension_numbers<[1], [0], [0], [1], [0, 0, 1, 1], [], []>} : vector<8x32xbf16>, vector<32x256xbf16>, vector<8x256xf32> -> vector<8x256xf32>
    %c0_5 = arith.constant 0 : index
    %c0_6 = arith.constant 0 : index
    %6 = vector.load %arg4[%c0_5, %c0_6] : memref<1x256xf32, #tpu.memory_space<vmem>>, vector<1x256xf32>
    %7 = vector.broadcast %6 : vector<1x256xf32> to vector<8x256xf32>
    %8 = arith.addf %5, %7 : vector<8x256xf32>
    %cst_7 = arith.constant 0.000000e+00 : f32
    %9 = vector.broadcast %cst_7 : f32 to vector<8x256xf32>
    %10 = arith.maximumf %8, %9 : vector<8x256xf32>
    %11 = arith.truncf %10 : vector<8x256xf32> to vector<8x256xbf16>
    %c0_8 = arith.constant 0 : index
    %c0_9 = arith.constant 0 : index
    %12 = vector.load %arg5[%c0_8, %c0_9] : memref<256x2048xbf16, #tpu.memory_space<vmem>>, vector<256x2048xbf16>
    %cst_10 = arith.constant dense<0.000000e+00> : vector<8x2048xf32>
    %13 = tpu.matmul %11, %12, %cst_10 {dimension_numbers = #tpu.dot_dimension_numbers<[1], [0], [0], [1], [0, 0, 1, 1], [], []>} : vector<8x256xbf16>, vector<256x2048xbf16>, vector<8x2048xf32> -> vector<8x2048xf32>
    %c0_11 = arith.constant 0 : index
    %c0_12 = arith.constant 0 : index
    %14 = vector.load %arg6[%c0_11, %c0_12] : memref<1x2048xf32, #tpu.memory_space<vmem>>, vector<1x2048xf32>
    %15 = vector.broadcast %14 : vector<1x2048xf32> to vector<8x2048xf32>
    %16 = arith.addf %13, %15 : vector<8x2048xf32>
    %cst_13 = arith.constant 0.000000e+00 : f32
    %17 = vector.broadcast %cst_13 : f32 to vector<8x2048xf32>
    %18 = arith.maximumf %16, %17 : vector<8x2048xf32>
    %19 = arith.truncf %18 : vector<8x2048xf32> to vector<8x2048xbf16>
    %c0_14 = arith.constant 0 : index
    %c0_15 = arith.constant 0 : index
    %20 = vector.load %arg7[%c0_14, %c0_15] : memref<2048x256xbf16, #tpu.memory_space<vmem>>, vector<2048x256xbf16>
    %cst_16 = arith.constant dense<0.000000e+00> : vector<8x256xf32>
    %21 = tpu.matmul %19, %20, %cst_16 {dimension_numbers = #tpu.dot_dimension_numbers<[1], [0], [0], [1], [0, 0, 1, 1], [], []>} : vector<8x2048xbf16>, vector<2048x256xbf16>, vector<8x256xf32> -> vector<8x256xf32>
    %c0_17 = arith.constant 0 : index
    %c0_18 = arith.constant 0 : index
    %22 = vector.load %arg8[%c0_17, %c0_18] : memref<1x256xf32, #tpu.memory_space<vmem>>, vector<1x256xf32>
    %23 = vector.broadcast %22 : vector<1x256xf32> to vector<8x256xf32>
    %24 = arith.addf %21, %23 : vector<8x256xf32>
    %25 = math.tanh %24 : vector<8x256xf32>
    %c0_19 = arith.constant 0 : index
    %c0_20 = arith.constant 0 : index
    %26 = vector.load %arg9[%c0_19, %c0_20] : memref<8x256xf32, #tpu.memory_space<vmem>>, vector<8x256xf32>
    tpu.vector_store %arg9[%c0_19, %c0_20], %25 {strides = array<i32>} : memref<8x256xf32, #tpu.memory_space<vmem>>, vector<8x256xf32>,
    return
  }
  func.func @transform_0(%arg0: i32) -> (i32, i32) {
    %c0_i32 = arith.constant 0 : i32
    %c0_i32_0 = arith.constant 0 : i32
    return %arg0, %c0_i32 : i32, i32
  }
  func.func @transform_1(%arg0: i32) -> (i32, i32) {
    %c0_i32 = arith.constant 0 : i32
    %c0_i32_0 = arith.constant 0 : i32
    return %arg0, %c0_i32 : i32, i32
  }
  func.func @transform_2(%arg0: i32) -> (i32, i32) {
    %c0_i32 = arith.constant 0 : i32
    %c0_i32_0 = arith.constant 0 : i32
    %c0_i32_1 = arith.constant 0 : i32
    return %c0_i32, %c0_i32_0 : i32, i32
  }
  func.func @transform_3(%arg0: i32) -> (i32, i32) {
    %c0_i32 = arith.constant 0 : i32
    %c0_i32_0 = arith.constant 0 : i32
    %c0_i32_1 = arith.constant 0 : i32
    return %c0_i32, %c0_i32_0 : i32, i32
  }
  func.func @transform_4(%arg0: i32) -> (i32, i32) {
    %c0_i32 = arith.constant 0 : i32
    %c0_i32_0 = arith.constant 0 : i32
    %c0_i32_1 = arith.constant 0 : i32
    return %c0_i32, %c0_i32_0 : i32, i32
  }
  func.func @transform_5(%arg0: i32) -> (i32, i32) {
    %c0_i32 = arith.constant 0 : i32
    %c0_i32_0 = arith.constant 0 : i32
    %c0_i32_1 = arith.constant 0 : i32
    return %c0_i32, %c0_i32_0 : i32, i32
  }
  func.func @transform_6(%arg0: i32) -> (i32, i32) {
    %c0_i32 = arith.constant 0 : i32
    %c0_i32_0 = arith.constant 0 : i32
    %c0_i32_1 = arith.constant 0 : i32
    return %c0_i32, %c0_i32_0 : i32, i32
  }
  func.func @transform_7(%arg0: i32) -> (i32, i32) {
    %c0_i32 = arith.constant 0 : i32
    %c0_i32_0 = arith.constant 0 : i32
    %c0_i32_1 = arith.constant 0 : i32
    return %c0_i32, %c0_i32_0 : i32, i32
  }
  func.func @transform_8(%arg0: i32) -> (i32, i32) {
    %c0_i32 = arith.constant 0 : i32
    %c0_i32_0 = arith.constant 0 : i32
    return %arg0, %c0_i32 : i32, i32
  }
}

</mosaic_0001>

<bundles_post_ra>
// kernel: tpu_custom_call.1
= control target key start
LH: loop header
LB: loop body
LE: loop exit
PB: predicated region body
PF: predicated region fallthrough
CT: control target
= control target key end

     0   :  { %13 = vsyncpa [#allocation3], 0  ;;  %s7238_s0 = inlined_call_operand.hbm [shape: f32[8,32], index: 0, kind: input, shape index: {}]   ;;  %s7239_s1 = inlined_call_operand.hbm [shape: f32[8,32], index: 1, kind: input, shape index: {}]   ;;  %s7240_s2 = inlined_call_operand.hbm [shape: bf16[32,256], index: 2, kind: input, shape index: {}]   ;;  %s7241_s3 = inlined_call_operand.vmem [shape: f32[1,256], index: 3, kind: input, shape index: {}]   ;;  %s7242_s4 = inlined_call_operand.hbm [shape: bf16[256,2048], index: 4, kind: input, shape index: {}]   ;;  %s7243_s5 = inlined_call_operand.hbm [shape: f32[1,2048], index: 5, kind: input, shape index: {}]   ;;  %s7244_s6 = inlined_call_operand.hbm [shape: bf16[2048,256], index: 6, kind: input, shape index: {}]   ;;  %s7245_s7 = inlined_call_operand.vmem [shape: f32[1,256], index: 7, kind: input, shape index: {}]   ;;  %s7246_s8 = inlined_call_operand.hbm [shape: f32[8,256], index: 8, kind: output, shape index: {}]  }
   0x1   :  { %14 = vsyncpa [#allocation6], 0 }
   0x2   :  { %15 = vsyncpa [#allocation9], 0 }
   0x3   :  { %16 = vsyncpa [#allocation12], 0  ;;  %s34_s29 = sshll.u32 %s7239_s1, 4  ;;  %s35_s29 = int_to_ptr.hbm [resolvable:$true] %s34_s29 }
   0x4   :  { %17 = vsyncpa [#allocation4], 0  ;;  %s6965_s30 = smov [#allocation5]   ;;  %s59_s12 = sshll.u32 %s7242_s4, 4  ;;  %s60_s12 = int_to_ptr.hbm [resolvable:$true] %s59_s12 }
   0x5   :  { %s36_s9 = sshll.u32 %s6965_s30, 4  ;;  %s6966_s13 = smov [#allocation8]   ;;  %s37_s9 = int_to_ptr.vmem [resolvable:$true] %s36_s9 }
   0x6   :  { %39 = dma.hbm_to_vmem [thread:$0]  %s35_s29, 128, %s37_s9, [#allocation6]  }
   0x7   :  { %s61_s14 = sshll.u32 %s6966_s13, 4  ;;  %s6967_s15 = smov 1024   ;;  %s62_s14 = int_to_ptr.vmem [resolvable:$true] %s61_s14 }
   0x8   :  { %s6968_s16 = smov 64   ;;  %s23_s1 = sshll.u32 %s7238_s0, 4  ;;  %s24_s1 = int_to_ptr.hbm [resolvable:$true] %s23_s1 }
   0x9   :  { %67 = dma.hbm_to_vmem [thread:$0]  %s60_s12, 32768, %s62_s14, [#allocation9], %s6967_s15, %s6967_s15, %s6968_s16  }
   0xa   :  { %s6969_s19 = smov [#allocation2]   ;;  %s44_s4 = sshll.u32 %s7240_s2, 4  ;;  %s45_s4 = int_to_ptr.hbm [resolvable:$true] %s44_s4 }
   0xb   :  { %s25_s20 = sshll.u32 %s6969_s19, 4  ;;  %s6970_s23 = smov [#allocation7]   ;;  %s26_s20 = int_to_ptr.vmem [resolvable:$true] %s25_s20 }
   0xc   :  { %28 = dma.hbm_to_vmem [thread:$0]  %s24_s1, 128, %s26_s20, [#allocation3]  }
   0xd   :  { %s46_s24 = sshll.u32 %s6970_s23, 4  ;;  %s6971_s25 = smov 128   ;;  %s47_s24 = int_to_ptr.vmem [resolvable:$true] %s46_s24 }
   0xe   :  { %s6972_s26 = smov 8   ;;  %s73_s0 = sshll.u32 %s7243_s5, 4  ;;  %s74_s0 = int_to_ptr.hbm [resolvable:$true] %s73_s0 }
   0xf   :  { %52 = dma.hbm_to_vmem [thread:$0]  %s45_s4, 512, %s47_s24, [#allocation6], %s6971_s25, %s6971_s25, %s6972_s26  }
  0x10   :  { %s6973_s29 = smov [#allocation10]   ;;  %s83_s2 = sshll.u32 %s7244_s6, 4  ;;  %s84_s2 = int_to_ptr.hbm [resolvable:$true] %s83_s2 }
  0x11   :  { %s75_s30 = sshll.u32 %s6973_s29, 4  ;;  %s6974_s11 = smov [#allocation11]   ;;  %s76_s30 = int_to_ptr.vmem [resolvable:$true] %s75_s30 }
  0x12   :  { %78 = dma.hbm_to_vmem [thread:$0]  %s74_s0, 256, %s76_s30, [#allocation9]  }
  0x13   :  { %s85_s12 = sshll.u32 %s6974_s11, 4  ;;  %s86_s12 = int_to_ptr.vmem [resolvable:$true] %s85_s12 }
  0x14   :  { %91 = dma.hbm_to_vmem [thread:$0]  %s84_s2, 32768, %s86_s12, [#allocation12], %s6971_s25, %s6971_s25, %s6972_s26  }
  0x15   :  { %6955 = dma.done.wait [#allocation3], 128  }
  0x16   :  { %6956 = vsyncadd [#allocation3], 4294967168 }
  0x17   :  { %6957 = dma.done.wait [#allocation6], 640  }
  0x18   :  { %6958 = vsyncadd [#allocation6], 4294966656 }
  0x19   :  { %6959 = dma.done.wait [#allocation9], 33024  }
  0x1a   :  { %6960 = vsyncadd [#allocation9], 4294934272 }
  0x1b   :  { %6961 = dma.done.wait [#allocation12], 32768  }
  0x1c   :  { %6962 = vsyncadd [#allocation12], 4294934528  ;;  %v4199_v0 = vld [vmem:[#allocation7 + $0x10] sm:$0xf]  ;;  %v6258_v1 = vld [vmem:[#allocation7 + $0x14] sm:$0xf0] }
  0x1d   :  { %v6257_v2 = vld [vmem:[#allocation7 + $0x14] sm:$0xf]  ;;  %v4200_v3 = vor.u32 %v6258_v1, %v4199_v0  ;;  %v4201_v4 = vld [vmem:[#allocation7 + $0x18] sm:$0xf0]  ;;  %v4191_v5 = vld [vmem:[#allocation7] sm:$0xf] }
  0x1e   :  { %v6256_v6 = vld [vmem:[#allocation7 + $0x4] sm:$0xf0]  ;;  %v4204_v7 = vor.u32 %v6257_v2, %v4201_v4  ;;  %v6255_v8 = vld [vmem:[#allocation7 + $0x4] sm:$0xf]  ;;  %v4193_v9 = vld [vmem:[#allocation7 + $0x8] sm:$0xf0] }
  0x1f   :  { %v119_v10 = vld [vmem:[#allocation2] sm:$0xff]  ;;  %163 = vmatpush.bf16.msra.mxu0 %v4200_v3  ;;  %v4192_v11 = vor.u32 %v6256_v6, %v4191_v5  ;;  %v120_v12 = vld [vmem:[#allocation5] sm:$0xff]  ;;  %vm153_vm0 = vcmask 261120   ;;  %v4657_v13 = vld [vmem:[#allocation8 + $0x380] sm:$0xf]  ;;  %v4196_v15 = vor.u32 %v6255_v8, %v4193_v9  ;;  %s4176_s17 = sshll.u32 %s7246_s8, 4  ;;  %s4177_s17 = int_to_ptr.hbm [resolvable:$true] %s4176_s17 }
  0x20   :  { %v6379_v14 = vld [vmem:[#allocation8 + $0x3bc] sm:$0xf0]  ;;  %176 = vmatpush.bf16.msra.mxu1 %v4204_v7  ;;  %v121_v16 = vadd.f32 %v120_v12, %v119_v10  ;;  %v6371_v20 = vld [vmem:[#allocation8 + $0x384] sm:$0xf] }
  0x21   :  { %v4658_v17 = vor.u32 %v6379_v14, %v4657_v13  ;;  %v5169_v18 = vld [vmem:[#allocation8 + $0x780] sm:$0xf]  ;;  %v4659_v22 = vld [vmem:[#allocation8 + $0x3c0] sm:$0xf0] }
  0x22   :  { %v6507_v19 = vld [vmem:[#allocation8 + $0x7bc] sm:$0xf0]  ;;  %v6499_v23 = vld [vmem:[#allocation8 + $0x784] sm:$0xf]  ;;  %v122_v25 = vpack.c.bf16 %v121_v16, %v121_v16  ;;  %v4662_v26 = vor.u32 %v6371_v20, %v4659_v22 }
  0x23   :  { %v5170_v21 = vor.u32 %v6507_v19, %v5169_v18  ;;  %v5171_v24 = vld [vmem:[#allocation8 + $0x7c0] sm:$0xf0]  ;;  %1759 = vmatpush.bf16.msra.mxu2 %v4658_v17  ;;  %v4593_v28 = vld [vmem:[#allocation8 + $0x300] sm:$0xf]  ;;  %164 = vmatpush.bf16.msra.mxu0 %v4192_v11 }
  0x24   :  { %v5174_v27 = vor.u32 %v6499_v23, %v5171_v24  ;;  %v6363_v29 = vld [vmem:[#allocation8 + $0x33c] sm:$0xf0]  ;;  %v6355_v33 = vld [vmem:[#allocation8 + $0x304] sm:$0xf]  ;;  %177 = vmatpush.bf16.msra.mxu1 %v4196_v15 }
  0x25   :  { %v5105_v30 = vld [vmem:[#allocation8 + $0x700] sm:$0xf]  ;;  %1772 = vmatpush.bf16.msra.mxu3 %v5170_v21  ;;  %v4594_v31 = vor.u32 %v6363_v29, %v4593_v28  ;;  %v4595_v34 = vld [vmem:[#allocation8 + $0x340] sm:$0xf0] }
  0x26   :  { %v6491_v32 = vld [vmem:[#allocation8 + $0x73c] sm:$0xf0]  ;;  %v4598_v36 = vor.u32 %v6355_v33, %v4595_v34  ;;  %v6483_v37 = vld [vmem:[#allocation8 + $0x704] sm:$0xf]  ;;  %4205 = vmatmul.msk.bf16.vlgmr.msra.gmra.mxu0 %vm153_vm0, %v122_v25 }
  0x27   :  { %1785 = vmatpush.bf16.msrb.mxu0 %v4662_v26  ;;  %v5106_v35 = vor.u32 %v6491_v32, %v5105_v30  ;;  %v5107_v38 = vld [vmem:[#allocation8 + $0x740] sm:$0xf0]  ;;  %v4529_v39 = vld [vmem:[#allocation8 + $0x280] sm:$0xf]  ;;  %1760 = vmatpush.bf16.msra.mxu2 %v4594_v31 }
  0x28   :  { %1798 = vmatpush.bf16.msrb.mxu1 %v5174_v27  ;;  %v5110_v40 = vor.u32 %v6483_v37, %v5107_v38  ;;  %v6347_v41 = vld [vmem:[#allocation8 + $0x2bc] sm:$0xf0]  ;;  %v6339_v45 = vld [vmem:[#allocation8 + $0x284] sm:$0xf] }
  0x29   :  { %v5041_v42 = vld [vmem:[#allocation8 + $0x680] sm:$0xf]  ;;  %v4530_v44 = vor.u32 %v6347_v41, %v4529_v39  ;;  %v4531_v46 = vld [vmem:[#allocation8 + $0x2c0] sm:$0xf0]  ;;  %4206 = vmatmul.msk.bf16.vlgmr.msra.gmra.mxu1 %vm153_vm0, %v122_v25  ;;  %1773 = vmatpush.bf16.msra.mxu3 %v5106_v35  ;;  %v4665_v41 = vld [vmem:[#allocation8 + $0x388] sm:$0xf] }
  0x2a   :  { %v6475_v43 = vld [vmem:[#allocation8 + $0x6bc] sm:$0xf0]  ;;  %v6467_v47 = vld [vmem:[#allocation8 + $0x684] sm:$0xf]  ;;  %v4534_v52 = vor.u32 %v6339_v45, %v4531_v46  ;;  %v5177_v45 = vld [vmem:[#allocation8 + $0x788] sm:$0xf] }
  0x2b   :  { %v5042_v48 = vor.u32 %v6475_v43, %v5041_v42  ;;  %v5043_v49 = vld [vmem:[#allocation8 + $0x6c0] sm:$0xf0]  ;;  %v4465_v50 = vld [vmem:[#allocation8 + $0x200] sm:$0xf]  ;;  %1786 = vmatpush.bf16.msrb.mxu0 %v4598_v36  ;;  %1761 = vmatpush.bf16.msra.mxu2 %v4530_v44  ;;  %v6380_v42 = vld [vmem:[#allocation8 + $0x3c4] sm:$0xf0] }
  0x2c   :  { %v6331_v51 = vld [vmem:[#allocation8 + $0x23c] sm:$0xf0]  ;;  %1799 = vmatpush.bf16.msrb.mxu1 %v5110_v40  ;;  %v5046_v55 = vor.u32 %v6467_v47, %v5043_v49  ;;  %v6323_v56 = vld [vmem:[#allocation8 + $0x204] sm:$0xf]  ;;  %v6508_v46 = vld [vmem:[#allocation8 + $0x7c4] sm:$0xf0] }
  0x2d   :  { %v4977_v53 = vld [vmem:[#allocation8 + $0x600] sm:$0xf]  ;;  %v4467_v57 = vld [vmem:[#allocation8 + $0x240] sm:$0xf0]  ;;  %v4466_v58 = vor.u32 %v6331_v51, %v4465_v50  ;;  %1774 = vmatpush.bf16.msra.mxu3 %v5042_v48  ;;  %v6372_v49 = vld [vmem:[#allocation8 + $0x38c] sm:$0xf] }
  0x2e   :  { %v6459_v54 = vld [vmem:[#allocation8 + $0x63c] sm:$0xf0]  ;;  %v6451_v59 = vld [vmem:[#allocation8 + $0x604] sm:$0xf]  ;;  %v4470_v0 = vor.u32 %v6323_v56, %v4467_v57  ;;  %v4667_v50 = vld [vmem:[#allocation8 + $0x3c8] sm:$0xf0]  ;;  %v5178_v56 = vor.u32 %v6508_v46, %v5177_v45 }
  0x2f   :  { %v4979_v60 = vld [vmem:[#allocation8 + $0x640] sm:$0xf0]  ;;  %v4978_v61 = vor.u32 %v6459_v54, %v4977_v53  ;;  %v4401_v62 = vld [vmem:[#allocation8 + $0x180] sm:$0xf]  ;;  %1787 = vmatpush.bf16.msrb.mxu0 %v4534_v52  ;;  %1762 = vmatpush.bf16.msra.mxu2 %v4466_v58  ;;  %v4666_v52 = vor.u32 %v6380_v42, %v4665_v41  ;;  %v6500_v53 = vld [vmem:[#allocation8 + $0x78c] sm:$0xf] }
  0x30   :  { %v6315_v63 = vld [vmem:[#allocation8 + $0x1bc] sm:$0xf0]  ;;  %1800 = vmatpush.bf16.msrb.mxu1 %v5046_v55  ;;  %v4982_v3 = vor.u32 %v6451_v59, %v4979_v60  ;;  %v6307_v4 = vld [vmem:[#allocation8 + $0x184] sm:$0xf]  ;;  %v5179_v54 = vld [vmem:[#allocation8 + $0x7c8] sm:$0xf0]  ;;  %v4670_v60 = vor.u32 %v6372_v49, %v4667_v50 }
  0x31   :  { %v4913_v1 = vld [vmem:[#allocation8 + $0x580] sm:$0xf]  ;;  %v4403_v5 = vld [vmem:[#allocation8 + $0x1c0] sm:$0xf0]  ;;  %v4402_v6 = vor.u32 %v6315_v63, %v4401_v62  ;;  %1775 = vmatpush.bf16.msra.mxu3 %v4978_v61  ;;  %v4601_v57 = vld [vmem:[#allocation8 + $0x308] sm:$0xf]  ;;  %v5182_v63 = vor.u32 %v6500_v53, %v5179_v54 }
  0x32   :  { %v6443_v2 = vld [vmem:[#allocation8 + $0x5bc] sm:$0xf0]  ;;  %v6435_v7 = vld [vmem:[#allocation8 + $0x584] sm:$0xf]  ;;  %v4406_v12 = vor.u32 %v6307_v4, %v4403_v5  ;;  %v6364_v58 = vld [vmem:[#allocation8 + $0x344] sm:$0xf0] }
  0x33   :  { %v4915_v8 = vld [vmem:[#allocation8 + $0x5c0] sm:$0xf0]  ;;  %v4914_v9 = vor.u32 %v6443_v2, %v4913_v1  ;;  %v4337_v10 = vld [vmem:[#allocation8 + $0x100] sm:$0xf]  ;;  %1788 = vmatpush.bf16.msrb.mxu0 %v4470_v0  ;;  %1763 = vmatpush.bf16.msra.mxu2 %v4402_v6  ;;  %v5113_v61 = vld [vmem:[#allocation8 + $0x708] sm:$0xf]  ;;  %v4602_v2 = vor.u32 %v6364_v58, %v4601_v57 }
  0x34   :  { %v6299_v11 = vld [vmem:[#allocation8 + $0x13c] sm:$0xf0]  ;;  %1801 = vmatpush.bf16.msrb.mxu1 %v4982_v3  ;;  %v4918_v15 = vor.u32 %v6435_v7, %v4915_v8  ;;  %v6291_v16 = vld [vmem:[#allocation8 + $0x104] sm:$0xf]  ;;  %v6492_v62 = vld [vmem:[#allocation8 + $0x744] sm:$0xf0] }
  0x35   :  { %v4849_v13 = vld [vmem:[#allocation8 + $0x500] sm:$0xf]  ;;  %v4339_v17 = vld [vmem:[#allocation8 + $0x140] sm:$0xf0]  ;;  %v4338_v18 = vor.u32 %v6299_v11, %v4337_v10  ;;  %1776 = vmatpush.bf16.msra.mxu3 %v4914_v9  ;;  %v6356_v0 = vld [vmem:[#allocation8 + $0x30c] sm:$0xf]  ;;  %v5114_v5 = vor.u32 %v6492_v62, %v5113_v61 }
  0x36   :  { %v6427_v14 = vld [vmem:[#allocation8 + $0x53c] sm:$0xf0]  ;;  %v6419_v19 = vld [vmem:[#allocation8 + $0x504] sm:$0xf]  ;;  %v4342_v24 = vor.u32 %v6291_v16, %v4339_v17  ;;  %v4603_v1 = vld [vmem:[#allocation8 + $0x348] sm:$0xf0] }
  0x37   :  { %v4851_v20 = vld [vmem:[#allocation8 + $0x540] sm:$0xf0]  ;;  %v4850_v21 = vor.u32 %v6427_v14, %v4849_v13  ;;  %v4273_v22 = vld [vmem:[#allocation8 + $0x80] sm:$0xf]  ;;  %1789 = vmatpush.bf16.msrb.mxu0 %v4406_v12  ;;  %1764 = vmatpush.bf16.msra.mxu2 %v4338_v18  ;;  %v6484_v3 = vld [vmem:[#allocation8 + $0x70c] sm:$0xf]  ;;  %v4606_v8 = vor.u32 %v6356_v0, %v4603_v1 }
  0x38   :  { %v6283_v23 = vld [vmem:[#allocation8 + $0xbc] sm:$0xf0]  ;;  %1802 = vmatpush.bf16.msrb.mxu1 %v4918_v15  ;;  %v4854_v27 = vor.u32 %v6419_v19, %v4851_v20  ;;  %v6275_v28 = vld [vmem:[#allocation8 + $0x84] sm:$0xf]  ;;  %v5115_v4 = vld [vmem:[#allocation8 + $0x748] sm:$0xf0] }
  0x39   :  { %v4785_v25 = vld [vmem:[#allocation8 + $0x480] sm:$0xf]  ;;  %v4275_v29 = vld [vmem:[#allocation8 + $0xc0] sm:$0xf0]  ;;  %v4274_v31 = vor.u32 %v6283_v23, %v4273_v22  ;;  %1777 = vmatpush.bf16.msra.mxu3 %v4850_v21  ;;  %v4537_v6 = vld [vmem:[#allocation8 + $0x288] sm:$0xf]  ;;  %v5118_v11 = vor.u32 %v6484_v3, %v5115_v4 }
  0x3a   :  { %v6411_v26 = vld [vmem:[#allocation8 + $0x4bc] sm:$0xf0]  ;;  %v6403_v30 = vld [vmem:[#allocation8 + $0x484] sm:$0xf]  ;;  %v4278_v39 = vor.u32 %v6275_v28, %v4275_v29  ;;  %v6348_v7 = vld [vmem:[#allocation8 + $0x2c4] sm:$0xf0] }
  0x3b   :  { %v4787_v32 = vld [vmem:[#allocation8 + $0x4c0] sm:$0xf0]  ;;  %v4209_v33 = vld [vmem:[#allocation8] sm:$0xf]  ;;  %v4786_v35 = vor.u32 %v6411_v26, %v4785_v25  ;;  %1790 = vmatpush.bf16.msrb.mxu0 %v4342_v24  ;;  %1765 = vmatpush.bf16.msra.mxu2 %v4274_v31  ;;  %v5049_v9 = vld [vmem:[#allocation8 + $0x688] sm:$0xf]  ;;  %v4538_v14 = vor.u32 %v6348_v7, %v4537_v6 }
  0x3c   :  { %v6267_v34 = vld [vmem:[#allocation8 + $0x3c] sm:$0xf0]  ;;  %v6259_v38 = vld [vmem:[#allocation8 + $0x4] sm:$0xf]  ;;  %1803 = vmatpush.bf16.msrb.mxu1 %v4854_v27  ;;  %v4790_v43 = vor.u32 %v6403_v30, %v4787_v32  ;;  %v6476_v10 = vld [vmem:[#allocation8 + $0x6c4] sm:$0xf0] }
  0x3d   :  { %v4721_v36 = vld [vmem:[#allocation8 + $0x400] sm:$0xf]  ;;  %v4211_v40 = vld [vmem:[#allocation8 + $0x40] sm:$0xf0]  ;;  %v4210_v47 = vor.u32 %v6267_v34, %v4209_v33  ;;  %1778 = vmatpush.bf16.msra.mxu3 %v4786_v35  ;;  %v6340_v12 = vld [vmem:[#allocation8 + $0x28c] sm:$0xf]  ;;  %v5050_v17 = vor.u32 %v6476_v10, %v5049_v9 }
  0x3e   :  { %v6395_v37 = vld [vmem:[#allocation8 + $0x43c] sm:$0xf0]  ;;  %v6387_v44 = vld [vmem:[#allocation8 + $0x404] sm:$0xf]  ;;  %v4214_v55 = vor.u32 %v6259_v38, %v4211_v40  ;;  %v4539_v13 = vld [vmem:[#allocation8 + $0x2c8] sm:$0xf0] }
  0x3f   :  { %v4723_v48 = vld [vmem:[#allocation8 + $0x440] sm:$0xf0]  ;;  %v4722_v51 = vor.u32 %v6395_v37, %v4721_v36  ;;  %1791 = vmatpush.bf16.msrb.mxu0 %v4278_v39  ;;  %1766 = vmatpush.bf16.msra.mxu2 %v4210_v47  ;;  %v6468_v15 = vld [vmem:[#allocation8 + $0x68c] sm:$0xf]  ;;  %v4473_v18 = vld [vmem:[#allocation8 + $0x208] sm:$0xf]  ;;  %v4542_v20 = vor.u32 %v6340_v12, %v4539_v13 }
  0x40   :  { %1804 = vmatpush.bf16.msrb.mxu1 %v4790_v43  ;;  %v4726_v59 = vor.u32 %v6387_v44, %v4723_v48  ;;  %v5051_v16 = vld [vmem:[#allocation8 + $0x6c8] sm:$0xf0]  ;;  %v6332_v19 = vld [vmem:[#allocation8 + $0x244] sm:$0xf0] }
  0x41   :  { %1779 = vmatpush.bf16.msra.mxu3 %v4722_v51  ;;  %v4985_v21 = vld [vmem:[#allocation8 + $0x608] sm:$0xf]  ;;  %v5054_v23 = vor.u32 %v6468_v15, %v5051_v16  ;;  %v6324_v24 = vld [vmem:[#allocation8 + $0x20c] sm:$0xf]  ;;  %v4474_v26 = vor.u32 %v6332_v19, %v4473_v18  ;;  %v127_v16 = vld [vmem:[%s7241_s3] sm:$0x3] }
  0x42   :  { %v6460_v22 = vld [vmem:[#allocation8 + $0x644] sm:$0xf0]  ;;  %v4475_v25 = vld [vmem:[#allocation8 + $0x248] sm:$0xf0]  ;;  %v130_v18 = vperm.slane %v127_v16, 1 }
  0x43   :  { %1811 = vmatpush.bf16.msrb.mxu2 %v4666_v52  ;;  %1792 = vmatpush.bf16.msrb.mxu0 %v4214_v55  ;;  %v6452_v27 = vld [vmem:[#allocation8 + $0x60c] sm:$0xf]  ;;  %v4986_v29 = vor.u32 %v6460_v22, %v4985_v21  ;;  %v4409_v30 = vld [vmem:[#allocation8 + $0x188] sm:$0xf]  ;;  %v4478_v32 = vor.u32 %v6324_v24, %v4475_v25  ;;  %v4673_v22 = vld [vmem:[#allocation8 + $0x390] sm:$0xf] }
  0x44   :  { %1805 = vmatpush.bf16.msrb.mxu1 %v4726_v59  ;;  %v4987_v28 = vld [vmem:[#allocation8 + $0x648] sm:$0xf0]  ;;  %v6316_v31 = vld [vmem:[#allocation8 + $0x1c4] sm:$0xf0]  ;;  %v5185_v24 = vld [vmem:[#allocation8 + $0x790] sm:$0xf] }
  0x45   :  { %1824 = vmatpush.bf16.msrb.mxu3 %v5178_v56  ;;  %v4921_v33 = vld [vmem:[#allocation8 + $0x588] sm:$0xf]  ;;  %v4990_v35 = vor.u32 %v6452_v27, %v4987_v28  ;;  %v6308_v36 = vld [vmem:[#allocation8 + $0x18c] sm:$0xf]  ;;  %v4410_v38 = vor.u32 %v6316_v31, %v4409_v30  ;;  %v6373_v27 = vld [vmem:[#allocation8 + $0x394] sm:$0xf] }
  0x46   :  { %v6444_v34 = vld [vmem:[#allocation8 + $0x5c4] sm:$0xf0]  ;;  %v4411_v37 = vld [vmem:[#allocation8 + $0x1c8] sm:$0xf0]  ;;  %v4675_v28 = vld [vmem:[#allocation8 + $0x3d0] sm:$0xf0] }
  0x47   :  { %1837 = vmatpush.bf16.msra.mxu0 %v4670_v60  ;;  %1812 = vmatpush.bf16.msrb.mxu2 %v4602_v2  ;;  %v6436_v39 = vld [vmem:[#allocation8 + $0x58c] sm:$0xf]  ;;  %v4922_v41 = vor.u32 %v6444_v34, %v4921_v33  ;;  %v4345_v42 = vld [vmem:[#allocation8 + $0x108] sm:$0xf]  ;;  %v4414_v44 = vor.u32 %v6308_v36, %v4411_v37  ;;  %v6501_v30 = vld [vmem:[#allocation8 + $0x794] sm:$0xf] }
  0x48   :  { %1850 = vmatpush.bf16.msra.mxu1 %v5182_v63  ;;  %v4923_v40 = vld [vmem:[#allocation8 + $0x5c8] sm:$0xf0]  ;;  %v6300_v43 = vld [vmem:[#allocation8 + $0x144] sm:$0xf0]  ;;  %v5187_v31 = vld [vmem:[#allocation8 + $0x7d0] sm:$0xf0] }
  0x49   :  { %1825 = vmatpush.bf16.msrb.mxu3 %v5114_v5  ;;  %v4857_v45 = vld [vmem:[#allocation8 + $0x508] sm:$0xf]  ;;  %v4926_v47 = vor.u32 %v6436_v39, %v4923_v40  ;;  %v6292_v48 = vld [vmem:[#allocation8 + $0x10c] sm:$0xf]  ;;  %v4346_v50 = vor.u32 %v6300_v43, %v4345_v42  ;;  %v4609_v36 = vld [vmem:[#allocation8 + $0x310] sm:$0xf]  ;;  %v4678_v39 = vor.u32 %v6373_v27, %v4675_v28  ;;  %v5190_v40 = vor.u32 %v6501_v30, %v5187_v31 }
  0x4a   :  { %v6428_v46 = vld [vmem:[#allocation8 + $0x544] sm:$0xf0]  ;;  %v4347_v49 = vld [vmem:[#allocation8 + $0x148] sm:$0xf0]  ;;  %v6365_v37 = vld [vmem:[#allocation8 + $0x34c] sm:$0xf0] }
  0x4b   :  { %1838 = vmatpush.bf16.msra.mxu0 %v4606_v8  ;;  %1813 = vmatpush.bf16.msrb.mxu2 %v4538_v14  ;;  %v6420_v51 = vld [vmem:[#allocation8 + $0x50c] sm:$0xf]  ;;  %v4858_v53 = vor.u32 %v6428_v46, %v4857_v45  ;;  %v4350_v54 = vor.u32 %v6292_v48, %v4347_v49  ;;  %v4281_v56 = vld [vmem:[#allocation8 + $0x88] sm:$0xf]  ;;  %v6493_v42 = vld [vmem:[#allocation8 + $0x74c] sm:$0xf0]  ;;  %v4610_v49 = vor.u32 %v6365_v37, %v4609_v36 }
  0x4c   :  { %1851 = vmatpush.bf16.msra.mxu1 %v5118_v11  ;;  %v4859_v52 = vld [vmem:[#allocation8 + $0x548] sm:$0xf0]  ;;  %v6284_v57 = vld [vmem:[#allocation8 + $0xc4] sm:$0xf0]  ;;  %v6357_v43 = vld [vmem:[#allocation8 + $0x314] sm:$0xf] }
  0x4d   :  { %1826 = vmatpush.bf16.msrb.mxu3 %v5050_v17  ;;  %v4862_v55 = vor.u32 %v6420_v51, %v4859_v52  ;;  %v4282_v58 = vor.u32 %v6284_v57, %v4281_v56  ;;  %v4793_v59 = vld [vmem:[#allocation8 + $0x488] sm:$0xf]  ;;  %v6276_v61 = vld [vmem:[#allocation8 + $0x8c] sm:$0xf]  ;;  %v129_v17 = vperm.slane %v127_v16, 0 }
  0x4e   :  { %v6412_v60 = vld [vmem:[#allocation8 + $0x4c4] sm:$0xf0]  ;;  %v4283_v63 = vld [vmem:[#allocation8 + $0xc8] sm:$0xf0]  ;;  %v6485_v45 = vld [vmem:[#allocation8 + $0x714] sm:$0xf] }
  0x4f   :  { %1839 = vmatpush.bf16.msra.mxu0 %v4542_v20  ;;  %1814 = vmatpush.bf16.msrb.mxu2 %v4474_v26  ;;  %v4794_v62 = vor.u32 %v6412_v60, %v4793_v59  ;;  %v6404_v0 = vld [vmem:[#allocation8 + $0x48c] sm:$0xf]  ;;  %v4286_v2 = vor.u32 %v6276_v61, %v4283_v63  ;;  %v4217_v4 = vld [vmem:[#allocation8 + $0x8] sm:$0xf]  ;;  %v6509_v26 = vld [vmem:[#allocation8 + $0x7cc] sm:$0xf0] }
  0x50   :  { %1852 = vmatpush.bf16.msra.mxu1 %v5054_v23  ;;  %v4795_v1 = vld [vmem:[#allocation8 + $0x4c8] sm:$0xf0]  ;;  %v6268_v5 = vld [vmem:[#allocation8 + $0x44] sm:$0xf0]  ;;  %v6381_v23 = vld [vmem:[#allocation8 + $0x3cc] sm:$0xf0] }
  0x51   :  { %1827 = vmatpush.bf16.msrb.mxu3 %v4986_v29  ;;  %v4798_v3 = vor.u32 %v6404_v0, %v4795_v1  ;;  %v4729_v6 = vld [vmem:[#allocation8 + $0x408] sm:$0xf]  ;;  %v4218_v7 = vor.u32 %v6268_v5, %v4217_v4  ;;  %v6260_v9 = vld [vmem:[#allocation8 + $0xc] sm:$0xf]  ;;  %v4674_v34 = vor.u32 %v6381_v23, %v4673_v22  ;;  %v5123_v46 = vld [vmem:[#allocation8 + $0x750] sm:$0xf0] }
  0x52   :  { %v6396_v8 = vld [vmem:[#allocation8 + $0x444] sm:$0xf0]  ;;  %v4219_v10 = vld [vmem:[#allocation8 + $0x48] sm:$0xf0]  ;;  %v4545_v51 = vld [vmem:[#allocation8 + $0x290] sm:$0xf] }
  0x53   :  { %1840 = vmatpush.bf16.msra.mxu0 %v4478_v32  ;;  %1815 = vmatpush.bf16.msrb.mxu2 %v4410_v38  ;;  %v4730_v11 = vor.u32 %v6396_v8, %v4729_v6  ;;  %v4222_v12 = vor.u32 %v6260_v9, %v4219_v10  ;;  %v6388_v13 = vld [vmem:[#allocation8 + $0x40c] sm:$0xf]  ;;  %v6349_v52 = vld [vmem:[#allocation8 + $0x2cc] sm:$0xf0]  ;;  %v6341_v57 = vld [vmem:[#allocation8 + $0x294] sm:$0xf] }
  0x54   :  { %1853 = vmatpush.bf16.msra.mxu1 %v4990_v35  ;;  %v4731_v14 = vld [vmem:[#allocation8 + $0x448] sm:$0xf0]  ;;  %v5186_v35 = vor.u32 %v6509_v26, %v5185_v24  ;;  %v6477_v56 = vld [vmem:[#allocation8 + $0x6cc] sm:$0xf0]  ;;  %v6469_v59 = vld [vmem:[#allocation8 + $0x694] sm:$0xf]  ;;  %v4546_v61 = vor.u32 %v6349_v52, %v4545_v51 }
  0x55   :  { %1828 = vmatpush.bf16.msrb.mxu3 %v4922_v41  ;;  %v4734_v15 = vor.u32 %v6388_v13, %v4731_v14  ;;  %v5121_v41 = vld [vmem:[#allocation8 + $0x710] sm:$0xf]  ;;  %v5059_v60 = vld [vmem:[#allocation8 + $0x6d0] sm:$0xf0] }
  0x56   :  { %v4481_v63 = vld [vmem:[#allocation8 + $0x210] sm:$0xf]  ;;  %v6325_v5 = vld [vmem:[#allocation8 + $0x214] sm:$0xf] }
  0x57   :  { %1841 = vmatpush.bf16.msra.mxu0 %v4414_v44  ;;  %1816 = vmatpush.bf16.msrb.mxu2 %v4346_v50  ;;  %v4611_v44 = vld [vmem:[#allocation8 + $0x350] sm:$0xf0]  ;;  %v5122_v50 = vor.u32 %v6493_v42, %v5121_v41  ;;  %v6333_v0 = vld [vmem:[#allocation8 + $0x24c] sm:$0xf0] }
  0x58   :  { %1854 = vmatpush.bf16.msra.mxu1 %v4926_v47  ;;  %v6461_v4 = vld [vmem:[#allocation8 + $0x64c] sm:$0xf0]  ;;  %v4483_v6 = vld [vmem:[#allocation8 + $0x250] sm:$0xf0]  ;;  %v4482_v9 = vor.u32 %v6333_v0, %v4481_v63  ;;  %v6374_v63 = vld [vmem:[#allocation8 + $0x39c] sm:$0xf] }
  0x59   :  { %1829 = vmatpush.bf16.msrb.mxu3 %v4858_v53  ;;  %v4614_v53 = vor.u32 %v6357_v43, %v4611_v44  ;;  %v4995_v8 = vld [vmem:[#allocation8 + $0x650] sm:$0xf0]  ;;  %v4486_v13 = vor.u32 %v6325_v5, %v4483_v6  ;;  %v6445_v16 = vld [vmem:[#allocation8 + $0x5cc] sm:$0xf0] }
  0x5a   :  { %v4353_v23 = vld [vmem:[#allocation8 + $0x110] sm:$0xf]  ;;  %v4355_v30 = vld [vmem:[#allocation8 + $0x150] sm:$0xf0] }
  0x5b   :  { %1842 = vmatpush.bf16.msra.mxu0 %v4350_v54  ;;  %1817 = vmatpush.bf16.msrb.mxu2 %v4282_v58  ;;  %v5126_v54 = vor.u32 %v6485_v45, %v5123_v46  ;;  %v4547_v58 = vld [vmem:[#allocation8 + $0x2d0] sm:$0xf0]  ;;  %v6301_v24 = vld [vmem:[#allocation8 + $0x14c] sm:$0xf0] }
  0x5c   :  { %1855 = vmatpush.bf16.msra.mxu1 %v4862_v55  ;;  %v5057_v55 = vld [vmem:[#allocation8 + $0x690] sm:$0xf]  ;;  %v4550_v1 = vor.u32 %v6341_v57, %v4547_v58  ;;  %v6421_v31 = vld [vmem:[#allocation8 + $0x514] sm:$0xf] }
  0x5d   :  { %1830 = vmatpush.bf16.msrb.mxu3 %v4794_v62  ;;  %v5058_v62 = vor.u32 %v6477_v56, %v5057_v55  ;;  %v4865_v27 = vld [vmem:[#allocation8 + $0x510] sm:$0xf]  ;;  %v6277_v43 = vld [vmem:[#allocation8 + $0x94] sm:$0xf] }
  0x5e   :  { %v6429_v28 = vld [vmem:[#allocation8 + $0x54c] sm:$0xf0]  ;;  %v4291_v44 = vld [vmem:[#allocation8 + $0xd0] sm:$0xf0] }
  0x5f   :  { %1843 = vmatpush.bf16.msra.mxu0 %v4286_v2  ;;  %1818 = vmatpush.bf16.msrb.mxu2 %v4218_v7  ;;  %v5062_v2 = vor.u32 %v6469_v59, %v5059_v60  ;;  %v6453_v7 = vld [vmem:[#allocation8 + $0x614] sm:$0xf]  ;;  %v4289_v36 = vld [vmem:[#allocation8 + $0x90] sm:$0xf]  ;;  %v4681_v59 = vld [vmem:[#allocation8 + $0x398] sm:$0xf] }
  0x60   :  { %1856 = vmatpush.bf16.msra.mxu1 %v4798_v3  ;;  %v4993_v3 = vld [vmem:[#allocation8 + $0x610] sm:$0xf]  ;;  %v4998_v14 = vor.u32 %v6453_v7, %v4995_v8  ;;  %v6405_v45 = vld [vmem:[#allocation8 + $0x494] sm:$0xf]  ;;  %v6382_v60 = vld [vmem:[#allocation8 + $0x3d4] sm:$0xf0] }
  0x61   :  { %1831 = vmatpush.bf16.msrb.mxu3 %v4730_v11  ;;  %v4994_v10 = vor.u32 %v6461_v4, %v4993_v3  ;;  %v4417_v11 = vld [vmem:[#allocation8 + $0x190] sm:$0xf]  ;;  %v4803_v46 = vld [vmem:[#allocation8 + $0x4d0] sm:$0xf0]  ;;  %v6502_v3 = vld [vmem:[#allocation8 + $0x79c] sm:$0xf]  ;;  %v4682_v7 = vor.u32 %v6382_v60, %v4681_v59 }
  0x62   :  { %v6285_v37 = vld [vmem:[#allocation8 + $0xcc] sm:$0xf0]  ;;  %v6261_v55 = vld [vmem:[#allocation8 + $0x14] sm:$0xf]  ;;  %v5195_v4 = vld [vmem:[#allocation8 + $0x7d8] sm:$0xf0] }
  0x63   :  { %1844 = vmatpush.bf16.msra.mxu0 %v4222_v12  ;;  %v6317_v12 = vld [vmem:[#allocation8 + $0x1cc] sm:$0xf0]  ;;  %v4227_v56 = vld [vmem:[#allocation8 + $0x50] sm:$0xf0]  ;;  %v4361_v59 = vld [vmem:[#allocation8 + $0x118] sm:$0xf] }
  0x64   :  { %1857 = vmatpush.bf16.msra.mxu1 %v4734_v15  ;;  %v4929_v15 = vld [vmem:[#allocation8 + $0x590] sm:$0xf]  ;;  %v6389_v57 = vld [vmem:[#allocation8 + $0x414] sm:$0xf]  ;;  %v4230_v5 = vor.u32 %v6261_v55, %v4227_v56  ;;  %v6438_v55 = vld [vmem:[#allocation8 + $0x59c] sm:$0xf] }
  0x65   :  { %v4930_v22 = vor.u32 %v6445_v16, %v4929_v15  ;;  %v4801_v41 = vld [vmem:[#allocation8 + $0x490] sm:$0xf]  ;;  %v4739_v58 = vld [vmem:[#allocation8 + $0x450] sm:$0xf0]  ;;  %v6358_v15 = vld [vmem:[#allocation8 + $0x31c] sm:$0xf] }
  0x66   :  { %v6413_v42 = vld [vmem:[#allocation8 + $0x4cc] sm:$0xf0]  ;;  %v4742_v6 = vor.u32 %v6389_v57, %v4739_v58  ;;  %v4619_v16 = vld [vmem:[#allocation8 + $0x358] sm:$0xf0]  ;;  %v6302_v60 = vld [vmem:[#allocation8 + $0x154] sm:$0xf0] }
  0x67   :  { %v4737_v51 = vld [vmem:[#allocation8 + $0x410] sm:$0xf]  ;;  %v4939_v56 = vld [vmem:[#allocation8 + $0x5d8] sm:$0xf0] }
  0x68   :  { %v6397_v52 = vld [vmem:[#allocation8 + $0x44c] sm:$0xf0] }
  0xa3   :  { %v166_v19 = vpop.f32.mrf.mxu0 }
  0xa4   :  { %v167_v20 = vadd.f32 %v166_v19, %v129_v17  ;;  %v6309_v17 = vld [vmem:[#allocation8 + $0x194] sm:$0xf] }
  0xa5   :  { %v6437_v19 = vld [vmem:[#allocation8 + $0x594] sm:$0xf] }
  0xa6   :  { %v179_v21 = vpop.f32.mrf.mxu1  ;;  %v183_v29 = vmax.f32 %v167_v20, 0.0  ;;  %v4931_v20 = vld [vmem:[#allocation8 + $0x5d0] sm:$0xf0] }
  0xa7   :  { %v180_v25 = vadd.f32 %v179_v21, %v130_v18  ;;  %v4419_v18 = vld [vmem:[#allocation8 + $0x1d0] sm:$0xf0]  ;;  %v4418_v21 = vor.u32 %v6317_v12, %v4417_v11  ;;  %v4934_v26 = vor.u32 %v6437_v19, %v4931_v20  ;;  %v5198_v12 = vor.u32 %v6502_v3, %v5195_v4  ;;  %v6422_v3 = vld [vmem:[#allocation8 + $0x51c] sm:$0xf] }
  0xa8   :  { %v7044_v33 = vpack.c.bf16 %v183_v29, %v183_v29  ;;  %v6293_v29 = vld [vmem:[#allocation8 + $0x114] sm:$0xf]  ;;  %v4875_v4 = vld [vmem:[#allocation8 + $0x558] sm:$0xf0] }
  0xa9   :  { %v184_v32 = vmax.f32 %v180_v25, 0.0  ;;  %v4422_v25 = vor.u32 %v6309_v17, %v4419_v18  ;;  %v6486_v17 = vld [vmem:[#allocation8 + $0x71c] sm:$0xf] }
  0xaa   :  { %1767 = vmatmul.bf16.vlgmr.msra.gmra.mxu2 %v7044_v33  ;;  %1793 = vmatmul.bf16.vlgmr.msrb.gmra.mxu0 %v7044_v33  ;;  %v5131_v18 = vld [vmem:[#allocation8 + $0x758] sm:$0xf0] }
  0xab   :  { %v7046_v38 = vpack.c.bf16 %v184_v32, %v184_v32  ;;  %v168_v47 = vpop.f32.mrf.mxu0  ;;  %1863 = vmatpush.bf16.msra.mxu2 %v4674_v34  ;;  %1889 = vmatpush.bf16.msrb.mxu0 %v4678_v39  ;;  %v4867_v32 = vld [vmem:[#allocation8 + $0x550] sm:$0xf0]  ;;  %v4354_v34 = vor.u32 %v6301_v24, %v4353_v23  ;;  %v4358_v39 = vor.u32 %v6293_v29, %v4355_v30  ;;  %v6470_v29 = vld [vmem:[#allocation8 + $0x69c] sm:$0xf] }
  0xac   :  { %v4225_v47 = vld [vmem:[#allocation8 + $0x10] sm:$0xf]  ;;  %v4622_v23 = vor.u32 %v6358_v15, %v4619_v16  ;;  %v5134_v24 = vor.u32 %v6486_v17, %v5131_v18  ;;  %v5067_v30 = vld [vmem:[#allocation8 + $0x6d8] sm:$0xf0]  ;;  %v4233_v17 = vld [vmem:[#allocation8 + $0x18] sm:$0xf] }
  0xad   :  { %1780 = vmatmul.bf16.vlgmr.msra.gmra.mxu3 %v7046_v38  ;;  %1806 = vmatmul.bf16.vlgmr.msrb.gmra.mxu1 %v7046_v38  ;;  %v6406_v15 = vld [vmem:[#allocation8 + $0x49c] sm:$0xf] }
  0xae   :  { %1876 = vmatpush.bf16.msra.mxu3 %v5186_v35  ;;  %v181_v48 = vpop.f32.mrf.mxu1  ;;  %1902 = vmatpush.bf16.msrb.mxu1 %v5190_v40  ;;  %v4866_v35 = vor.u32 %v6429_v28, %v4865_v27  ;;  %v4870_v40 = vor.u32 %v6421_v31, %v4867_v32  ;;  %v6342_v27 = vld [vmem:[#allocation8 + $0x29c] sm:$0xf] }
  0xaf   :  { %1864 = vmatpush.bf16.msra.mxu2 %v4610_v49  ;;  %1890 = vmatpush.bf16.msrb.mxu0 %v4614_v53  ;;  %v4290_v48 = vor.u32 %v6285_v37, %v4289_v36  ;;  %v4802_v49 = vor.u32 %v6413_v42, %v4801_v41  ;;  %v4294_v53 = vor.u32 %v6277_v43, %v4291_v44  ;;  %v4555_v28 = vld [vmem:[#allocation8 + $0x2d8] sm:$0xf0] }
  0xb0   :  { %v4558_v36 = vor.u32 %v6342_v27, %v4555_v28  ;;  %v5070_v37 = vor.u32 %v6470_v29, %v5067_v30  ;;  %v6326_v41 = vld [vmem:[#allocation8 + $0x21c] sm:$0xf]  ;;  %v4689_v29 = vld [vmem:[#allocation8 + $0x3a0] sm:$0xf] }
  0xb1   :  { %v4491_v42 = vld [vmem:[#allocation8 + $0x258] sm:$0xf0]  ;;  %v6383_v30 = vld [vmem:[#allocation8 + $0x3dc] sm:$0xf0] }
  0xb2   :  { %1877 = vmatpush.bf16.msra.mxu3 %v5122_v50  ;;  %1903 = vmatpush.bf16.msrb.mxu1 %v5126_v54  ;;  %v6269_v50 = vld [vmem:[#allocation8 + $0x4c] sm:$0xf0]  ;;  %v4806_v54 = vor.u32 %v6405_v45, %v4803_v46  ;;  %v6454_v43 = vld [vmem:[#allocation8 + $0x61c] sm:$0xf] }
  0xb3   :  { %1865 = vmatpush.bf16.msra.mxu2 %v4546_v61  ;;  %1891 = vmatpush.bf16.msrb.mxu0 %v4550_v1  ;;  %v5193_v61 = vld [vmem:[#allocation8 + $0x798] sm:$0xf]  ;;  %v4226_v0 = vor.u32 %v6269_v50, %v4225_v47  ;;  %v4738_v1 = vor.u32 %v6397_v52, %v4737_v51  ;;  %v5003_v44 = vld [vmem:[#allocation8 + $0x658] sm:$0xf0] }
  0xb4   :  { %v4425_v47 = vld [vmem:[#allocation8 + $0x198] sm:$0xf]  ;;  %v5006_v50 = vor.u32 %v6454_v43, %v5003_v44  ;;  %v4811_v16 = vld [vmem:[#allocation8 + $0x4d8] sm:$0xf0]  ;;  %v4690_v43 = vor.u32 %v6383_v30, %v4689_v29  ;;  %v4369_v29 = vld [vmem:[#allocation8 + $0x120] sm:$0xf] }
  0xb5   :  { %v4937_v51 = vld [vmem:[#allocation8 + $0x598] sm:$0xf]  ;;  %v6390_v27 = vld [vmem:[#allocation8 + $0x41c] sm:$0xf]  ;;  %v6303_v30 = vld [vmem:[#allocation8 + $0x15c] sm:$0xf0] }
  0xb6   :  { %1878 = vmatpush.bf16.msra.mxu3 %v5058_v62  ;;  %1904 = vmatpush.bf16.msrb.mxu1 %v5062_v2  ;;  %v6510_v62 = vld [vmem:[#allocation8 + $0x7d4] sm:$0xf0]  ;;  %v4683_v2 = vld [vmem:[#allocation8 + $0x3d8] sm:$0xf0] }
  0xb7   :  { %1866 = vmatpush.bf16.msra.mxu2 %v4482_v9  ;;  %1892 = vmatpush.bf16.msrb.mxu0 %v4486_v13  ;;  %v5194_v8 = vor.u32 %v6510_v62, %v5193_v61  ;;  %v4617_v9 = vld [vmem:[#allocation8 + $0x318] sm:$0xf]  ;;  %v4686_v11 = vor.u32 %v6374_v63, %v4683_v2  ;;  %v4942_v62 = vor.u32 %v6438_v55, %v4939_v56  ;;  %v4363_v2 = vld [vmem:[#allocation8 + $0x158] sm:$0xf0] }
  0xb8   :  { %v5129_v13 = vld [vmem:[#allocation8 + $0x718] sm:$0xf]  ;;  %v4747_v28 = vld [vmem:[#allocation8 + $0x458] sm:$0xf0] }
  0xb9   :  { %v6446_v52 = vld [vmem:[#allocation8 + $0x5d4] sm:$0xf0] }
  0xba   :  { %1879 = vmatpush.bf16.msra.mxu3 %v4994_v10  ;;  %1905 = vmatpush.bf16.msrb.mxu1 %v4998_v14  ;;  %v6366_v10 = vld [vmem:[#allocation8 + $0x354] sm:$0xf0]  ;;  %v4938_v58 = vor.u32 %v6446_v52, %v4937_v51  ;;  %v6359_v51 = vld [vmem:[#allocation8 + $0x324] sm:$0xf] }
  0xbb   :  { %1819 = vmatmul.bf16.vlgmr.msrb.gmra.mxu2 %v7044_v33  ;;  %1845 = vmatmul.bf16.vlgmr.msra.gmra.mxu0 %v7044_v33  ;;  %v6494_v14 = vld [vmem:[#allocation8 + $0x754] sm:$0xf0]  ;;  %v4618_v19 = vor.u32 %v6366_v10, %v4617_v9  ;;  %v4878_v10 = vor.u32 %v6422_v3, %v4875_v4  ;;  %v4627_v52 = vld [vmem:[#allocation8 + $0x360] sm:$0xf0] }
  0xbc   :  { %1867 = vmatpush.bf16.msra.mxu2 %v4418_v21  ;;  %1893 = vmatpush.bf16.msrb.mxu0 %v4422_v25  ;;  %v5130_v20 = vor.u32 %v6494_v14, %v5129_v13  ;;  %v4553_v21 = vld [vmem:[#allocation8 + $0x298] sm:$0xf]  ;;  %v6278_v13 = vld [vmem:[#allocation8 + $0x9c] sm:$0xf] }
  0xbd   :  { %1832 = vmatmul.bf16.vlgmr.msrb.gmra.mxu3 %v7046_v38  ;;  %1858 = vmatmul.bf16.vlgmr.msra.gmra.mxu1 %v7046_v38  ;;  %v5065_v25 = vld [vmem:[#allocation8 + $0x698] sm:$0xf]  ;;  %v4299_v14 = vld [vmem:[#allocation8 + $0xd8] sm:$0xf0] }
  0xbe   :  { %1880 = vmatpush.bf16.msra.mxu3 %v4930_v22  ;;  %1906 = vmatpush.bf16.msrb.mxu1 %v4934_v26  ;;  %v6350_v22 = vld [vmem:[#allocation8 + $0x2d4] sm:$0xf0] }
  0xbf   :  { %v6478_v26 = vld [vmem:[#allocation8 + $0x6d4] sm:$0xf0]  ;;  %v4554_v31 = vor.u32 %v6350_v22, %v4553_v21 }
  0xc0   :  { %1868 = vmatpush.bf16.msra.mxu2 %v4354_v34  ;;  %1894 = vmatpush.bf16.msrb.mxu0 %v4358_v39  ;;  %v5066_v32 = vor.u32 %v6478_v26, %v5065_v25  ;;  %v4489_v34 = vld [vmem:[#allocation8 + $0x218] sm:$0xf]  ;;  %v6262_v25 = vld [vmem:[#allocation8 + $0x1c] sm:$0xf] }
  0xc1   :  { %v5001_v39 = vld [vmem:[#allocation8 + $0x618] sm:$0xf]  ;;  %v4235_v26 = vld [vmem:[#allocation8 + $0x58] sm:$0xf0] }
  0xc2   :  { %1881 = vmatpush.bf16.msra.mxu3 %v4866_v35  ;;  %1907 = vmatpush.bf16.msrb.mxu1 %v4870_v40  ;;  %v6334_v35 = vld [vmem:[#allocation8 + $0x254] sm:$0xf0] }
  0xc3   :  { %v6462_v40 = vld [vmem:[#allocation8 + $0x654] sm:$0xf0]  ;;  %v4490_v45 = vor.u32 %v6334_v35, %v4489_v34  ;;  %v6375_v34 = vld [vmem:[#allocation8 + $0x3a4] sm:$0xf] }
  0xc4   :  { %1869 = vmatpush.bf16.msra.mxu2 %v4290_v48  ;;  %1895 = vmatpush.bf16.msrb.mxu0 %v4294_v53  ;;  %v5002_v46 = vor.u32 %v6462_v40, %v5001_v39  ;;  %v6318_v48 = vld [vmem:[#allocation8 + $0x1d4] sm:$0xf0]  ;;  %v6310_v53 = vld [vmem:[#allocation8 + $0x19c] sm:$0xf]  ;;  %v6503_v39 = vld [vmem:[#allocation8 + $0x7a4] sm:$0xf] }
  0xc5   :  { %v4426_v57 = vor.u32 %v6318_v48, %v4425_v47  ;;  %v4873_v63 = vld [vmem:[#allocation8 + $0x518] sm:$0xf]  ;;  %v5203_v40 = vld [vmem:[#allocation8 + $0x7e0] sm:$0xf0] }
  0xc6   :  { %1882 = vmatpush.bf16.msra.mxu3 %v4802_v49  ;;  %1908 = vmatpush.bf16.msrb.mxu1 %v4806_v54  ;;  %v4494_v49 = vor.u32 %v6326_v41, %v4491_v42  ;;  %v4427_v54 = vld [vmem:[#allocation8 + $0x1d8] sm:$0xf0]  ;;  %v4745_v21 = vld [vmem:[#allocation8 + $0x418] sm:$0xf]  ;;  %v4238_v41 = vor.u32 %v6262_v25, %v4235_v26  ;;  %v4750_v42 = vor.u32 %v6390_v27, %v4747_v28  ;;  %v6439_v25 = vld [vmem:[#allocation8 + $0x5a4] sm:$0xf] }
  0xc7   :  { %v4430_v61 = vor.u32 %v6310_v53, %v4427_v54  ;;  %v6398_v22 = vld [vmem:[#allocation8 + $0x454] sm:$0xf0]  ;;  %v5206_v48 = vor.u32 %v6503_v39, %v5203_v40  ;;  %v6487_v53 = vld [vmem:[#allocation8 + $0x724] sm:$0xf] }
  0xc8   :  { %1870 = vmatpush.bf16.msra.mxu2 %v4226_v0  ;;  %1896 = vmatpush.bf16.msrb.mxu0 %v4230_v5  ;;  %v6430_v0 = vld [vmem:[#allocation8 + $0x554] sm:$0xf0]  ;;  %v4362_v5 = vor.u32 %v6302_v60, %v4361_v59  ;;  %v5139_v54 = vld [vmem:[#allocation8 + $0x760] sm:$0xf0]  ;;  %v4630_v59 = vor.u32 %v6359_v51, %v4627_v52 }
  0xc9   :  { %v5142_v60 = vor.u32 %v6487_v53, %v5139_v54  ;;  %v4947_v26 = vld [vmem:[#allocation8 + $0x5e0] sm:$0xf0]  ;;  %v4241_v53 = vld [vmem:[#allocation8 + $0x20] sm:$0xf] }
  0xca   :  { %1883 = vmatpush.bf16.msra.mxu3 %v4738_v1  ;;  %1909 = vmatpush.bf16.msrb.mxu1 %v4742_v6  ;;  %v6294_v1 = vld [vmem:[#allocation8 + $0x11c] sm:$0xf]  ;;  %v4874_v6 = vor.u32 %v6430_v0, %v4873_v63  ;;  %v6343_v63 = vld [vmem:[#allocation8 + $0x2a4] sm:$0xf] }
  0xcb   :  { %1871 = vmatmul.bf16.vlgmr.msra.gmra.mxu2 %v7044_v33  ;;  %1897 = vmatmul.bf16.vlgmr.msrb.gmra.mxu0 %v7044_v33  ;;  %v4366_v9 = vor.u32 %v6294_v1, %v4363_v2  ;;  %v4563_v0 = vld [vmem:[#allocation8 + $0x2e0] sm:$0xf0] }
  0xcc   :  { %1915 = vmatpush.bf16.msrb.mxu2 %v4682_v7  ;;  %1941 = vmatpush.bf16.msra.mxu0 %v4686_v11  ;;  %v4297_v7 = vld [vmem:[#allocation8 + $0x98] sm:$0xf]  ;;  %v6471_v1 = vld [vmem:[#allocation8 + $0x6a4] sm:$0xf] }
  0xcd   :  { %1884 = vmatmul.bf16.vlgmr.msra.gmra.mxu3 %v7046_v38  ;;  %1910 = vmatmul.bf16.vlgmr.msrb.gmra.mxu1 %v7046_v38  ;;  %v4809_v11 = vld [vmem:[#allocation8 + $0x498] sm:$0xf]  ;;  %v5075_v2 = vld [vmem:[#allocation8 + $0x6e0] sm:$0xf0] }
  0xce   :  { %1928 = vmatpush.bf16.msrb.mxu3 %v5194_v8  ;;  %1954 = vmatpush.bf16.msra.mxu1 %v5198_v12  ;;  %v6286_v8 = vld [vmem:[#allocation8 + $0xd4] sm:$0xf0]  ;;  %v6423_v39 = vld [vmem:[#allocation8 + $0x524] sm:$0xf] }
  0xcf   :  { %v6414_v12 = vld [vmem:[#allocation8 + $0x4d4] sm:$0xf0]  ;;  %v4298_v18 = vor.u32 %v6286_v8, %v4297_v7  ;;  %v4566_v7 = vor.u32 %v6343_v63, %v4563_v0  ;;  %v5078_v8 = vor.u32 %v6471_v1, %v5075_v2  ;;  %v4883_v40 = vld [vmem:[#allocation8 + $0x560] sm:$0xf0]  ;;  %v4697_v1 = vld [vmem:[#allocation8 + $0x3a8] sm:$0xf] }
  0xd0   :  { %1916 = vmatpush.bf16.msrb.mxu2 %v4618_v19  ;;  %1942 = vmatpush.bf16.msra.mxu0 %v4622_v23  ;;  %v4810_v19 = vor.u32 %v6414_v12, %v4809_v11  ;;  %v4302_v23 = vor.u32 %v6278_v13, %v4299_v14  ;;  %v6327_v11 = vld [vmem:[#allocation8 + $0x224] sm:$0xf]  ;;  %v6384_v2 = vld [vmem:[#allocation8 + $0x3e4] sm:$0xf0] }
  0xd1   :  { %v4499_v12 = vld [vmem:[#allocation8 + $0x260] sm:$0xf0] }
  0xd2   :  { %1929 = vmatpush.bf16.msrb.mxu3 %v5130_v20  ;;  %1955 = vmatpush.bf16.msra.mxu1 %v5134_v24  ;;  %v6270_v20 = vld [vmem:[#allocation8 + $0x54] sm:$0xf0]  ;;  %v4814_v24 = vor.u32 %v6406_v15, %v4811_v16  ;;  %v6455_v13 = vld [vmem:[#allocation8 + $0x624] sm:$0xf] }
  0xd3   :  { %v4234_v35 = vor.u32 %v6270_v20, %v4233_v17  ;;  %v5011_v14 = vld [vmem:[#allocation8 + $0x660] sm:$0xf0]  ;;  %v4433_v17 = vld [vmem:[#allocation8 + $0x1a0] sm:$0xf] }
  0xd4   :  { %1917 = vmatpush.bf16.msrb.mxu2 %v4554_v31  ;;  %1943 = vmatpush.bf16.msra.mxu0 %v4558_v36  ;;  %v5201_v31 = vld [vmem:[#allocation8 + $0x7a0] sm:$0xf]  ;;  %v4746_v36 = vor.u32 %v6398_v22, %v4745_v21  ;;  %v5014_v20 = vor.u32 %v6455_v13, %v5011_v14  ;;  %v6407_v51 = vld [vmem:[#allocation8 + $0x4a4] sm:$0xf]  ;;  %v4698_v13 = vor.u32 %v6384_v2, %v4697_v1  ;;  %v4377_v1 = vld [vmem:[#allocation8 + $0x128] sm:$0xf] }
  0xd5   :  { %v4945_v21 = vld [vmem:[#allocation8 + $0x5a0] sm:$0xf]  ;;  %v4819_v52 = vld [vmem:[#allocation8 + $0x4e0] sm:$0xf0]  ;;  %v6304_v2 = vld [vmem:[#allocation8 + $0x164] sm:$0xf0] }
  0xd6   :  { %1930 = vmatpush.bf16.msrb.mxu3 %v5066_v32  ;;  %1956 = vmatpush.bf16.msra.mxu1 %v5070_v37  ;;  %v6511_v32 = vld [vmem:[#allocation8 + $0x7dc] sm:$0xf0]  ;;  %v4691_v37 = vld [vmem:[#allocation8 + $0x3e0] sm:$0xf0] }
  0xd7   :  { %v5202_v44 = vor.u32 %v6511_v32, %v5201_v31  ;;  %v4694_v47 = vor.u32 %v6375_v34, %v4691_v37  ;;  %v6447_v22 = vld [vmem:[#allocation8 + $0x5dc] sm:$0xf0]  ;;  %v4950_v32 = vor.u32 %v6439_v25, %v4947_v26  ;;  %v4371_v37 = vld [vmem:[#allocation8 + $0x160] sm:$0xf0] }
  0xd8   :  { %1918 = vmatpush.bf16.msrb.mxu2 %v4490_v45  ;;  %1944 = vmatpush.bf16.msra.mxu0 %v4494_v49  ;;  %v4625_v45 = vld [vmem:[#allocation8 + $0x320] sm:$0xf]  ;;  %v4946_v28 = vor.u32 %v6447_v22, %v4945_v21  ;;  %v6391_v63 = vld [vmem:[#allocation8 + $0x424] sm:$0xf]  ;;  %v6360_v21 = vld [vmem:[#allocation8 + $0x32c] sm:$0xf] }
  0xd9   :  { %v5137_v49 = vld [vmem:[#allocation8 + $0x720] sm:$0xf]  ;;  %v4755_v0 = vld [vmem:[#allocation8 + $0x460] sm:$0xf0]  ;;  %v4635_v22 = vld [vmem:[#allocation8 + $0x368] sm:$0xf0] }
  0xda   :  { %1931 = vmatpush.bf16.msrb.mxu3 %v5002_v46  ;;  %1957 = vmatpush.bf16.msra.mxu1 %v5006_v50  ;;  %v6367_v46 = vld [vmem:[#allocation8 + $0x35c] sm:$0xf0] }
  0xdb   :  { %v6495_v50 = vld [vmem:[#allocation8 + $0x75c] sm:$0xf0]  ;;  %v4626_v55 = vor.u32 %v6367_v46, %v4625_v45  ;;  %v4886_v46 = vor.u32 %v6423_v39, %v4883_v40 }
  0xdc   :  { %1919 = vmatpush.bf16.msrb.mxu2 %v4426_v57  ;;  %1945 = vmatpush.bf16.msra.mxu0 %v4430_v61  ;;  %v5138_v56 = vor.u32 %v6495_v50, %v5137_v49  ;;  %v4561_v57 = vld [vmem:[#allocation8 + $0x2a0] sm:$0xf]  ;;  %v6279_v49 = vld [vmem:[#allocation8 + $0xa4] sm:$0xf] }
  0xdd   :  { %v5073_v61 = vld [vmem:[#allocation8 + $0x6a0] sm:$0xf]  ;;  %v4307_v50 = vld [vmem:[#allocation8 + $0xe0] sm:$0xf0] }
  0xde   :  { %1932 = vmatpush.bf16.msrb.mxu3 %v4938_v58  ;;  %1958 = vmatpush.bf16.msra.mxu1 %v4942_v62  ;;  %v6351_v58 = vld [vmem:[#allocation8 + $0x2dc] sm:$0xf0] }
  0xdf   :  { %v6479_v62 = vld [vmem:[#allocation8 + $0x6dc] sm:$0xf0]  ;;  %v4562_v3 = vor.u32 %v6351_v58, %v4561_v57 }
  0xe0   :  { %1920 = vmatpush.bf16.msrb.mxu2 %v4362_v5  ;;  %1946 = vmatpush.bf16.msra.mxu0 %v4366_v9  ;;  %v5074_v4 = vor.u32 %v6479_v62, %v5073_v61  ;;  %v4497_v5 = vld [vmem:[#allocation8 + $0x220] sm:$0xf]  ;;  %v6263_v61 = vld [vmem:[#allocation8 + $0x24] sm:$0xf] }
  0xe1   :  { %v5009_v9 = vld [vmem:[#allocation8 + $0x620] sm:$0xf]  ;;  %v4243_v62 = vld [vmem:[#allocation8 + $0x60] sm:$0xf0] }
  0xe2   :  { %1933 = vmatpush.bf16.msrb.mxu3 %v4874_v6  ;;  %1959 = vmatpush.bf16.msra.mxu1 %v4878_v10  ;;  %v6335_v6 = vld [vmem:[#allocation8 + $0x25c] sm:$0xf0] }
  0xe3   :  { %v6463_v10 = vld [vmem:[#allocation8 + $0x65c] sm:$0xf0]  ;;  %v4498_v15 = vor.u32 %v6335_v6, %v4497_v5  ;;  %v6376_v5 = vld [vmem:[#allocation8 + $0x3ac] sm:$0xf] }
  0xe4   :  { %1921 = vmatpush.bf16.msrb.mxu2 %v4298_v18  ;;  %1947 = vmatpush.bf16.msra.mxu0 %v4302_v23  ;;  %v5010_v16 = vor.u32 %v6463_v10, %v5009_v9  ;;  %v6319_v18 = vld [vmem:[#allocation8 + $0x1dc] sm:$0xf0]  ;;  %v6311_v23 = vld [vmem:[#allocation8 + $0x1a4] sm:$0xf]  ;;  %v6504_v9 = vld [vmem:[#allocation8 + $0x7ac] sm:$0xf] }
  0xe5   :  { %v4434_v27 = vor.u32 %v6319_v18, %v4433_v17  ;;  %v4881_v34 = vld [vmem:[#allocation8 + $0x520] sm:$0xf]  ;;  %v5211_v10 = vld [vmem:[#allocation8 + $0x7e8] sm:$0xf0] }
  0xe6   :  { %1934 = vmatpush.bf16.msrb.mxu3 %v4810_v19  ;;  %1960 = vmatpush.bf16.msra.mxu1 %v4814_v24  ;;  %v4502_v19 = vor.u32 %v6327_v11, %v4499_v12  ;;  %v4435_v24 = vld [vmem:[#allocation8 + $0x1e0] sm:$0xf0]  ;;  %v4753_v57 = vld [vmem:[#allocation8 + $0x420] sm:$0xf]  ;;  %v4246_v11 = vor.u32 %v6263_v61, %v4243_v62  ;;  %v4758_v12 = vor.u32 %v6391_v63, %v4755_v0  ;;  %v6440_v61 = vld [vmem:[#allocation8 + $0x5ac] sm:$0xf] }
  0xe7   :  { %v4438_v31 = vor.u32 %v6311_v23, %v4435_v24  ;;  %v6399_v58 = vld [vmem:[#allocation8 + $0x45c] sm:$0xf0]  ;;  %v5214_v18 = vor.u32 %v6504_v9, %v5211_v10  ;;  %v6488_v23 = vld [vmem:[#allocation8 + $0x72c] sm:$0xf] }
  0xe8   :  { %1922 = vmatpush.bf16.msrb.mxu2 %v4234_v35  ;;  %1948 = vmatpush.bf16.msra.mxu0 %v4238_v41  ;;  %v6431_v35 = vld [vmem:[#allocation8 + $0x55c] sm:$0xf0]  ;;  %v4370_v41 = vor.u32 %v6303_v30, %v4369_v29  ;;  %v5147_v24 = vld [vmem:[#allocation8 + $0x768] sm:$0xf0]  ;;  %v4638_v29 = vor.u32 %v6360_v21, %v4635_v22 }
  0xe9   :  { %v5150_v30 = vor.u32 %v6488_v23, %v5147_v24  ;;  %v4955_v62 = vld [vmem:[#allocation8 + $0x5e8] sm:$0xf0]  ;;  %v4249_v23 = vld [vmem:[#allocation8 + $0x28] sm:$0xf] }
  0xea   :  { %1935 = vmatpush.bf16.msrb.mxu3 %v4746_v36  ;;  %1961 = vmatpush.bf16.msra.mxu1 %v4750_v42  ;;  %v6295_v36 = vld [vmem:[#allocation8 + $0x124] sm:$0xf]  ;;  %v4882_v42 = vor.u32 %v6431_v35, %v4881_v34  ;;  %v6344_v34 = vld [vmem:[#allocation8 + $0x2ac] sm:$0xf] }
  0xeb   :  { %1923 = vmatmul.bf16.vlgmr.msrb.gmra.mxu2 %v7044_v33  ;;  %1949 = vmatmul.bf16.vlgmr.msra.gmra.mxu0 %v7044_v33  ;;  %v4374_v45 = vor.u32 %v6295_v36, %v4371_v37  ;;  %v4571_v35 = vld [vmem:[#allocation8 + $0x2e8] sm:$0xf0] }
  0xec   :  { %1967 = vmatpush.bf16.msra.mxu2 %v4690_v43  ;;  %1993 = vmatpush.bf16.msrb.mxu0 %v4694_v47  ;;  %v4305_v43 = vld [vmem:[#allocation8 + $0xa0] sm:$0xf]  ;;  %v6472_v36 = vld [vmem:[#allocation8 + $0x6ac] sm:$0xf] }
  0xed   :  { %1936 = vmatmul.bf16.vlgmr.msrb.gmra.mxu3 %v7046_v38  ;;  %1962 = vmatmul.bf16.vlgmr.msra.gmra.mxu1 %v7046_v38  ;;  %v4817_v47 = vld [vmem:[#allocation8 + $0x4a0] sm:$0xf]  ;;  %v5083_v37 = vld [vmem:[#allocation8 + $0x6e8] sm:$0xf0] }
  0xee   :  { %1980 = vmatpush.bf16.msra.mxu3 %v5202_v44  ;;  %2006 = vmatpush.bf16.msrb.mxu1 %v5206_v48  ;;  %v6287_v44 = vld [vmem:[#allocation8 + $0xdc] sm:$0xf0]  ;;  %v6424_v9 = vld [vmem:[#allocation8 + $0x52c] sm:$0xf] }
  0xef   :  { %v6415_v48 = vld [vmem:[#allocation8 + $0x4dc] sm:$0xf0]  ;;  %v4306_v54 = vor.u32 %v6287_v44, %v4305_v43  ;;  %v4574_v43 = vor.u32 %v6344_v34, %v4571_v35  ;;  %v5086_v44 = vor.u32 %v6472_v36, %v5083_v37  ;;  %v4891_v10 = vld [vmem:[#allocation8 + $0x568] sm:$0xf0]  ;;  %v4705_v36 = vld [vmem:[#allocation8 + $0x3b0] sm:$0xf] }
  0xf0   :  { %1968 = vmatpush.bf16.msra.mxu2 %v4626_v55  ;;  %1994 = vmatpush.bf16.msrb.mxu0 %v4630_v59  ;;  %v4818_v55 = vor.u32 %v6415_v48, %v4817_v47  ;;  %v4310_v59 = vor.u32 %v6279_v49, %v4307_v50  ;;  %v6328_v47 = vld [vmem:[#allocation8 + $0x22c] sm:$0xf]  ;;  %v6385_v37 = vld [vmem:[#allocation8 + $0x3ec] sm:$0xf0] }
  0xf1   :  { %v4507_v48 = vld [vmem:[#allocation8 + $0x268] sm:$0xf0] }
  0xf2   :  { %1981 = vmatpush.bf16.msra.mxu3 %v5138_v56  ;;  %2007 = vmatpush.bf16.msrb.mxu1 %v5142_v60  ;;  %v6271_v56 = vld [vmem:[#allocation8 + $0x5c] sm:$0xf0]  ;;  %v4822_v60 = vor.u32 %v6407_v51, %v4819_v52  ;;  %v6456_v49 = vld [vmem:[#allocation8 + $0x62c] sm:$0xf] }
  0xf3   :  { %v4242_v6 = vor.u32 %v6271_v56, %v4241_v53  ;;  %v5019_v50 = vld [vmem:[#allocation8 + $0x668] sm:$0xf0]  ;;  %v4441_v53 = vld [vmem:[#allocation8 + $0x1a8] sm:$0xf] }
  0xf4   :  { %1969 = vmatpush.bf16.msra.mxu2 %v4562_v3  ;;  %1995 = vmatpush.bf16.msrb.mxu0 %v4566_v7  ;;  %v5209_v3 = vld [vmem:[#allocation8 + $0x7a8] sm:$0xf]  ;;  %v4754_v7 = vor.u32 %v6399_v58, %v4753_v57  ;;  %v5022_v56 = vor.u32 %v6456_v49, %v5019_v50  ;;  %v6408_v21 = vld [vmem:[#allocation8 + $0x4ac] sm:$0xf]  ;;  %v4706_v49 = vor.u32 %v6385_v37, %v4705_v36  ;;  %v4961_v36 = vld [vmem:[#allocation8 + $0x5b0] sm:$0xf] }
  0xf5   :  { %v4953_v57 = vld [vmem:[#allocation8 + $0x5a8] sm:$0xf]  ;;  %v4827_v22 = vld [vmem:[#allocation8 + $0x4e8] sm:$0xf0]  ;;  %v6449_v37 = vld [vmem:[#allocation8 + $0x5ec] sm:$0xf0] }
  0xf6   :  { %1982 = vmatpush.bf16.msra.mxu3 %v5074_v4  ;;  %2008 = vmatpush.bf16.msrb.mxu1 %v5078_v8  ;;  %v6512_v4 = vld [vmem:[#allocation8 + $0x7e4] sm:$0xf0]  ;;  %v4699_v8 = vld [vmem:[#allocation8 + $0x3e8] sm:$0xf0] }
  0xf7   :  { %v5210_v14 = vor.u32 %v6512_v4, %v5209_v3  ;;  %v4702_v17 = vor.u32 %v6376_v5, %v4699_v8  ;;  %v6448_v58 = vld [vmem:[#allocation8 + $0x5e4] sm:$0xf0]  ;;  %v4958_v4 = vor.u32 %v6440_v61, %v4955_v62  ;;  %v4379_v8 = vld [vmem:[#allocation8 + $0x168] sm:$0xf0]  ;;  %v5155_v61 = vld [vmem:[#allocation8 + $0x770] sm:$0xf0] }
  0xf8   :  { %1970 = vmatpush.bf16.msra.mxu2 %v4498_v15  ;;  %1996 = vmatpush.bf16.msrb.mxu0 %v4502_v19  ;;  %v4633_v15 = vld [vmem:[#allocation8 + $0x328] sm:$0xf]  ;;  %v4954_v0 = vor.u32 %v6448_v58, %v4953_v57  ;;  %v6392_v34 = vld [vmem:[#allocation8 + $0x42c] sm:$0xf]  ;;  %v6361_v57 = vld [vmem:[#allocation8 + $0x334] sm:$0xf] }
  0xf9   :  { %v5145_v19 = vld [vmem:[#allocation8 + $0x728] sm:$0xf]  ;;  %v4763_v35 = vld [vmem:[#allocation8 + $0x468] sm:$0xf0]  ;;  %v7068_v58 = vld [vmem:[#allocation10] sm:$0xff] }
  0xfa   :  { %1983 = vmatpush.bf16.msra.mxu3 %v5010_v16  ;;  %2009 = vmatpush.bf16.msrb.mxu1 %v5014_v20  ;;  %v6368_v16 = vld [vmem:[#allocation8 + $0x364] sm:$0xf0] }
  0xfb   :  { %v6496_v20 = vld [vmem:[#allocation8 + $0x764] sm:$0xf0]  ;;  %v4634_v25 = vor.u32 %v6368_v16, %v4633_v15  ;;  %v4894_v16 = vor.u32 %v6424_v9, %v4891_v10  ;;  %v6473_v9 = vld [vmem:[#allocation8 + $0x6b4] sm:$0xf] }
  0xfc   :  { %1971 = vmatpush.bf16.msra.mxu2 %v4434_v27  ;;  %1997 = vmatpush.bf16.msrb.mxu0 %v4438_v31  ;;  %v5146_v26 = vor.u32 %v6496_v20, %v5145_v19  ;;  %v4569_v27 = vld [vmem:[#allocation8 + $0x2a8] sm:$0xf]  ;;  %v6280_v19 = vld [vmem:[#allocation8 + $0xac] sm:$0xf]  ;;  %v5091_v10 = vld [vmem:[#allocation8 + $0x6f0] sm:$0xf0] }
  0xfd   :  { %v5081_v31 = vld [vmem:[#allocation8 + $0x6a8] sm:$0xf]  ;;  %v4315_v20 = vld [vmem:[#allocation8 + $0xe8] sm:$0xf0] }
  0xfe   :  { %1984 = vmatpush.bf16.msra.mxu3 %v4946_v28  ;;  %2010 = vmatpush.bf16.msrb.mxu1 %v4950_v32  ;;  %v6352_v28 = vld [vmem:[#allocation8 + $0x2e4] sm:$0xf0] }
  0xff   :  { %v6480_v32 = vld [vmem:[#allocation8 + $0x6e4] sm:$0xf0]  ;;  %v4570_v39 = vor.u32 %v6352_v28, %v4569_v27 }
 0x100   :  { %1972 = vmatpush.bf16.msra.mxu2 %v4370_v41  ;;  %1998 = vmatpush.bf16.msrb.mxu0 %v4374_v45  ;;  %v5082_v40 = vor.u32 %v6480_v32, %v5081_v31  ;;  %v4505_v41 = vld [vmem:[#allocation8 + $0x228] sm:$0xf]  ;;  %v6264_v31 = vld [vmem:[#allocation8 + $0x2c] sm:$0xf] }
 0x101   :  { %v5017_v45 = vld [vmem:[#allocation8 + $0x628] sm:$0xf]  ;;  %v4251_v32 = vld [vmem:[#allocation8 + $0x68] sm:$0xf0] }
 0x102   :  { %1985 = vmatpush.bf16.msra.mxu3 %v4882_v42  ;;  %2011 = vmatpush.bf16.msrb.mxu1 %v4886_v46  ;;  %v6336_v42 = vld [vmem:[#allocation8 + $0x264] sm:$0xf0] }
 0x103   :  { %v6464_v46 = vld [vmem:[#allocation8 + $0x664] sm:$0xf0]  ;;  %v4506_v51 = vor.u32 %v6336_v42, %v4505_v41  ;;  %v6377_v41 = vld [vmem:[#allocation8 + $0x3b4] sm:$0xf] }
 0x104   :  { %1973 = vmatpush.bf16.msra.mxu2 %v4306_v54  ;;  %1999 = vmatpush.bf16.msrb.mxu0 %v4310_v59  ;;  %v5018_v52 = vor.u32 %v6464_v46, %v5017_v45  ;;  %v6320_v54 = vld [vmem:[#allocation8 + $0x1e4] sm:$0xf0]  ;;  %v6312_v59 = vld [vmem:[#allocation8 + $0x1ac] sm:$0xf]  ;;  %v6505_v45 = vld [vmem:[#allocation8 + $0x7b4] sm:$0xf] }
 0x105   :  { %v4442_v63 = vor.u32 %v6320_v54, %v4441_v53  ;;  %v4889_v5 = vld [vmem:[#allocation8 + $0x528] sm:$0xf]  ;;  %v5219_v46 = vld [vmem:[#allocation8 + $0x7f0] sm:$0xf0]  ;;  %v5153_v53 = vld [vmem:[#allocation8 + $0x730] sm:$0xf] }
 0x106   :  { %1986 = vmatpush.bf16.msra.mxu3 %v4818_v55  ;;  %2012 = vmatpush.bf16.msrb.mxu1 %v4822_v60  ;;  %v4510_v55 = vor.u32 %v6328_v47, %v4507_v48  ;;  %v4443_v60 = vld [vmem:[#allocation8 + $0x1e8] sm:$0xf0]  ;;  %v4761_v27 = vld [vmem:[#allocation8 + $0x428] sm:$0xf]  ;;  %v4254_v47 = vor.u32 %v6264_v31, %v4251_v32  ;;  %v4766_v48 = vor.u32 %v6392_v34, %v4763_v35  ;;  %v6321_v31 = vld [vmem:[#allocation8 + $0x1ec] sm:$0xf0] }
 0x107   :  { %v4446_v3 = vor.u32 %v6312_v59, %v4443_v60  ;;  %v6400_v28 = vld [vmem:[#allocation8 + $0x464] sm:$0xf0]  ;;  %v4643_v59 = vld [vmem:[#allocation8 + $0x370] sm:$0xf0] }
 0x108   :  { %1974 = vmatpush.bf16.msra.mxu2 %v4242_v6  ;;  %2000 = vmatpush.bf16.msrb.mxu0 %v4246_v11  ;;  %v6432_v6 = vld [vmem:[#allocation8 + $0x564] sm:$0xf0]  ;;  %v4378_v11 = vor.u32 %v6304_v2, %v4377_v1  ;;  %v6489_v60 = vld [vmem:[#allocation8 + $0x734] sm:$0xf]  ;;  %v6353_v1 = vld [vmem:[#allocation8 + $0x2ec] sm:$0xf0] }
 0x109   :  { %v448_v2 = vperm.slane %v7068_v58, 1 }
 0x10a   :  { %1987 = vmatpush.bf16.msra.mxu3 %v4754_v7  ;;  %2013 = vmatpush.bf16.msrb.mxu1 %v4758_v12  ;;  %v6296_v7 = vld [vmem:[#allocation8 + $0x12c] sm:$0xf]  ;;  %v4890_v12 = vor.u32 %v6432_v6, %v4889_v5  ;;  %v5089_v5 = vld [vmem:[#allocation8 + $0x6b0] sm:$0xf] }
 0x10b   :  { %1975 = vmatmul.bf16.vlgmr.msra.gmra.mxu2 %v7044_v33  ;;  %2001 = vmatmul.bf16.vlgmr.msrb.gmra.mxu0 %v7044_v33  ;;  %v4382_v15 = vor.u32 %v6296_v7, %v4379_v8  ;;  %v6481_v6 = vld [vmem:[#allocation8 + $0x6ec] sm:$0xf0]  ;;  %v6345_v7 = vld [vmem:[#allocation8 + $0x2b4] sm:$0xf] }
 0x10c   :  { %2019 = vmatpush.bf16.msrb.mxu2 %v4698_v13  ;;  %2045 = vmatpush.bf16.msra.mxu0 %v4702_v17  ;;  %v4313_v13 = vld [vmem:[#allocation8 + $0xa8] sm:$0xf]  ;;  %v4579_v8 = vld [vmem:[#allocation8 + $0x2f0] sm:$0xf0] }
 0x10d   :  { %1988 = vmatmul.bf16.vlgmr.msra.gmra.mxu3 %v7046_v38  ;;  %2014 = vmatmul.bf16.vlgmr.msrb.gmra.mxu1 %v7046_v38  ;;  %v4825_v17 = vld [vmem:[#allocation8 + $0x4a8] sm:$0xf] }
 0x10e   :  { %2032 = vmatpush.bf16.msrb.mxu3 %v5210_v14  ;;  %2058 = vmatpush.bf16.msra.mxu1 %v5214_v18  ;;  %v6288_v14 = vld [vmem:[#allocation8 + $0xe4] sm:$0xf0] }
 0x10f   :  { %v6416_v18 = vld [vmem:[#allocation8 + $0x4e4] sm:$0xf0]  ;;  %v4314_v24 = vor.u32 %v6288_v14, %v4313_v13  ;;  %v5090_v13 = vor.u32 %v6481_v6, %v5089_v5  ;;  %v4833_v5 = vld [vmem:[#allocation8 + $0x4b0] sm:$0xf] }
 0x110   :  { %2020 = vmatpush.bf16.msrb.mxu2 %v4634_v25  ;;  %2046 = vmatpush.bf16.msra.mxu0 %v4638_v29  ;;  %v4826_v25 = vor.u32 %v6416_v18, %v4825_v17  ;;  %v4318_v29 = vor.u32 %v6280_v19, %v4315_v20  ;;  %v6337_v17 = vld [vmem:[#allocation8 + $0x26c] sm:$0xf0]  ;;  %v4582_v19 = vor.u32 %v6345_v7, %v4579_v8  ;;  %v6281_v7 = vld [vmem:[#allocation8 + $0xb4] sm:$0xf] }
 0x111   :  { %v5025_v18 = vld [vmem:[#allocation8 + $0x630] sm:$0xf]  ;;  %v5094_v20 = vor.u32 %v6473_v9, %v5091_v10  ;;  %v4323_v9 = vld [vmem:[#allocation8 + $0xf0] sm:$0xf0] }
 0x112   :  { %2033 = vmatpush.bf16.msrb.mxu3 %v5146_v26  ;;  %2059 = vmatpush.bf16.msra.mxu1 %v5150_v30  ;;  %v6272_v26 = vld [vmem:[#allocation8 + $0x64] sm:$0xf0]  ;;  %v4830_v30 = vor.u32 %v6408_v21, %v4827_v22  ;;  %v6465_v21 = vld [vmem:[#allocation8 + $0x66c] sm:$0xf0]  ;;  %v6329_v22 = vld [vmem:[#allocation8 + $0x234] sm:$0xf] }
 0x113   :  { %v4250_v42 = vor.u32 %v6272_v26, %v4249_v23  ;;  %v4515_v23 = vld [vmem:[#allocation8 + $0x270] sm:$0xf0]  ;;  %v6417_v6 = vld [vmem:[#allocation8 + $0x4ec] sm:$0xf0] }
 0x114   :  { %2021 = vmatpush.bf16.msrb.mxu2 %v4570_v39  ;;  %2047 = vmatpush.bf16.msra.mxu0 %v4574_v43  ;;  %v5217_v39 = vld [vmem:[#allocation8 + $0x7b0] sm:$0xf]  ;;  %v4762_v43 = vor.u32 %v6400_v28, %v4761_v27  ;;  %v5027_v26 = vld [vmem:[#allocation8 + $0x670] sm:$0xf0]  ;;  %v447_v27 = vperm.slane %v7068_v58, 0  ;;  %v4518_v32 = vor.u32 %v6329_v22, %v4515_v23 }
 0x115   :  { %v6409_v10 = vld [vmem:[#allocation8 + $0x4b4] sm:$0xf] }
 0x116   :  { %2034 = vmatpush.bf16.msrb.mxu3 %v5082_v40  ;;  %2060 = vmatpush.bf16.msra.mxu1 %v5086_v44  ;;  %v6513_v40 = vld [vmem:[#allocation8 + $0x7ec] sm:$0xf0]  ;;  %v4707_v44 = vld [vmem:[#allocation8 + $0x3f0] sm:$0xf0] }
 0x117   :  { %v5218_v50 = vor.u32 %v6513_v40, %v5217_v39  ;;  %v4710_v54 = vor.u32 %v6377_v41, %v4707_v44  ;;  %v6313_v39 = vld [vmem:[#allocation8 + $0x1b4] sm:$0xf] }
 0x118   :  { %2022 = vmatpush.bf16.msrb.mxu2 %v4506_v51  ;;  %2048 = vmatpush.bf16.msra.mxu0 %v4510_v55  ;;  %v4641_v51 = vld [vmem:[#allocation8 + $0x330] sm:$0xf]  ;;  %v5222_v55 = vor.u32 %v6505_v45, %v5219_v46  ;;  %v4963_v44 = vld [vmem:[#allocation8 + $0x5f0] sm:$0xf0] }
 0x119   :  { %v6265_v23 = vld [vmem:[#allocation8 + $0x34] sm:$0xf] }
 0x11a   :  { %2035 = vmatpush.bf16.msrb.mxu3 %v5018_v52  ;;  %2061 = vmatpush.bf16.msra.mxu1 %v5022_v56  ;;  %v6369_v52 = vld [vmem:[#allocation8 + $0x36c] sm:$0xf0] }
 0x11b   :  { %v6497_v56 = vld [vmem:[#allocation8 + $0x76c] sm:$0xf0]  ;;  %v4642_v62 = vor.u32 %v6369_v52, %v4641_v51 }
 0x11c   :  { %2023 = vmatpush.bf16.msrb.mxu2 %v4442_v63  ;;  %2049 = vmatpush.bf16.msra.mxu0 %v4446_v3  ;;  %v5154_v63 = vor.u32 %v6497_v56, %v5153_v53  ;;  %v4646_v3 = vor.u32 %v6361_v57, %v4643_v59  ;;  %v6305_v51 = vld [vmem:[#allocation8 + $0x16c] sm:$0xf0]  ;;  %v6297_v56 = vld [vmem:[#allocation8 + $0x134] sm:$0xf] }
 0x11d   :  { %v4387_v57 = vld [vmem:[#allocation8 + $0x170] sm:$0xf0] }
 0x11e   :  { %2036 = vmatpush.bf16.msrb.mxu3 %v4954_v0  ;;  %2062 = vmatpush.bf16.msra.mxu1 %v4958_v4  ;;  %v4577_v0 = vld [vmem:[#allocation8 + $0x2b0] sm:$0xf]  ;;  %v5158_v4 = vor.u32 %v6489_v60, %v5155_v61  ;;  %v6425_v59 = vld [vmem:[#allocation8 + $0x534] sm:$0xf] }
 0x11f   :  { %v4899_v60 = vld [vmem:[#allocation8 + $0x570] sm:$0xf0] }
 0x120   :  { %2024 = vmatpush.bf16.msrb.mxu2 %v4378_v11  ;;  %2050 = vmatpush.bf16.msra.mxu0 %v4382_v15 }
 0x122   :  { %2037 = vmatpush.bf16.msrb.mxu3 %v4890_v12  ;;  %2063 = vmatpush.bf16.msra.mxu1 %v4894_v16  ;;  %v4578_v12 = vor.u32 %v6353_v1, %v4577_v0  ;;  %v4513_v16 = vld [vmem:[#allocation8 + $0x230] sm:$0xf]  ;;  %v450_v1 = vperm.slane %v7068_v58, 3 }
 0x123   :  { %v4514_v28 = vor.u32 %v6337_v17, %v4513_v16  ;;  %v6289_v0 = vld [vmem:[#allocation8 + $0xec] sm:$0xf0] }
 0x124   :  { %2025 = vmatpush.bf16.msrb.mxu2 %v4314_v24  ;;  %2051 = vmatpush.bf16.msra.mxu0 %v4318_v29  ;;  %v5026_v29 = vor.u32 %v6465_v21, %v5025_v18  ;;  %v6273_v18 = vld [vmem:[#allocation8 + $0x6c] sm:$0xf0]  ;;  %v4326_v21 = vor.u32 %v6281_v7, %v4323_v9  ;;  %v6474_v7 = vld [vmem:[#allocation8 + $0x6bc] sm:$0xf] }
 0x126   :  { %2038 = vmatpush.bf16.msrb.mxu3 %v4826_v25  ;;  %2064 = vmatpush.bf16.msra.mxu1 %v4830_v30  ;;  %v6457_v25 = vld [vmem:[#allocation8 + $0x634] sm:$0xf]  ;;  %v4449_v30 = vld [vmem:[#allocation8 + $0x1b0] sm:$0xf] }
 0x127   :  { %v1794_v11 = vpop.f32.mrf.mxu0  ;;  %v5030_v34 = vor.u32 %v6457_v25, %v5027_v26  ;;  %v4259_v25 = vld [vmem:[#allocation8 + $0x70] sm:$0xf0] }
 0x128   :  { %2026 = vmatpush.bf16.msrb.mxu2 %v4250_v42  ;;  %2052 = vmatpush.bf16.msra.mxu0 %v4254_v47  ;;  %v1795_v14 = vadd.f32 %v1794_v11, %v448_v2  ;;  %v4451_v42 = vld [vmem:[#allocation8 + $0x1f0] sm:$0xf0]  ;;  %v4450_v47 = vor.u32 %v6321_v31, %v4449_v30  ;;  %v4390_v2 = vor.u32 %v6297_v56, %v4387_v57  ;;  %v6386_v30 = vld [vmem:[#allocation8 + $0x3f4] sm:$0xf0]  ;;  %v4651_v57 = vld [vmem:[#allocation8 + $0x378] sm:$0xf0] }
 0x129   :  { %v4454_v52 = vor.u32 %v6313_v39, %v4451_v42  ;;  %v4835_v11 = vld [vmem:[#allocation8 + $0x4f0] sm:$0xf0]  ;;  %v5225_v31 = vld [vmem:[#allocation8 + $0x7b8] sm:$0xf]  ;;  %v6506_v39 = vld [vmem:[#allocation8 + $0x7bc] sm:$0xf] }
 0x12a   :  { %2039 = vmatpush.bf16.msrb.mxu3 %v4762_v43  ;;  %2065 = vmatpush.bf16.msra.mxu1 %v4766_v48  ;;  %v1807_v15 = vpop.f32.mrf.mxu1  ;;  %v6441_v43 = vld [vmem:[#allocation8 + $0x5b4] sm:$0xf]  ;;  %v4962_v48 = vor.u32 %v6449_v37, %v4961_v36  ;;  %v4838_v22 = vor.u32 %v6409_v10, %v4835_v11  ;;  %v4715_v37 = vld [vmem:[#allocation8 + $0x3f8] sm:$0xf0] }
 0x12b   :  { %2027 = vmatmul.bf16.vlgmr.msrb.gmra.mxu2 %v7044_v33  ;;  %2053 = vmatmul.bf16.vlgmr.msra.gmra.mxu0 %v7044_v33  ;;  %v7075_v24 = vadd.f32 %v1807_v15, %v1795_v14  ;;  %v4966_v53 = vor.u32 %v6441_v43, %v4963_v44  ;;  %v4834_v15 = vor.u32 %v6417_v6, %v4833_v5  ;;  %v6393_v26 = vld [vmem:[#allocation8 + $0x434] sm:$0xf]  ;;  %v6346_v5 = vld [vmem:[#allocation8 + $0x2bc] sm:$0xf] }
 0x12c   :  { %2071 = vmatpush.bf16.msra.mxu2 %v4706_v49  ;;  %2097 = vmatpush.bf16.msrb.mxu0 %v4710_v54  ;;  %v4897_v54 = vld [vmem:[#allocation8 + $0x530] sm:$0xf]  ;;  %v4587_v6 = vld [vmem:[#allocation8 + $0x2f8] sm:$0xf0] }
 0x12d   :  { %2040 = vmatmul.bf16.vlgmr.msrb.gmra.mxu3 %v7046_v38  ;;  %2066 = vmatmul.bf16.vlgmr.msra.gmra.mxu1 %v7046_v38  ;;  %v1768_v35 = vpop.f32.mrf.mxu2 }
 0x12e   :  { %2084 = vmatpush.bf16.msra.mxu3 %v5218_v50  ;;  %2110 = vmatpush.bf16.msrb.mxu1 %v5222_v55  ;;  %v1769_v40 = vadd.f32 %v1768_v35, %v447_v27  ;;  %v4385_v50 = vld [vmem:[#allocation8 + $0x130] sm:$0xf] }
 0x12f   :  { %v1796_v45 = vpop.f32.mrf.mxu0  ;;  %v6433_v55 = vld [vmem:[#allocation8 + $0x56c] sm:$0xf0]  ;;  %v4386_v61 = vor.u32 %v6305_v51, %v4385_v50 }
 0x130   :  { %2072 = vmatpush.bf16.msra.mxu2 %v4642_v62  ;;  %2098 = vmatpush.bf16.msrb.mxu0 %v4646_v3  ;;  %v1781_v41 = vpop.f32.mrf.mxu3  ;;  %v4898_v62 = vor.u32 %v6433_v55, %v4897_v54  ;;  %v4902_v3 = vor.u32 %v6425_v59, %v4899_v60  ;;  %v6498_v54 = vld [vmem:[#allocation8 + $0x774] sm:$0xf0]  ;;  %v6362_v55 = vld [vmem:[#allocation8 + $0x33c] sm:$0xf] }
 0x131   :  { %v7078_v46 = vadd.f32 %v1781_v41, %v1769_v40  ;;  %v5227_v40 = vld [vmem:[#allocation8 + $0x7f8] sm:$0xf0]  ;;  %v4262_v41 = vor.u32 %v6265_v23, %v4259_v25 }
 0x132   :  { %2085 = vmatpush.bf16.msra.mxu3 %v5154_v63  ;;  %2111 = vmatpush.bf16.msrb.mxu1 %v5158_v4  ;;  %v1809_v49 = vpop.f32.mrf.mxu1  ;;  %v4321_v63 = vld [vmem:[#allocation8 + $0xb0] sm:$0xf]  ;;  %v5230_v51 = vor.u32 %v6506_v39, %v5227_v40  ;;  %v6490_v59 = vld [vmem:[#allocation8 + $0x73c] sm:$0xf] }
 0x133   :  { %v4322_v14 = vor.u32 %v6289_v0, %v4321_v63  ;;  %v6370_v49 = vld [vmem:[#allocation8 + $0x374] sm:$0xf0]  ;;  %v5163_v60 = vld [vmem:[#allocation8 + $0x778] sm:$0xf0] }
 0x134   :  { %2073 = vmatpush.bf16.msra.mxu2 %v4578_v12  ;;  %2099 = vmatpush.bf16.msrb.mxu0 %v4582_v19  ;;  %v4769_v19 = vld [vmem:[#allocation8 + $0x430] sm:$0xf]  ;;  %v4585_v63 = vld [vmem:[#allocation8 + $0x2b8] sm:$0xf]  ;;  %v5035_v23 = vld [vmem:[#allocation8 + $0x678] sm:$0xf0] }
 0x135   :  { %v1770_v4 = vpop.f32.mrf.mxu2  ;;  %v6354_v0 = vld [vmem:[#allocation8 + $0x2f4] sm:$0xf0]  ;;  %v6314_v39 = vld [vmem:[#allocation8 + $0x1bc] sm:$0xf] }
 0x136   :  { %2086 = vmatpush.bf16.msra.mxu3 %v5090_v13  ;;  %2112 = vmatpush.bf16.msrb.mxu1 %v5094_v20  ;;  %v4257_v13 = vld [vmem:[#allocation8 + $0x30] sm:$0xf]  ;;  %v6482_v4 = vld [vmem:[#allocation8 + $0x6f4] sm:$0xf0]  ;;  %v4586_v10 = vor.u32 %v6354_v0, %v4585_v63  ;;  %v4459_v40 = vld [vmem:[#allocation8 + $0x1f8] sm:$0xf0] }
 0x137   :  { %v6401_v20 = vld [vmem:[#allocation8 + $0x46c] sm:$0xf0]  ;;  %v4258_v35 = vor.u32 %v6273_v18, %v4257_v13  ;;  %v452_v13 = vperm.slane %v7068_v58, 5  ;;  %v5033_v18 = vld [vmem:[#allocation8 + $0x638] sm:$0xf] }
 0x138   :  { %2074 = vmatpush.bf16.msra.mxu2 %v4514_v28  ;;  %2100 = vmatpush.bf16.msrb.mxu0 %v4518_v32  ;;  %v1783_v8 = vpop.f32.mrf.mxu3  ;;  %v1846_v12 = vpop.f32.mrf.mxu0  ;;  %v4771_v28 = vld [vmem:[#allocation8 + $0x470] sm:$0xf0]  ;;  %v6514_v32 = vld [vmem:[#allocation8 + $0x7f4] sm:$0xf0]  ;;  %v4770_v36 = vor.u32 %v6401_v20, %v4769_v19  ;;  %v6330_v20 = vld [vmem:[#allocation8 + $0x23c] sm:$0xf] }
 0x139   :  { %v1847_v16 = vadd.f32 %v1846_v12, %v450_v1  ;;  %v4774_v42 = vor.u32 %v6393_v26, %v4771_v28  ;;  %v5226_v45 = vor.u32 %v6514_v32, %v5225_v31  ;;  %v4654_v1 = vor.u32 %v6362_v55, %v4651_v57  ;;  %v5099_v8 = vld [vmem:[#allocation8 + $0x6f8] sm:$0xf0]  ;;  %v6466_v19 = vld [vmem:[#allocation8 + $0x674] sm:$0xf0] }
 0x13a   :  { %2087 = vmatpush.bf16.msra.mxu3 %v5026_v29  ;;  %2113 = vmatpush.bf16.msrb.mxu1 %v5030_v34  ;;  %v1859_v17 = vpop.f32.mrf.mxu1  ;;  %v4713_v29 = vld [vmem:[#allocation8 + $0x3b8] sm:$0xf]  ;;  %v6378_v34 = vld [vmem:[#allocation8 + $0x3bc] sm:$0xf] }
 0x13b   :  { %v7081_v27 = vadd.f32 %v1859_v17, %v1847_v16  ;;  %v4714_v44 = vor.u32 %v6386_v30, %v4713_v29  ;;  %v4718_v50 = vor.u32 %v6378_v34, %v4715_v37  ;;  %v4590_v16 = vor.u32 %v6346_v5, %v4587_v6  ;;  %v4457_v30 = vld [vmem:[#allocation8 + $0x1b8] sm:$0xf]  ;;  %v4907_v63 = vld [vmem:[#allocation8 + $0x578] sm:$0xf0] }
 0x13c   :  { %2075 = vmatpush.bf16.msra.mxu2 %v4450_v47  ;;  %2101 = vmatpush.bf16.msrb.mxu0 %v4454_v52  ;;  %v5102_v17 = vor.u32 %v6474_v7, %v5099_v8  ;;  %v5034_v29 = vor.u32 %v6466_v19, %v5033_v18  ;;  %v6322_v31 = vld [vmem:[#allocation8 + $0x1f4] sm:$0xf0] }
 0x13d   :  { %v4969_v32 = vld [vmem:[#allocation8 + $0x5b8] sm:$0xf] }
 0x13e   :  { %2088 = vmatpush.bf16.msra.mxu3 %v4962_v48  ;;  %2114 = vmatpush.bf16.msrb.mxu1 %v4966_v53  ;;  %v7083_v43 = vpop.f32.mrf.mxu2  ;;  %v4649_v48 = vld [vmem:[#allocation8 + $0x338] sm:$0xf] }
 0x13f   :  { %v5161_v53 = vld [vmem:[#allocation8 + $0x738] sm:$0xf] }
 0x140   :  { %2076 = vmatpush.bf16.msra.mxu2 %v4386_v61  ;;  %2102 = vmatpush.bf16.msrb.mxu0 %v4390_v2  ;;  %v7085_v47 = vpop.f32.mrf.mxu3  ;;  %v1848_v52 = vpop.f32.mrf.mxu0  ;;  %v4650_v61 = vor.u32 %v6370_v49, %v4649_v48  ;;  %v5166_v2 = vor.u32 %v6490_v59, %v5163_v60  ;;  %v6450_v37 = vld [vmem:[#allocation8 + $0x5f4] sm:$0xf0]  ;;  %v4458_v48 = vor.u32 %v6322_v31, %v4457_v30  ;;  %v6298_v59 = vld [vmem:[#allocation8 + $0x13c] sm:$0xf]  ;;  %v5289_v31 = vld [vmem:[#allocation11 + $0x70] sm:$0xf] }
 0x141   :  { %v4970_v49 = vor.u32 %v6450_v37, %v4969_v32  ;;  %v4462_v52 = vor.u32 %v6314_v39, %v4459_v40  ;;  %v6434_v57 = vld [vmem:[#allocation8 + $0x574] sm:$0xf0]  ;;  %v4779_v30 = vld [vmem:[#allocation8 + $0x478] sm:$0xf0]  ;;  %v6530_v32 = vld [vmem:[#allocation11 + $0x74] sm:$0xf0] }
 0x142   :  { %2089 = vmatpush.bf16.msra.mxu3 %v4898_v62  ;;  %2115 = vmatpush.bf16.msrb.mxu1 %v4902_v3  ;;  %v1861_v56 = vpop.f32.mrf.mxu1  ;;  %v5162_v62 = vor.u32 %v6498_v54, %v5161_v53  ;;  %v5097_v3 = vld [vmem:[#allocation8 + $0x6b8] sm:$0xf]  ;;  %v6562_v40 = vld [vmem:[#allocation11 + $0x174] sm:$0xf0] }
 0x143   :  { %v5098_v11 = vor.u32 %v6482_v4, %v5097_v3  ;;  %v4905_v56 = vld [vmem:[#allocation8 + $0x538] sm:$0xf] }
 0x144   :  { %2077 = vmatpush.bf16.msra.mxu2 %v4322_v14  ;;  %2103 = vmatpush.bf16.msrb.mxu0 %v4326_v21  ;;  %v4521_v14 = vld [vmem:[#allocation8 + $0x238] sm:$0xf]  ;;  %v4523_v21 = vld [vmem:[#allocation8 + $0x278] sm:$0xf0]  ;;  %v4906_v4 = vor.u32 %v6434_v57, %v4905_v56  ;;  %v5409_v57 = vld [vmem:[#allocation11 + $0x160] sm:$0xf] }
 0x145   :  { %v4329_v5 = vld [vmem:[#allocation8 + $0xb8] sm:$0xf] }
 0x146   :  { %2090 = vmatpush.bf16.msra.mxu3 %v4834_v15  ;;  %2116 = vmatpush.bf16.msrb.mxu1 %v4838_v22  ;;  %v1822_v9 = vpop.f32.mrf.mxu2  ;;  %v6338_v15 = vld [vmem:[#allocation8 + $0x274] sm:$0xf0]  ;;  %v6458_v22 = vld [vmem:[#allocation8 + $0x63c] sm:$0xf] }
 0x147   :  { %v4522_v28 = vor.u32 %v6338_v15, %v4521_v14  ;;  %v6290_v6 = vld [vmem:[#allocation8 + $0xf4] sm:$0xf0]  ;;  %v4843_v14 = vld [vmem:[#allocation8 + $0x4f8] sm:$0xf0] }
 0x148   :  { %2078 = vmatpush.bf16.msra.mxu2 %v4258_v35  ;;  %2104 = vmatpush.bf16.msrb.mxu0 %v4262_v41  ;;  %v1835_v12 = vpop.f32.mrf.mxu3  ;;  %v1898_v25 = vpop.f32.mrf.mxu0  ;;  %v4526_v35 = vor.u32 %v6330_v20, %v4523_v21  ;;  %v6442_v41 = vld [vmem:[#allocation8 + $0x5bc] sm:$0xf]  ;;  %v4841_v9 = vld [vmem:[#allocation8 + $0x4b8] sm:$0xf] }
 0x149   :  { %v1899_v34 = vadd.f32 %v1898_v25, %v452_v13  ;;  %v4331_v12 = vld [vmem:[#allocation8 + $0xf8] sm:$0xf0]  ;;  %v4265_v15 = vld [vmem:[#allocation8 + $0x38] sm:$0xf] }
 0x14a   :  { %2091 = vmatpush.bf16.msra.mxu3 %v4770_v36  ;;  %2117 = vmatpush.bf16.msrb.mxu1 %v4774_v42  ;;  %v1911_v26 = vpop.f32.mrf.mxu1  ;;  %v5038_v36 = vor.u32 %v6458_v22, %v5035_v23  ;;  %v4971_v42 = vld [vmem:[#allocation8 + $0x5f8] sm:$0xf0]  ;;  %v6274_v18 = vld [vmem:[#allocation8 + $0x74] sm:$0xf0] }
 0x14b   :  { %2079 = vmatmul.bf16.vlgmr.msra.gmra.mxu2 %v7044_v33  ;;  %2105 = vmatmul.bf16.vlgmr.msrb.gmra.mxu0 %v7044_v33  ;;  %v4974_v53 = vor.u32 %v6442_v41, %v4971_v42  ;;  %v6410_v13 = vld [vmem:[#allocation8 + $0x4bc] sm:$0xf]  ;;  %v4777_v19 = vld [vmem:[#allocation8 + $0x438] sm:$0xf]  ;;  %v4266_v37 = vor.u32 %v6274_v18, %v4265_v15  ;;  %v5481_v41 = vld [vmem:[#allocation11 + $0x1f0] sm:$0xf] }
 0x14c   :  { %2123 = vmatpush.bf16.msrb.mxu2 %v4714_v44  ;;  %2149 = vmatpush.bf16.msra.mxu0 %v4718_v50  ;;  %v451_v44 = vperm.slane %v7068_v58, 4  ;;  %v4393_v50 = vld [vmem:[#allocation8 + $0x138] sm:$0xf]  ;;  %v4846_v22 = vor.u32 %v6410_v13, %v4843_v14  ;;  %v6578_v42 = vld [vmem:[#allocation11 + $0x1f4] sm:$0xf0] }
 0x14d   :  { %2092 = vmatmul.bf16.vlgmr.msra.gmra.mxu3 %v7046_v38  ;;  %2118 = vmatmul.bf16.vlgmr.msrb.gmra.mxu1 %v7046_v38  ;;  %v6402_v20 = vld [vmem:[#allocation8 + $0x474] sm:$0xf0]  ;;  %v5265_v13 = vld [vmem:[#allocation11 + $0x40] sm:$0xf] }
 0x14e   :  { %2136 = vmatpush.bf16.msrb.mxu3 %v5226_v45  ;;  %2162 = vmatpush.bf16.msra.mxu1 %v5230_v51  ;;  %v7093_v45 = vadd.f32 %v1911_v26, %v1899_v34  ;;  %v6306_v51 = vld [vmem:[#allocation8 + $0x174] sm:$0xf0]  ;;  %v1872_v54 = vpop.f32.mrf.mxu2  ;;  %v6266_v26 = vld [vmem:[#allocation8 + $0x3c] sm:$0xf]  ;;  %v5353_v34 = vld [vmem:[#allocation11 + $0xf0] sm:$0xf]  ;;  %v4778_v39 = vor.u32 %v6402_v20, %v4777_v19 }
 0x14f   :  { %v1873_v60 = vadd.f32 %v1872_v54, %v451_v44  ;;  %v4394_v3 = vor.u32 %v6306_v51, %v4393_v50  ;;  %v5281_v51 = vld [vmem:[#allocation11 + $0x60] sm:$0xf]  ;;  %v5482_v54 = vor.u32 %v6578_v42, %v5481_v41  ;;  %v6544_v56 = vld [vmem:[#allocation11 + $0xe4] sm:$0xf0] }
 0x150   :  { %2124 = vmatpush.bf16.msrb.mxu2 %v4650_v61  ;;  %2150 = vmatpush.bf16.msra.mxu0 %v4654_v1  ;;  %v1885_v55 = vpop.f32.mrf.mxu3  ;;  %v4395_v61 = vld [vmem:[#allocation8 + $0x178] sm:$0xf0]  ;;  %v1900_v1 = vpop.f32.mrf.mxu0  ;;  %v6524_v14 = vld [vmem:[#allocation11 + $0x44] sm:$0xf0]  ;;  %v5393_v19 = vld [vmem:[#allocation11 + $0x140] sm:$0xf] }
 0x151   :  { %v7095_v0 = vadd.f32 %v1885_v55, %v1873_v60  ;;  %v4398_v7 = vor.u32 %v6298_v59, %v4395_v61  ;;  %v5345_v55 = vld [vmem:[#allocation11 + $0xe0] sm:$0xf]  ;;  %v6560_v59 = vld [vmem:[#allocation11 + $0x164] sm:$0xf0]  ;;  %v5273_v1 = vld [vmem:[#allocation11 + $0x50] sm:$0xf] }
 0x152   :  { %2137 = vmatpush.bf16.msrb.mxu3 %v5162_v62  ;;  %2163 = vmatpush.bf16.msra.mxu1 %v5166_v2  ;;  %v6426_v62 = vld [vmem:[#allocation8 + $0x53c] sm:$0xf]  ;;  %v1913_v2 = vpop.f32.mrf.mxu1  ;;  %v5473_v60 = vld [vmem:[#allocation11 + $0x1e0] sm:$0xf]  ;;  %v6576_v61 = vld [vmem:[#allocation11 + $0x1e4] sm:$0xf0] }
 0x153   :  { %v4910_v8 = vor.u32 %v6426_v62, %v4907_v63  ;;  %v5346_v63 = vor.u32 %v6544_v56, %v5345_v55  ;;  %v6526_v2 = vld [vmem:[#allocation11 + $0x54] sm:$0xf0]  ;;  %v6540_v18 = vld [vmem:[#allocation11 + $0xc4] sm:$0xf0]  ;;  %v5249_v42 = vld [vmem:[#allocation11 + $0x20] sm:$0xf] }
 0x154   :  { %2125 = vmatpush.bf16.msrb.mxu2 %v4586_v10  ;;  %2151 = vmatpush.bf16.msra.mxu0 %v4590_v16  ;;  %v6418_v10 = vld [vmem:[#allocation8 + $0x4f4] sm:$0xf0]  ;;  %v4330_v16 = vor.u32 %v6290_v6, %v4329_v5  ;;  %v5337_v5 = vld [vmem:[#allocation11 + $0xd0] sm:$0xf]  ;;  %v6542_v6 = vld [vmem:[#allocation11 + $0xd4] sm:$0xf0] }
 0x155   :  { %v6556_v20 = vld [vmem:[#allocation11 + $0x144] sm:$0xf0]  ;;  %v5441_v56 = vld [vmem:[#allocation11 + $0x1a0] sm:$0xf] }
 0x156   :  { %2138 = vmatpush.bf16.msrb.mxu3 %v5098_v11  ;;  %2164 = vmatpush.bf16.msra.mxu1 %v5102_v17  ;;  %v6282_v11 = vld [vmem:[#allocation8 + $0xbc] sm:$0xf]  ;;  %v4842_v17 = vor.u32 %v6418_v10, %v4841_v9  ;;  %v1874_v23 = vpop.f32.mrf.mxu2  ;;  %v5465_v9 = vld [vmem:[#allocation11 + $0x1d0] sm:$0xf]  ;;  %v6574_v10 = vld [vmem:[#allocation11 + $0x1d4] sm:$0xf0] }
 0x157   :  { %v4334_v21 = vor.u32 %v6282_v11, %v4331_v12  ;;  %v5274_v11 = vor.u32 %v6526_v2, %v5273_v1  ;;  %v5338_v12 = vor.u32 %v6542_v6, %v5337_v5  ;;  %v5266_v23 = vor.u32 %v6524_v14, %v5265_v13  ;;  %v6552_v55 = vld [vmem:[#allocation11 + $0x124] sm:$0xf0]  ;;  %v5369_v5 = vld [vmem:[#allocation11 + $0x110] sm:$0xf]  ;;  %v5297_v14 = vld [vmem:[#allocation11 + $0x80] sm:$0xf] }
 0x158   :  { %2126 = vmatpush.bf16.msrb.mxu2 %v4522_v28  ;;  %2152 = vmatpush.bf16.msra.mxu0 %v4526_v35  ;;  %v1887_v25 = vpop.f32.mrf.mxu3  ;;  %v4267_v28 = vld [vmem:[#allocation8 + $0x78] sm:$0xf0]  ;;  %v6546_v35 = vld [vmem:[#allocation11 + $0xf4] sm:$0xf0]  ;;  %v6516_v13 = vld [vmem:[#allocation11 + $0x4] sm:$0xf0] }
 0x159   :  { %v4270_v44 = vor.u32 %v6266_v26, %v4267_v28  ;;  %v5354_v50 = vor.u32 %v6546_v35, %v5353_v34  ;;  %v5257_v26 = vld [vmem:[#allocation11 + $0x30] sm:$0xf]  ;;  %v6522_v28 = vld [vmem:[#allocation11 + $0x34] sm:$0xf0] }
 0x15a   :  { %2139 = vmatpush.bf16.msrb.mxu3 %v5034_v29  ;;  %2165 = vmatpush.bf16.msra.mxu1 %v5038_v36  ;;  %v6394_v29 = vld [vmem:[#allocation8 + $0x43c] sm:$0xf]  ;;  %v5417_v36 = vld [vmem:[#allocation11 + $0x170] sm:$0xf]  ;;  %v6554_v35 = vld [vmem:[#allocation11 + $0x134] sm:$0xf0] }
 0x15b   :  { %v5385_v34 = vld [vmem:[#allocation11 + $0x130] sm:$0xf] }
 0x15c   :  { %2127 = vmatpush.bf16.msrb.mxu2 %v4458_v48  ;;  %2153 = vmatpush.bf16.msra.mxu0 %v4462_v52  ;;  %v4782_v48 = vor.u32 %v6394_v29, %v4779_v30  ;;  %v6528_v52 = vld [vmem:[#allocation11 + $0x64] sm:$0xf0]  ;;  %v5394_v29 = vor.u32 %v6556_v20, %v5393_v19  ;;  %v5361_v20 = vld [vmem:[#allocation11 + $0x100] sm:$0xf] }
 0x15d   :  { %v5282_v62 = vor.u32 %v6528_v52, %v5281_v51  ;;  %v5313_v52 = vld [vmem:[#allocation11 + $0xa0] sm:$0xf] }
 0x15e   :  { %2140 = vmatpush.bf16.msrb.mxu3 %v4970_v49  ;;  %2166 = vmatpush.bf16.msra.mxu1 %v4974_v53  ;;  %v5290_v49 = vor.u32 %v6530_v32, %v5289_v31  ;;  %v5418_v53 = vor.u32 %v6562_v40, %v5417_v36  ;;  %v5321_v31 = vld [vmem:[#allocation11 + $0xb0] sm:$0xf]  ;;  %v6538_v32 = vld [vmem:[#allocation11 + $0xb4] sm:$0xf0]  ;;  %v5258_v40 = vor.u32 %v6522_v28, %v5257_v26 }
 0x15f   :  { %v5449_v36 = vld [vmem:[#allocation11 + $0x1b0] sm:$0xf]  ;;  %v5322_v41 = vor.u32 %v6538_v32, %v5321_v31  ;;  %v6594_v26 = vld [vmem:[#allocation11 + $0x274] sm:$0xf0] }
 0x160   :  { %2128 = vmatpush.bf16.msrb.mxu2 %v4394_v3  ;;  %2154 = vmatpush.bf16.msra.mxu0 %v4398_v7  ;;  %v5410_v3 = vor.u32 %v6560_v59, %v5409_v57  ;;  %v5401_v7 = vld [vmem:[#allocation11 + $0x150] sm:$0xf] }
 0x161   :  { %v5609_v28 = vld [vmem:[#allocation11 + $0x2f0] sm:$0xf] }
 0x162   :  { %2141 = vmatpush.bf16.msrb.mxu3 %v4906_v4  ;;  %2167 = vmatpush.bf16.msra.mxu1 %v4910_v8  ;;  %v5474_v4 = vor.u32 %v6576_v61, %v5473_v60  ;;  %v6558_v8 = vld [vmem:[#allocation11 + $0x154] sm:$0xf0] }
 0x163   :  { %v5402_v15 = vor.u32 %v6558_v8, %v5401_v7  ;;  %v6550_v7 = vld [vmem:[#allocation11 + $0x114] sm:$0xf0]  ;;  %v5433_v8 = vld [vmem:[#allocation11 + $0x190] sm:$0xf] }
 0x164   :  { %2129 = vmatpush.bf16.msrb.mxu2 %v4330_v16  ;;  %2155 = vmatpush.bf16.msra.mxu0 %v4334_v21  ;;  %v5466_v16 = vor.u32 %v6574_v10, %v5465_v9  ;;  %v5457_v21 = vld [vmem:[#allocation11 + $0x1c0] sm:$0xf]  ;;  %v6566_v9 = vld [vmem:[#allocation11 + $0x194] sm:$0xf0] }
 0x165   :  { %v5233_v10 = vld [vmem:[#allocation11] sm:$0xf] }
 0x166   :  { %2142 = vmatpush.bf16.msrb.mxu3 %v4842_v17  ;;  %2168 = vmatpush.bf16.msra.mxu1 %v4846_v22  ;;  %v5329_v17 = vld [vmem:[#allocation11 + $0xc0] sm:$0xf]  ;;  %v6572_v22 = vld [vmem:[#allocation11 + $0x1c4] sm:$0xf0]  ;;  %v5234_v31 = vor.u32 %v6516_v13, %v5233_v10  ;;  %v6638_v10 = vld [vmem:[#allocation11 + $0x3d4] sm:$0xf0] }
 0x167   :  { %v5330_v25 = vor.u32 %v6540_v18, %v5329_v17  ;;  %v5458_v30 = vor.u32 %v6572_v22, %v5457_v21  ;;  %v5434_v17 = vor.u32 %v6566_v9, %v5433_v8  ;;  %v6548_v21 = vld [vmem:[#allocation11 + $0x104] sm:$0xf0]  ;;  %v6622_v8 = vld [vmem:[#allocation11 + $0x354] sm:$0xf0]  ;;  %v5721_v9 = vld [vmem:[#allocation11 + $0x3d0] sm:$0xf] }
 0x168   :  { %2130 = vmatpush.bf16.msrb.mxu2 %v4266_v37  ;;  %2156 = vmatpush.bf16.msra.mxu0 %v4270_v44  ;;  %v6570_v37 = vld [vmem:[#allocation11 + $0x1b4] sm:$0xf0]  ;;  %v6520_v44 = vld [vmem:[#allocation11 + $0x24] sm:$0xf0]  ;;  %v5521_v13 = vld [vmem:[#allocation11 + $0x240] sm:$0xf] }
 0x169   :  { %v5250_v60 = vor.u32 %v6520_v44, %v5249_v42 }
 0x16a   :  { %2143 = vmatpush.bf16.msrb.mxu3 %v4778_v39  ;;  %2169 = vmatpush.bf16.msra.mxu1 %v4782_v48  ;;  %v449_v39 = vperm.slane %v7068_v58, 2  ;;  %v5386_v48 = vor.u32 %v6554_v35, %v5385_v34  ;;  %v6568_v58 = vld [vmem:[#allocation11 + $0x1a4] sm:$0xf0]  ;;  %v6626_v34 = vld [vmem:[#allocation11 + $0x374] sm:$0xf0] }
 0x16b   :  { %2131 = vmatmul.bf16.vlgmr.msrb.gmra.mxu2 %v7044_v33  ;;  %2157 = vmatmul.bf16.vlgmr.msra.gmra.mxu0 %v7044_v33  ;;  %v7101_v33 = vpop.f32.mrf.mxu0  ;;  %v5442_v2 = vor.u32 %v6568_v58, %v5441_v56  ;;  %v5737_v35 = vld [vmem:[#allocation11 + $0x3f0] sm:$0xf]  ;;  %v6608_v56 = vld [vmem:[#allocation11 + $0x2e4] sm:$0xf0]  ;;  %v5665_v58 = vld [vmem:[#allocation11 + $0x360] sm:$0xf] }
 0x16c   :  { %3749 = vmatpush.bf16.msra.mxu2 %v5290_v49  ;;  %3775 = vmatpush.bf16.msrb.mxu0 %v5418_v53  ;;  %v5450_v49 = vor.u32 %v6570_v37, %v5449_v36  ;;  %v6536_v53 = vld [vmem:[#allocation11 + $0xa4] sm:$0xf0]  ;;  %v1821_v6 = vadd.f32 %v7083_v43, %v449_v39  ;;  %v5425_v43 = vld [vmem:[#allocation11 + $0x180] sm:$0xf]  ;;  %v6642_v36 = vld [vmem:[#allocation11 + $0x3f4] sm:$0xf0] }
 0x16d   :  { %2144 = vmatmul.bf16.vlgmr.msrb.gmra.mxu3 %v7046_v38  ;;  %2170 = vmatmul.bf16.vlgmr.msra.gmra.mxu1 %v7046_v38  ;;  %v7103_v38 = vpop.f32.mrf.mxu1  ;;  %v5314_v61 = vor.u32 %v6536_v53, %v5313_v52  ;;  %v2176_v37 = vmax.f32 %v7075_v24, 0.0  ;;  %v2175_v39 = vmax.f32 %v7078_v46, 0.0  ;;  %v6592_v52 = vld [vmem:[#allocation11 + $0x264] sm:$0xf0]  ;;  %v5729_v46 = vld [vmem:[#allocation11 + $0x3e0] sm:$0xf] }
 0x16e   :  { %3762 = vmatpush.bf16.msra.mxu3 %v5354_v50  ;;  %3788 = vmatpush.bf16.msrb.mxu1 %v5482_v54  ;;  %v7106_v50 = vpop.f32.mrf.mxu2  ;;  %v5377_v54 = vld [vmem:[#allocation11 + $0x120] sm:$0xf]  ;;  %v1834_v22 = vadd.f32 %v7085_v47, %v1821_v6  ;;  %v5362_v47 = vor.u32 %v6548_v21, %v5361_v20  ;;  %v6624_v24 = vld [vmem:[#allocation11 + $0x364] sm:$0xf0]  ;;  %v6606_v6 = vld [vmem:[#allocation11 + $0x2d4] sm:$0xf0] }
 0x16f   :  { %v5378_v1 = vor.u32 %v6552_v55, %v5377_v54  ;;  %v5738_v54 = vor.u32 %v6642_v36, %v5737_v35  ;;  %v5601_v55 = vld [vmem:[#allocation11 + $0x2e0] sm:$0xf]  ;;  %v6620_v20 = vld [vmem:[#allocation11 + $0x344] sm:$0xf0]  ;;  %v5641_v35 = vld [vmem:[#allocation11 + $0x330] sm:$0xf] }
 0x170   :  { %3750 = vmatpush.bf16.msra.mxu2 %v5282_v62  ;;  %3776 = vmatpush.bf16.msrb.mxu0 %v5410_v3  ;;  %v7108_v51 = vpop.f32.mrf.mxu3  ;;  %v5241_v62 = vld [vmem:[#allocation11 + $0x10] sm:$0xf]  ;;  %v2177_v42 = vmax.f32 %v1834_v22, 0.0  ;;  %v5713_v21 = vld [vmem:[#allocation11 + $0x3c0] sm:$0xf] }
 0x171   :  { %v5305_v3 = vld [vmem:[#allocation11 + $0x90] sm:$0xf]  ;;  %v6618_v36 = vld [vmem:[#allocation11 + $0x334] sm:$0xf0] }
 0x172   :  { %3763 = vmatpush.bf16.msra.mxu3 %v5346_v63  ;;  %3789 = vmatpush.bf16.msrb.mxu1 %v5474_v4  ;;  %v6518_v63 = vld [vmem:[#allocation11 + $0x14] sm:$0xf0] }
 0x173   :  { %v1952_v57 = vpop.f32.mrf.mxu0  ;;  %v6534_v4 = vld [vmem:[#allocation11 + $0x94] sm:$0xf0] }
 0x174   :  { %3751 = vmatpush.bf16.msra.mxu2 %v5274_v11  ;;  %3777 = vmatpush.bf16.msrb.mxu0 %v5402_v15  ;;  %v5242_v11 = vor.u32 %v6518_v63, %v5241_v62  ;;  %v6532_v15 = vld [vmem:[#allocation11 + $0x84] sm:$0xf0]  ;;  %v5602_v62 = vor.u32 %v6608_v56, %v5601_v55  ;;  %v5529_v63 = vld [vmem:[#allocation11 + $0x250] sm:$0xf]  ;;  %v5569_v56 = vld [vmem:[#allocation11 + $0x2a0] sm:$0xf] }
 0x175   :  { %v1965_v59 = vpop.f32.mrf.mxu1  ;;  %v5298_v32 = vor.u32 %v6532_v15, %v5297_v14  ;;  %v6640_v57 = vld [vmem:[#allocation11 + $0x3e4] sm:$0xf0] }
 0x176   :  { %3764 = vmatpush.bf16.msra.mxu3 %v5338_v12  ;;  %3790 = vmatpush.bf16.msrb.mxu1 %v5466_v16  ;;  %v5306_v12 = vor.u32 %v6534_v4, %v5305_v3  ;;  %v5370_v16 = vor.u32 %v6550_v7, %v5369_v5  ;;  %v1926_v18 = vpop.f32.mrf.mxu2  ;;  %v7115_v59 = vpack.c.bf16 %v2176_v37, %v2176_v37  ;;  %v5593_v5 = vld [vmem:[#allocation11 + $0x2d0] sm:$0xf]  ;;  %v6588_v14 = vld [vmem:[#allocation11 + $0x244] sm:$0xf0] }
 0x177   :  { %v5666_v3 = vor.u32 %v6624_v24, %v5665_v58  ;;  %v5730_v4 = vor.u32 %v6640_v57, %v5729_v46  ;;  %v5657_v7 = vld [vmem:[#allocation11 + $0x350] sm:$0xf]  ;;  %v6604_v18 = vld [vmem:[#allocation11 + $0x2c4] sm:$0xf0]  ;;  %v5633_v24 = vld [vmem:[#allocation11 + $0x320] sm:$0xf] }
 0x178   :  { %3752 = vmatpush.bf16.msra.mxu2 %v5266_v23  ;;  %3778 = vmatpush.bf16.msrb.mxu0 %v5394_v29  ;;  %v1939_v19 = vpop.f32.mrf.mxu3  ;;  %v6564_v23 = vld [vmem:[#allocation11 + $0x184] sm:$0xf0]  ;;  %v6610_v29 = vld [vmem:[#allocation11 + $0x2f4] sm:$0xf0]  ;;  %v5658_v15 = vor.u32 %v6622_v8, %v5657_v7  ;;  %v5705_v37 = vld [vmem:[#allocation11 + $0x3b0] sm:$0xf] }
 0x179   :  { %v5649_v19 = vld [vmem:[#allocation11 + $0x340] sm:$0xf]  ;;  %v6600_v58 = vld [vmem:[#allocation11 + $0x2a4] sm:$0xf0]  ;;  %v5561_v8 = vld [vmem:[#allocation11 + $0x290] sm:$0xf] }
 0x17a   :  { %3765 = vmatpush.bf16.msra.mxu3 %v5330_v25  ;;  %3791 = vmatpush.bf16.msrb.mxu1 %v5458_v30  ;;  %v5545_v25 = vld [vmem:[#allocation11 + $0x270] sm:$0xf]  ;;  %v6616_v46 = vld [vmem:[#allocation11 + $0x324] sm:$0xf0]  ;;  %v5697_v57 = vld [vmem:[#allocation11 + $0x3a0] sm:$0xf] }
 0x17b   :  { %v5673_v30 = vld [vmem:[#allocation11 + $0x370] sm:$0xf]  ;;  %v5546_v44 = vor.u32 %v6594_v26, %v5545_v25  ;;  %v5522_v25 = vor.u32 %v6588_v14, %v5521_v13  ;;  %v6614_v13 = vld [vmem:[#allocation11 + $0x314] sm:$0xf0] }
 0x17c   :  { %3753 = vmatpush.bf16.msra.mxu2 %v5258_v40  ;;  %3779 = vmatpush.bf16.msrb.mxu0 %v5386_v48  ;;  %v5426_v40 = vor.u32 %v6564_v23, %v5425_v43  ;;  %v5610_v48 = vor.u32 %v6610_v29, %v5609_v28  ;;  %v5674_v53 = vor.u32 %v6626_v34, %v5673_v30  ;;  %v6636_v43 = vld [vmem:[#allocation11 + $0x3c4] sm:$0xf0]  ;;  %v5513_v28 = vld [vmem:[#allocation11 + $0x230] sm:$0xf]  ;;  %v6586_v29 = vld [vmem:[#allocation11 + $0x234] sm:$0xf0] }
 0x17d   :  { %v5650_v30 = vor.u32 %v6620_v20, %v5649_v19  ;;  %v6602_v34 = vld [vmem:[#allocation11 + $0x2b4] sm:$0xf0]  ;;  %v5689_v14 = vld [vmem:[#allocation11 + $0x390] sm:$0xf]  ;;  %v6580_v19 = vld [vmem:[#allocation11 + $0x204] sm:$0xf0] }
 0x17e   :  { %3766 = vmatpush.bf16.msra.mxu3 %v5322_v41  ;;  %3792 = vmatpush.bf16.msrb.mxu1 %v5450_v49  ;;  %v2178_v41 = vmax.f32 %v7081_v27, 0.0  ;;  %v5537_v49 = vld [vmem:[#allocation11 + $0x260] sm:$0xf] }
 0x17f   :  { %v5553_v20 = vld [vmem:[#allocation11 + $0x280] sm:$0xf] }
 0x180   :  { %3754 = vmatpush.bf16.msra.mxu2 %v5250_v60  ;;  %3780 = vmatpush.bf16.msrb.mxu0 %v5378_v1  ;;  %v7117_v60 = vpack.c.bf16 %v2175_v39, %v2175_v39  ;;  %v7119_v27 = vpack.c.bf16 %v2178_v41, %v2178_v41  ;;  %v6590_v1 = vld [vmem:[#allocation11 + $0x254] sm:$0xf0] }
 0x181   :  { %v6634_v39 = vld [vmem:[#allocation11 + $0x3b4] sm:$0xf0] }
 0x182   :  { %3767 = vmatpush.bf16.msra.mxu3 %v5314_v61  ;;  %3793 = vmatpush.bf16.msrb.mxu1 %v5442_v2  ;;  %v5538_v61 = vor.u32 %v6592_v52, %v5537_v49  ;;  %v7121_v2 = vpack.c.bf16 %v2177_v42, %v2177_v42  ;;  %v5514_v42 = vor.u32 %v6586_v29, %v5513_v28  ;;  %v6584_v49 = vld [vmem:[#allocation11 + $0x224] sm:$0xf0] }
 0x183   :  { %v5642_v52 = vor.u32 %v6618_v36, %v5641_v35  ;;  %v6612_v29 = vld [vmem:[#allocation11 + $0x304] sm:$0xf0]  ;;  %v6658_v35 = vld [vmem:[#allocation11 + $0x474] sm:$0xf0]  ;;  %v5865_v36 = vld [vmem:[#allocation11 + $0x4f0] sm:$0xf] }
 0x184   :  { %3755 = vmatpush.bf16.msra.mxu2 %v5242_v11  ;;  %3781 = vmatpush.bf16.msrb.mxu0 %v5370_v16  ;;  %v5530_v11 = vor.u32 %v6590_v1, %v5529_v63  ;;  %v5722_v16 = vor.u32 %v6638_v10, %v5721_v9  ;;  %v6598_v9 = vld [vmem:[#allocation11 + $0x294] sm:$0xf0]  ;;  %v5625_v10 = vld [vmem:[#allocation11 + $0x310] sm:$0xf] }
 0x186   :  { %3768 = vmatpush.bf16.msra.mxu3 %v5306_v12  ;;  %3794 = vmatpush.bf16.msrb.mxu1 %v5434_v17  ;;  %v5594_v12 = vor.u32 %v6606_v6, %v5593_v5  ;;  %v5585_v17 = vld [vmem:[#allocation11 + $0x2c0] sm:$0xf]  ;;  %v6582_v5 = vld [vmem:[#allocation11 + $0x214] sm:$0xf0]  ;;  %v5634_v6 = vor.u32 %v6616_v46, %v5633_v24  ;;  %v6656_v46 = vld [vmem:[#allocation11 + $0x464] sm:$0xf0] }
 0x187   :  { %v5586_v26 = vor.u32 %v6604_v18, %v5585_v17  ;;  %v5562_v18 = vor.u32 %v6598_v9, %v5561_v8  ;;  %v5793_v24 = vld [vmem:[#allocation11 + $0x460] sm:$0xf]  ;;  %v5785_v9 = vld [vmem:[#allocation11 + $0x450] sm:$0xf] }
 0x188   :  { %3756 = vmatpush.bf16.msra.mxu2 %v5234_v31  ;;  %3782 = vmatpush.bf16.msrb.mxu0 %v5362_v47  ;;  %v7127_v22 = vpop.f32.mrf.mxu0  ;;  %v5714_v31 = vor.u32 %v6636_v43, %v5713_v21  ;;  %v6786_v47 = vld [vmem:[#allocation10] sm:$0xff]  ;;  %v6596_v21 = vld [vmem:[#allocation11 + $0x284] sm:$0xf0]  ;;  %v5626_v43 = vor.u32 %v6614_v13, %v5625_v10  ;;  %v6654_v10 = vld [vmem:[#allocation11 + $0x454] sm:$0xf0] }
 0x189   :  { %v453_v41 = vperm.slane %v6786_v47, 6 }
 0x18a   :  { %3769 = vmatpush.bf16.msra.mxu3 %v5298_v32  ;;  %3795 = vmatpush.bf16.msrb.mxu1 %v5426_v40  ;;  %v7129_v23 = vpop.f32.mrf.mxu1  ;;  %v5577_v32 = vld [vmem:[#allocation11 + $0x2b0] sm:$0xf]  ;;  %v454_v40 = vperm.slane %v6786_v47, 7 }
 0x18b   :  { %3757 = vmatmul.bf16.vlgmr.msra.gmra.mxu2 %v7117_v60  ;;  %3783 = vmatmul.bf16.vlgmr.msrb.gmra.mxu0 %v7121_v2 }
 0x18c   :  { %3801 = vmatpush.bf16.msrb.mxu2 %v5546_v44  ;;  %3827 = vmatpush.bf16.msra.mxu0 %v5674_v53  ;;  %v5578_v44 = vor.u32 %v6602_v34, %v5577_v32  ;;  %v5706_v53 = vor.u32 %v6634_v39, %v5705_v37  ;;  %v6628_v32 = vld [vmem:[#allocation11 + $0x384] sm:$0xf0]  ;;  %v5801_v34 = vld [vmem:[#allocation11 + $0x470] sm:$0xf]  ;;  %v6674_v37 = vld [vmem:[#allocation11 + $0x4f4] sm:$0xf0] }
 0x18d   :  { %3770 = vmatmul.bf16.vlgmr.msra.gmra.mxu3 %v7115_v59  ;;  %3796 = vmatmul.bf16.vlgmr.msrb.gmra.mxu1 %v7119_v27  ;;  %v5929_v39 = vld [vmem:[#allocation11 + $0x570] sm:$0xf] }
 0x18e   :  { %3814 = vmatpush.bf16.msrb.mxu3 %v5610_v48  ;;  %3840 = vmatpush.bf16.msra.mxu1 %v5738_v54  ;;  %v5505_v48 = vld [vmem:[#allocation11 + $0x220] sm:$0xf]  ;;  %v7131_v54 = vpop.f32.mrf.mxu2 }
 0x18f   :  { %v5506_v1 = vor.u32 %v6584_v49, %v5505_v48  ;;  %v2180_v48 = vmax.f32 %v7093_v45, 0.0  ;;  %v2179_v49 = vmax.f32 %v7095_v0, 0.0  ;;  %v6688_v45 = vld [vmem:[#allocation11 + $0x564] sm:$0xf0] }
 0x190   :  { %3802 = vmatpush.bf16.msrb.mxu2 %v5538_v61  ;;  %3828 = vmatpush.bf16.msra.mxu0 %v5666_v3  ;;  %v7133_v55 = vpop.f32.mrf.mxu3  ;;  %v6632_v61 = vld [vmem:[#allocation11 + $0x3a4] sm:$0xf0]  ;;  %v5570_v3 = vor.u32 %v6600_v58, %v5569_v56  ;;  %v5802_v56 = vor.u32 %v6658_v35, %v5801_v34  ;;  %v5866_v58 = vor.u32 %v6674_v37, %v5865_v36  ;;  %v7153_v34 = vld [vmem:[#allocation10 + $0x8] sm:$0xff] }
 0x191   :  { %v5698_v7 = vor.u32 %v6632_v61, %v5697_v57  ;;  %v6704_v0 = vld [vmem:[#allocation11 + $0x5e4] sm:$0xf0] }
 0x192   :  { %3815 = vmatpush.bf16.msrb.mxu3 %v5602_v62  ;;  %3841 = vmatpush.bf16.msra.mxu1 %v5730_v4  ;;  %v2004_v62 = vpop.f32.mrf.mxu0  ;;  %v2017_v63 = vpop.f32.mrf.mxu1  ;;  %v5497_v4 = vld [vmem:[#allocation11 + $0x210] sm:$0xf] }
 0x193   :  { %v5498_v17 = vor.u32 %v6582_v5, %v5497_v4  ;;  %v5857_v62 = vld [vmem:[#allocation11 + $0x4e0] sm:$0xf]  ;;  %v6672_v63 = vld [vmem:[#allocation11 + $0x4e4] sm:$0xf0]  ;;  %v7141_v4 = vpack.c.bf16 %v2180_v48, %v2180_v48  ;;  %v7143_v5 = vpack.c.bf16 %v2179_v49, %v2179_v49  ;;  %v6666_v48 = vld [vmem:[#allocation11 + $0x4b4] sm:$0xf0] }
 0x194   :  { %3803 = vmatpush.bf16.msrb.mxu2 %v5530_v11  ;;  %3829 = vmatpush.bf16.msra.mxu0 %v5658_v15  ;;  %v1951_v11 = vadd.f32 %v7101_v33, %v454_v40  ;;  %v6630_v15 = vld [vmem:[#allocation11 + $0x394] sm:$0xf0]  ;;  %v5617_v33 = vld [vmem:[#allocation11 + $0x300] sm:$0xf]  ;;  %v5554_v40 = vor.u32 %v6596_v21, %v5553_v20  ;;  %v5858_v8 = vor.u32 %v6672_v63, %v5857_v62  ;;  %v5897_v49 = vld [vmem:[#allocation11 + $0x530] sm:$0xf] }
 0x195   :  { %v5786_v20 = vor.u32 %v6654_v10, %v5785_v9  ;;  %v6696_v9 = vld [vmem:[#allocation11 + $0x5a4] sm:$0xf0]  ;;  %v458_v10 = vperm.slane %v7153_v34, 3 }
 0x196   :  { %3816 = vmatpush.bf16.msrb.mxu3 %v5594_v12  ;;  %3842 = vmatpush.bf16.msra.mxu1 %v5722_v16  ;;  %v1925_v12 = vadd.f32 %v7106_v50, %v453_v41  ;;  %v5489_v16 = vld [vmem:[#allocation11 + $0x200] sm:$0xf]  ;;  %v6690_v41 = vld [vmem:[#allocation11 + $0x574] sm:$0xf0] }
 0x197   :  { %v5681_v50 = vld [vmem:[#allocation11 + $0x380] sm:$0xf]  ;;  %v5490_v47 = vor.u32 %v6580_v19, %v5489_v16  ;;  %v5930_v57 = vor.u32 %v6690_v41, %v5929_v39  ;;  %v5913_v16 = vld [vmem:[#allocation11 + $0x550] sm:$0xf]  ;;  %v6702_v19 = vld [vmem:[#allocation11 + $0x5d4] sm:$0xf0] }
 0x198   :  { %3804 = vmatpush.bf16.msrb.mxu2 %v5522_v25  ;;  %3830 = vmatpush.bf16.msra.mxu0 %v5650_v30  ;;  %v5690_v25 = vor.u32 %v6630_v15, %v5689_v14  ;;  %v1991_v28 = vpop.f32.mrf.mxu3  ;;  %v1964_v30 = vadd.f32 %v7103_v38, %v1951_v11  ;;  %v5618_v38 = vor.u32 %v6612_v29, %v5617_v33  ;;  %v5849_v14 = vld [vmem:[#allocation11 + $0x4d0] sm:$0xf]  ;;  %v6670_v15 = vld [vmem:[#allocation11 + $0x4d4] sm:$0xf0]  ;;  %v5841_v33 = vld [vmem:[#allocation11 + $0x4c0] sm:$0xf] }
 0x199   :  { %v5850_v21 = vor.u32 %v6670_v15, %v5849_v14  ;;  %v6668_v29 = vld [vmem:[#allocation11 + $0x4c4] sm:$0xf0] }
 0x19a   :  { %3817 = vmatpush.bf16.msrb.mxu3 %v5586_v26  ;;  %3843 = vmatpush.bf16.msra.mxu1 %v5714_v31  ;;  %v1978_v26 = vpop.f32.mrf.mxu2  ;;  %v1938_v31 = vadd.f32 %v7108_v51, %v1925_v12  ;;  %v5682_v51 = vor.u32 %v6628_v32, %v5681_v50  ;;  %v5905_v50 = vld [vmem:[#allocation11 + $0x540] sm:$0xf]  ;;  %v6700_v32 = vld [vmem:[#allocation11 + $0x5c4] sm:$0xf0]  ;;  %v5842_v39 = vor.u32 %v6668_v29, %v5841_v33  ;;  %v6678_v33 = vld [vmem:[#allocation11 + $0x514] sm:$0xf0] }
 0x19b   :  { %v5945_v29 = vld [vmem:[#allocation11 + $0x590] sm:$0xf] }
 0x19c   :  { %3805 = vmatpush.bf16.msrb.mxu2 %v5514_v42  ;;  %3831 = vmatpush.bf16.msra.mxu0 %v5642_v52  ;;  %v5993_v42 = vld [vmem:[#allocation11 + $0x5f0] sm:$0xf]  ;;  %v2182_v52 = vmax.f32 %v1964_v30, 0.0  ;;  %v6684_v30 = vld [vmem:[#allocation11 + $0x544] sm:$0xf0] }
 0x19d   :  { %v5906_v41 = vor.u32 %v6684_v30, %v5905_v50 }
 0x19e   :  { %3818 = vmatpush.bf16.msrb.mxu3 %v5578_v44  ;;  %3844 = vmatpush.bf16.msra.mxu1 %v5706_v53  ;;  %v6706_v44 = vld [vmem:[#allocation11 + $0x5f4] sm:$0xf0]  ;;  %v2181_v53 = vmax.f32 %v1938_v31, 0.0  ;;  %v5969_v31 = vld [vmem:[#allocation11 + $0x5c0] sm:$0xf] }
 0x19f   :  { %v5994_v61 = vor.u32 %v6706_v44, %v5993_v42  ;;  %v5970_v42 = vor.u32 %v6700_v32, %v5969_v31  ;;  %v5833_v44 = vld [vmem:[#allocation11 + $0x4b0] sm:$0xf]  ;;  %v5745_v31 = vld [vmem:[#allocation11 + $0x400] sm:$0xf] }
 0x1a0   :  { %3806 = vmatpush.bf16.msrb.mxu2 %v5506_v1  ;;  %3832 = vmatpush.bf16.msra.mxu0 %v5634_v6  ;;  %v5921_v1 = vld [vmem:[#allocation11 + $0x560] sm:$0xf]  ;;  %v7145_v6 = vpack.c.bf16 %v2182_v52, %v2182_v52  ;;  %v7147_v11 = vpack.c.bf16 %v2181_v53, %v2181_v53  ;;  %v6698_v52 = vld [vmem:[#allocation11 + $0x5b4] sm:$0xf0]  ;;  %v456_v53 = vperm.slane %v7153_v34, 1 }
 0x1a1   :  { %v5922_v12 = vor.u32 %v6688_v45, %v5921_v1  ;;  %v5825_v45 = vld [vmem:[#allocation11 + $0x4a0] sm:$0xf] }
 0x1a2   :  { %3819 = vmatpush.bf16.msrb.mxu3 %v5570_v3  ;;  %3845 = vmatpush.bf16.msra.mxu1 %v5698_v7  ;;  %v5985_v3 = vld [vmem:[#allocation11 + $0x5e0] sm:$0xf]  ;;  %v5794_v7 = vor.u32 %v6656_v46, %v5793_v24  ;;  %v5834_v24 = vor.u32 %v6666_v48, %v5833_v44 }
 0x1a3   :  { %v5986_v13 = vor.u32 %v6704_v0, %v5985_v3  ;;  %v5761_v46 = vld [vmem:[#allocation11 + $0x420] sm:$0xf]  ;;  %v6664_v3 = vld [vmem:[#allocation11 + $0x4a4] sm:$0xf0] }
 0x1a4   :  { %3807 = vmatpush.bf16.msrb.mxu2 %v5498_v17  ;;  %3833 = vmatpush.bf16.msra.mxu0 %v5626_v43  ;;  %v6686_v17 = vld [vmem:[#allocation11 + $0x554] sm:$0xf0]  ;;  %v5777_v43 = vld [vmem:[#allocation11 + $0x440] sm:$0xf] }
 0x1a5   :  { %v5914_v26 = vor.u32 %v6686_v17, %v5913_v16  ;;  %v5889_v0 = vld [vmem:[#allocation11 + $0x520] sm:$0xf]  ;;  %v5826_v17 = vor.u32 %v6664_v3, %v5825_v45  ;;  %v6770_v45 = vld [vmem:[#allocation11 + $0x7f4] sm:$0xf0] }
 0x1a6   :  { %3820 = vmatpush.bf16.msrb.mxu3 %v5562_v18  ;;  %3846 = vmatpush.bf16.msra.mxu1 %v5690_v25  ;;  %v5977_v18 = vld [vmem:[#allocation11 + $0x5d0] sm:$0xf]  ;;  %v6652_v25 = vld [vmem:[#allocation11 + $0x444] sm:$0xf0] }
 0x1a7   :  { %v5978_v28 = vor.u32 %v6702_v19, %v5977_v18  ;;  %v5778_v37 = vor.u32 %v6652_v25, %v5777_v43  ;;  %v5753_v18 = vld [vmem:[#allocation11 + $0x410] sm:$0xf]  ;;  %v6646_v19 = vld [vmem:[#allocation11 + $0x414] sm:$0xf0] }
 0x1a8   :  { %3808 = vmatpush.bf16.msrb.mxu2 %v5490_v47  ;;  %3834 = vmatpush.bf16.msra.mxu0 %v5618_v38  ;;  %v2054_v35 = vpop.f32.mrf.mxu0  ;;  %v5769_v47 = vld [vmem:[#allocation11 + $0x430] sm:$0xf]  ;;  %v6682_v38 = vld [vmem:[#allocation11 + $0x534] sm:$0xf0] }
 0x1a9   :  { %v5817_v25 = vld [vmem:[#allocation11 + $0x490] sm:$0xf]  ;;  %v2055_v50 = vadd.f32 %v2054_v35, %v458_v10  ;;  %v5873_v35 = vld [vmem:[#allocation11 + $0x500] sm:$0xf] }
 0x1aa   :  { %3821 = vmatpush.bf16.msrb.mxu3 %v5554_v40  ;;  %3847 = vmatpush.bf16.msra.mxu1 %v5682_v51  ;;  %v7155_v36 = vpop.f32.mrf.mxu1  ;;  %v6650_v40 = vld [vmem:[#allocation11 + $0x434] sm:$0xf0]  ;;  %v5961_v51 = vld [vmem:[#allocation11 + $0x5b0] sm:$0xf] }
 0x1ab   :  { %3809 = vmatmul.bf16.vlgmr.msrb.gmra.mxu2 %v7143_v5  ;;  %3835 = vmatmul.bf16.vlgmr.msra.gmra.mxu0 %v7147_v11  ;;  %v5962_v62 = vor.u32 %v6698_v52, %v5961_v51  ;;  %v5937_v51 = vld [vmem:[#allocation11 + $0x580] sm:$0xf]  ;;  %v6692_v52 = vld [vmem:[#allocation11 + $0x584] sm:$0xf0] }
 0x1ac   :  { %3853 = vmatpush.bf16.msra.mxu2 %v5802_v56  ;;  %3879 = vmatpush.bf16.msrb.mxu0 %v5930_v57  ;;  %v455_v56 = vperm.slane %v7153_v34, 0  ;;  %v6648_v57 = vld [vmem:[#allocation11 + $0x424] sm:$0xf0] }
 0x1ad   :  { %3822 = vmatmul.bf16.vlgmr.msrb.gmra.mxu3 %v7141_v4  ;;  %3848 = vmatmul.bf16.vlgmr.msra.gmra.mxu1 %v7145_v6  ;;  %v5762_v16 = vor.u32 %v6648_v57, %v5761_v46  ;;  %v6738_v46 = vld [vmem:[#allocation11 + $0x6f4] sm:$0xf0]  ;;  %v6185_v57 = vld [vmem:[#allocation11 + $0x770] sm:$0xf] }
 0x1ae   :  { %3866 = vmatpush.bf16.msra.mxu3 %v5866_v58  ;;  %3892 = vmatpush.bf16.msrb.mxu1 %v5994_v61  ;;  %v5770_v58 = vor.u32 %v6650_v40, %v5769_v47  ;;  %v5898_v61 = vor.u32 %v6682_v38, %v5897_v49  ;;  %v2028_v63 = vpop.f32.mrf.mxu2  ;;  %v5809_v47 = vld [vmem:[#allocation11 + $0x480] sm:$0xf]  ;;  %v6660_v40 = vld [vmem:[#allocation11 + $0x484] sm:$0xf0] }
 0x1af   :  { %v6676_v38 = vld [vmem:[#allocation11 + $0x504] sm:$0xf0] }
 0x1b0   :  { %3854 = vmatpush.bf16.msra.mxu2 %v5794_v7  ;;  %3880 = vmatpush.bf16.msrb.mxu0 %v5922_v12  ;;  %v2041_v1 = vpop.f32.mrf.mxu3  ;;  %v6680_v7 = vld [vmem:[#allocation11 + $0x524] sm:$0xf0]  ;;  %v457_v12 = vperm.slane %v7153_v34, 2  ;;  %v2056_v14 = vpop.f32.mrf.mxu0 }
 0x1b2   :  { %3867 = vmatpush.bf16.msra.mxu3 %v5858_v8  ;;  %3893 = vmatpush.bf16.msrb.mxu1 %v5986_v13  ;;  %v5953_v8 = vld [vmem:[#allocation11 + $0x5a0] sm:$0xf]  ;;  %v2003_v13 = vadd.f32 %v7127_v22, %v456_v53  ;;  %v2069_v15 = vpop.f32.mrf.mxu1  ;;  %v6694_v22 = vld [vmem:[#allocation11 + $0x594] sm:$0xf0]  ;;  %v2029_v30 = vadd.f32 %v2028_v63, %v457_v12  ;;  %v6249_v63 = vld [vmem:[#allocation11 + $0x7f0] sm:$0xf] }
 0x1b3   :  { %v5954_v43 = vor.u32 %v6696_v9, %v5953_v8  ;;  %v5946_v44 = vor.u32 %v6694_v22, %v5945_v29  ;;  %v6722_v53 = vld [vmem:[#allocation11 + $0x674] sm:$0xf0]  ;;  %v5938_v8 = vor.u32 %v6692_v52, %v5937_v51  ;;  %v6049_v9 = vld [vmem:[#allocation11 + $0x660] sm:$0xf]  ;;  %v6041_v29 = vld [vmem:[#allocation11 + $0x650] sm:$0xf] }
 0x1b4   :  { %3855 = vmatpush.bf16.msra.mxu2 %v5786_v20  ;;  %3881 = vmatpush.bf16.msrb.mxu0 %v5914_v26  ;;  %v1977_v20 = vadd.f32 %v7131_v54, %v455_v56  ;;  %v6662_v26 = vld [vmem:[#allocation11 + $0x494] sm:$0xf0]  ;;  %v2016_v32 = vadd.f32 %v7129_v23, %v2003_v13  ;;  %v6644_v54 = vld [vmem:[#allocation11 + $0x404] sm:$0xf0]  ;;  %v6057_v23 = vld [vmem:[#allocation11 + $0x670] sm:$0xf]  ;;  %v2068_v56 = vadd.f32 %v7155_v36, %v2055_v50 }
 0x1b5   :  { %v6058_v10 = vor.u32 %v6722_v53, %v6057_v23  ;;  %v6113_v12 = vld [vmem:[#allocation11 + $0x6e0] sm:$0xf]  ;;  %v6736_v13 = vld [vmem:[#allocation11 + $0x6e4] sm:$0xf0]  ;;  %v6718_v22 = vld [vmem:[#allocation11 + $0x654] sm:$0xf0] }
 0x1b6   :  { %3868 = vmatpush.bf16.msra.mxu3 %v5850_v21  ;;  %3894 = vmatpush.bf16.msrb.mxu1 %v5978_v28  ;;  %v5890_v21 = vor.u32 %v6680_v7, %v5889_v0  ;;  %v5881_v28 = vld [vmem:[#allocation11 + $0x510] sm:$0xf]  ;;  %v2030_v48 = vpop.f32.mrf.mxu2  ;;  %v2184_v3 = vmax.f32 %v2016_v32, 0.0  ;;  %v5874_v7 = vor.u32 %v6676_v38, %v5873_v35  ;;  %v2186_v14 = vmax.f32 %v2068_v56, 0.0  ;;  %v6097_v38 = vld [vmem:[#allocation11 + $0x6c0] sm:$0xf] }
 0x1b7   :  { %v6105_v32 = vld [vmem:[#allocation11 + $0x6d0] sm:$0xf]  ;;  %v6716_v48 = vld [vmem:[#allocation11 + $0x644] sm:$0xf0]  ;;  %v6161_v52 = vld [vmem:[#allocation11 + $0x740] sm:$0xf] }
 0x1b8   :  { %3856 = vmatpush.bf16.msra.mxu2 %v5778_v37  ;;  %3882 = vmatpush.bf16.msrb.mxu0 %v5906_v41  ;;  %v5754_v37 = vor.u32 %v6646_v19, %v5753_v18  ;;  %v1990_v41 = vadd.f32 %v7133_v55, %v1977_v20  ;;  %v2043_v49 = vpop.f32.mrf.mxu3  ;;  %v5746_v55 = vor.u32 %v6644_v54, %v5745_v31  ;;  %v6177_v18 = vld [vmem:[#allocation11 + $0x760] sm:$0xf]  ;;  %v6752_v19 = vld [vmem:[#allocation11 + $0x764] sm:$0xf0]  ;;  %v6750_v54 = vld [vmem:[#allocation11 + $0x754] sm:$0xf0] }
 0x1b9   :  { %v6241_v20 = vld [vmem:[#allocation11 + $0x7e0] sm:$0xf]  ;;  %v7170_v50 = vpack.c.bf16 %v2186_v14, %v2186_v14  ;;  %v6732_v51 = vld [vmem:[#allocation11 + $0x6c4] sm:$0xf0] }
 0x1ba   :  { %3869 = vmatpush.bf16.msra.mxu3 %v5842_v39  ;;  %3895 = vmatpush.bf16.msrb.mxu1 %v5970_v42  ;;  %v5818_v39 = vor.u32 %v6662_v26, %v5817_v25  ;;  %v5882_v42 = vor.u32 %v6678_v33, %v5881_v28  ;;  %v2183_v0 = vmax.f32 %v1990_v41, 0.0  ;;  %v6114_v28 = vor.u32 %v6736_v13, %v6113_v12  ;;  %v6748_v23 = vld [vmem:[#allocation11 + $0x744] sm:$0xf0]  ;;  %v6225_v53 = vld [vmem:[#allocation11 + $0x7c0] sm:$0xf] }
 0x1bb   :  { %v6178_v33 = vor.u32 %v6752_v19, %v6177_v18  ;;  %v6042_v41 = vor.u32 %v6718_v22, %v6041_v29  ;;  %v6764_v56 = vld [vmem:[#allocation11 + $0x7c4] sm:$0xf0]  ;;  %v459_v12 = vperm.slane %v7153_v34, 4  ;;  %v6017_v13 = vld [vmem:[#allocation11 + $0x620] sm:$0xf] }
 0x1bc   :  { %3857 = vmatpush.bf16.msra.mxu2 %v5770_v58  ;;  %3883 = vmatpush.bf16.msrb.mxu0 %v5898_v61  ;;  %v2042_v58 = vadd.f32 %v2041_v1, %v2029_v30  ;;  %v5810_v61 = vor.u32 %v6660_v40, %v5809_v47  ;;  %v6720_v1 = vld [vmem:[#allocation11 + $0x664] sm:$0xf0]  ;;  %v7168_v25 = vpack.c.bf16 %v2183_v0, %v2183_v0  ;;  %v6233_v47 = vld [vmem:[#allocation11 + $0x7d0] sm:$0xf]  ;;  %v6766_v40 = vld [vmem:[#allocation11 + $0x7d4] sm:$0xf0] }
 0x1bd   :  { %v6050_v26 = vor.u32 %v6720_v1, %v6049_v9  ;;  %v6234_v35 = vor.u32 %v6766_v40, %v6233_v47  ;;  %v6153_v0 = vld [vmem:[#allocation11 + $0x730] sm:$0xf]  ;;  %v6762_v9 = vld [vmem:[#allocation11 + $0x7b4] sm:$0xf0]  ;;  %v6712_v14 = vld [vmem:[#allocation11 + $0x624] sm:$0xf0] }
 0x1be   :  { %3870 = vmatpush.bf16.msra.mxu3 %v5834_v24  ;;  %3896 = vmatpush.bf16.msrb.mxu1 %v5962_v62  ;;  %v6121_v24 = vld [vmem:[#allocation11 + $0x6f0] sm:$0xf]  ;;  %v6754_v62 = vld [vmem:[#allocation11 + $0x774] sm:$0xf0]  ;;  %v2185_v15 = vmax.f32 %v2042_v58, 0.0 }
 0x1bf   :  { %v6122_v36 = vor.u32 %v6738_v46, %v6121_v24  ;;  %v6081_v19 = vld [vmem:[#allocation11 + $0x6a0] sm:$0xf]  ;;  %v6073_v40 = vld [vmem:[#allocation11 + $0x690] sm:$0xf] }
 0x1c0   :  { %3858 = vmatpush.bf16.msra.mxu2 %v5762_v16  ;;  %3884 = vmatpush.bf16.msrb.mxu0 %v5890_v21  ;;  %v6186_v16 = vor.u32 %v6754_v62, %v6185_v57  ;;  %v6768_v21 = vld [vmem:[#allocation11 + $0x7e4] sm:$0xf0]  ;;  %v7172_v30 = vpack.c.bf16 %v2185_v15, %v2185_v15  ;;  %v6098_v57 = vor.u32 %v6732_v51, %v6097_v38  ;;  %v6758_v38 = vld [vmem:[#allocation11 + $0x794] sm:$0xf0]  ;;  %v6001_v51 = vld [vmem:[#allocation11 + $0x600] sm:$0xf] }
 0x1c1   :  { %v6242_v31 = vor.u32 %v6768_v21, %v6241_v20  ;;  %v6162_v62 = vor.u32 %v6748_v23, %v6161_v52  ;;  %v6728_v20 = vld [vmem:[#allocation11 + $0x6a4] sm:$0xf0]  ;;  %v6145_v21 = vld [vmem:[#allocation11 + $0x720] sm:$0xf] }
 0x1c2   :  { %3871 = vmatpush.bf16.msra.mxu3 %v5826_v17  ;;  %3897 = vmatpush.bf16.msrb.mxu1 %v5954_v43  ;;  %v6250_v17 = vor.u32 %v6770_v45, %v6249_v63  ;;  %v7166_v43 = vpack.c.bf16 %v2184_v3, %v2184_v3  ;;  %v6226_v63 = vor.u32 %v6764_v56, %v6225_v53  ;;  %v6089_v45 = vld [vmem:[#allocation11 + $0x6b0] sm:$0xf]  ;;  %v6730_v3 = vld [vmem:[#allocation11 + $0x6b4] sm:$0xf0]  ;;  %v6708_v53 = vld [vmem:[#allocation11 + $0x604] sm:$0xf0] }
 0x1c3   :  { %v6090_v1 = vor.u32 %v6730_v3, %v6089_v45  ;;  %v6065_v56 = vld [vmem:[#allocation11 + $0x680] sm:$0xf] }
 0x1c4   :  { %3859 = vmatpush.bf16.msra.mxu2 %v5754_v37  ;;  %3885 = vmatpush.bf16.msrb.mxu0 %v5882_v42  ;;  %v6734_v37 = vld [vmem:[#allocation11 + $0x6d4] sm:$0xf0]  ;;  %v6193_v45 = vld [vmem:[#allocation11 + $0x780] sm:$0xf] }
 0x1c5   :  { %v6106_v42 = vor.u32 %v6734_v37, %v6105_v32  ;;  %v6082_v32 = vor.u32 %v6728_v20, %v6081_v19  ;;  %v6009_v37 = vld [vmem:[#allocation11 + $0x610] sm:$0xf] }
 0x1c6   :  { %3872 = vmatpush.bf16.msra.mxu3 %v5818_v39  ;;  %3898 = vmatpush.bf16.msrb.mxu1 %v5946_v44  ;;  %v6169_v39 = vld [vmem:[#allocation11 + $0x750] sm:$0xf]  ;;  %v6033_v44 = vld [vmem:[#allocation11 + $0x640] sm:$0xf] }
 0x1c7   :  { %v6170_v49 = vor.u32 %v6750_v54, %v6169_v39  ;;  %v6034_v46 = vor.u32 %v6716_v48, %v6033_v44  ;;  %v6710_v39 = vld [vmem:[#allocation11 + $0x614] sm:$0xf0] }
 0x1c8   :  { %3860 = vmatpush.bf16.msra.mxu2 %v5746_v55  ;;  %3886 = vmatpush.bf16.msrb.mxu0 %v5874_v7  ;;  %v2106_v58 = vpop.f32.mrf.mxu0  ;;  %v6025_v55 = vld [vmem:[#allocation11 + $0x630] sm:$0xf]  ;;  %v6746_v7 = vld [vmem:[#allocation11 + $0x734] sm:$0xf0]  ;;  %v6010_v52 = vor.u32 %v6710_v39, %v6009_v37  ;;  %v5411_v37 = vld [vmem:[#allocation11 + $0x168] sm:$0xf0] }
 0x1c9   :  { %v6154_v15 = vor.u32 %v6746_v7, %v6153_v0  ;;  %v6756_v7 = vld [vmem:[#allocation11 + $0x784] sm:$0xf0]  ;;  %v6575_v39 = vld [vmem:[#allocation11 + $0x1e4] sm:$0xf] }
 0x1ca   :  { %3873 = vmatpush.bf16.msra.mxu3 %v5810_v61  ;;  %3899 = vmatpush.bf16.msrb.mxu1 %v5938_v8  ;;  %v7178_v24 = vpop.f32.mrf.mxu1  ;;  %v6714_v61 = vld [vmem:[#allocation11 + $0x634] sm:$0xf0]  ;;  %v6217_v8 = vld [vmem:[#allocation11 + $0x7b0] sm:$0xf]  ;;  %v6194_v19 = vor.u32 %v6756_v7, %v6193_v45  ;;  %v6539_v45 = vld [vmem:[#allocation11 + $0xc4] sm:$0xf] }
 0x1cb   :  { %3861 = vmatmul.bf16.vlgmr.msra.gmra.mxu2 %v7168_v25  ;;  %3887 = vmatmul.bf16.vlgmr.msrb.gmra.mxu0 %v7172_v30  ;;  %v5395_v7 = vld [vmem:[#allocation11 + $0x148] sm:$0xf0] }
 0x1cc   :  { %3905 = vmatpush.bf16.msrb.mxu2 %v6058_v10  ;;  %3931 = vmatpush.bf16.msra.mxu0 %v6186_v16  ;;  %v460_v10 = vperm.slane %v7153_v34, 5  ;;  %v6218_v16 = vor.u32 %v6762_v9, %v6217_v8  ;;  %v6529_v8 = vld [vmem:[#allocation11 + $0x74] sm:$0xf]  ;;  %v5291_v9 = vld [vmem:[#allocation11 + $0x78] sm:$0xf0] }
 0x1cd   :  { %3874 = vmatmul.bf16.vlgmr.msra.gmra.mxu3 %v7166_v43  ;;  %3900 = vmatmul.bf16.vlgmr.msrb.gmra.mxu1 %v7170_v50 }
 0x1ce   :  { %3918 = vmatpush.bf16.msrb.mxu3 %v6122_v36  ;;  %3944 = vmatpush.bf16.msra.mxu1 %v6250_v17  ;;  %v6026_v36 = vor.u32 %v6714_v61, %v6025_v55  ;;  %v2080_v17 = vpop.f32.mrf.mxu2  ;;  %v2107_v44 = vadd.f32 %v2106_v58, %v460_v10  ;;  %v6740_v58 = vld [vmem:[#allocation11 + $0x704] sm:$0xf0]  ;;  %v6545_v10 = vld [vmem:[#allocation11 + $0xf4] sm:$0xf] }
 0x1cf   :  { %v2081_v48 = vadd.f32 %v2080_v17, %v459_v12  ;;  %v6002_v12 = vor.u32 %v6708_v53, %v6001_v51  ;;  %v5339_v51 = vld [vmem:[#allocation11 + $0xd8] sm:$0xf0]  ;;  %v6573_v53 = vld [vmem:[#allocation11 + $0x1d4] sm:$0xf] }
 0x1d0   :  { %3906 = vmatpush.bf16.msrb.mxu2 %v6050_v26  ;;  %3932 = vmatpush.bf16.msra.mxu0 %v6178_v33  ;;  %v2093_v18 = vpop.f32.mrf.mxu3  ;;  %v6744_v26 = vld [vmem:[#allocation11 + $0x724] sm:$0xf0]  ;;  %v2108_v29 = vpop.f32.mrf.mxu0  ;;  %v2120_v3 = vadd.f32 %v7178_v24, %v2107_v44  ;;  %v6525_v44 = vld [vmem:[#allocation11 + $0x54] sm:$0xf] }
 0x1d1   :  { %v6760_v33 = vld [vmem:[#allocation11 + $0x7a4] sm:$0xf0]  ;;  %v6146_v54 = vor.u32 %v6744_v26, %v6145_v21  ;;  %v2094_v0 = vadd.f32 %v2093_v18, %v2081_v48  ;;  %v5294_v18 = vor.u32 %v6529_v8, %v5291_v9  ;;  %v6527_v26 = vld [vmem:[#allocation11 + $0x64] sm:$0xf]  ;;  %v5275_v48 = vld [vmem:[#allocation11 + $0x58] sm:$0xf0] }
 0x1d2   :  { %3919 = vmatpush.bf16.msrb.mxu3 %v6114_v28  ;;  %3945 = vmatpush.bf16.msra.mxu1 %v6242_v31  ;;  %v6209_v28 = vld [vmem:[#allocation11 + $0x7a0] sm:$0xf]  ;;  %v2121_v22 = vpop.f32.mrf.mxu1  ;;  %v6018_v31 = vor.u32 %v6712_v14, %v6017_v13  ;;  %v5419_v14 = vld [vmem:[#allocation11 + $0x178] sm:$0xf0]  ;;  %v2188_v20 = vmax.f32 %v2120_v3, 0.0 }
 0x1d3   :  { %v6210_v47 = vor.u32 %v6760_v33, %v6209_v28  ;;  %v2187_v24 = vmax.f32 %v2094_v0, 0.0  ;;  %v5283_v28 = vld [vmem:[#allocation11 + $0x68] sm:$0xf0]  ;;  %v6543_v22 = vld [vmem:[#allocation11 + $0xe4] sm:$0xf] }
 0x1d4   :  { %3907 = vmatpush.bf16.msrb.mxu2 %v6042_v41  ;;  %3933 = vmatpush.bf16.msra.mxu0 %v6170_v49  ;;  %v6726_v41 = vld [vmem:[#allocation11 + $0x694] sm:$0xf0]  ;;  %v5331_v3 = vld [vmem:[#allocation11 + $0xc8] sm:$0xf0]  ;;  %v6555_v0 = vld [vmem:[#allocation11 + $0x144] sm:$0xf] }
 0x1d5   :  { %v6742_v49 = vld [vmem:[#allocation11 + $0x714] sm:$0xf0]  ;;  %v6074_v23 = vor.u32 %v6726_v41, %v6073_v40  ;;  %v7183_v40 = vpack.c.bf16 %v2188_v20, %v2188_v20  ;;  %v7185_v41 = vpack.c.bf16 %v2187_v24, %v2187_v24  ;;  %v6571_v8 = vld [vmem:[#allocation11 + $0x1c4] sm:$0xf]  ;;  %v5459_v9 = vld [vmem:[#allocation11 + $0x1c8] sm:$0xf0] }
 0x1d6   :  { %3920 = vmatpush.bf16.msrb.mxu3 %v6106_v42  ;;  %3946 = vmatpush.bf16.msra.mxu1 %v6234_v35  ;;  %v6137_v42 = vld [vmem:[#allocation11 + $0x710] sm:$0xf]  ;;  %v2082_v61 = vpop.f32.mrf.mxu2  ;;  %v5323_v20 = vld [vmem:[#allocation11 + $0xb8] sm:$0xf0]  ;;  %v6553_v24 = vld [vmem:[#allocation11 + $0x134] sm:$0xf] }
 0x1d7   :  { %v6201_v35 = vld [vmem:[#allocation11 + $0x790] sm:$0xf]  ;;  %v6523_v61 = vld [vmem:[#allocation11 + $0x44] sm:$0xf] }
 0x1d8   :  { %3908 = vmatpush.bf16.msrb.mxu2 %v6034_v46  ;;  %3934 = vmatpush.bf16.msra.mxu0 %v6162_v62  ;;  %v6724_v46 = vld [vmem:[#allocation11 + $0x684] sm:$0xf0]  ;;  %v6202_v55 = vor.u32 %v6758_v38, %v6201_v35  ;;  %v2095_v62 = vpop.f32.mrf.mxu3  ;;  %v6541_v38 = vld [vmem:[#allocation11 + $0xd4] sm:$0xf] }
 0x1d9   :  { %v6066_v13 = vor.u32 %v6724_v46, %v6065_v56  ;;  %v5467_v56 = vld [vmem:[#allocation11 + $0x1d8] sm:$0xf0]  ;;  %v5278_v46 = vor.u32 %v6525_v44, %v5275_v48  ;;  %v5267_v62 = vld [vmem:[#allocation11 + $0x48] sm:$0xf0] }
 0x1da   :  { %3921 = vmatpush.bf16.msrb.mxu3 %v6098_v57  ;;  %3947 = vmatpush.bf16.msra.mxu1 %v6226_v63  ;;  %v6138_v57 = vor.u32 %v6742_v49, %v6137_v42  ;;  %v6129_v63 = vld [vmem:[#allocation11 + $0x700] sm:$0xf]  ;;  %v5315_v48 = vld [vmem:[#allocation11 + $0xa8] sm:$0xf0] }
 0x1db   :  { %v6130_v17 = vor.u32 %v6740_v58, %v6129_v63  ;;  %v5470_v58 = vor.u32 %v6573_v53, %v5467_v56 }
 0x1dc   :  { %3909 = vmatpush.bf16.msrb.mxu2 %v6026_v36  ;;  %3935 = vmatpush.bf16.msra.mxu0 %v6154_v15  ;;  %v5355_v36 = vld [vmem:[#allocation11 + $0xf8] sm:$0xf0]  ;;  %v6577_v15 = vld [vmem:[#allocation11 + $0x1f4] sm:$0xf] }
 0x1dd   :  { %v5358_v21 = vor.u32 %v6545_v10, %v5355_v36 }
 0x1de   :  { %3922 = vmatpush.bf16.msrb.mxu3 %v6090_v1  ;;  %3948 = vmatpush.bf16.msra.mxu1 %v6218_v16  ;;  %v6561_v1 = vld [vmem:[#allocation11 + $0x174] sm:$0xf]  ;;  %v5483_v16 = vld [vmem:[#allocation11 + $0x1f8] sm:$0xf0] }
 0x1df   :  { %v5422_v33 = vor.u32 %v6561_v1, %v5419_v14  ;;  %v5486_v29 = vor.u32 %v6577_v15, %v5483_v16  ;;  %v5270_v1 = vor.u32 %v6523_v61, %v5267_v62  ;;  %v5259_v14 = vld [vmem:[#allocation11 + $0x38] sm:$0xf0]  ;;  %v6537_v15 = vld [vmem:[#allocation11 + $0xb4] sm:$0xf] }
 0x1e0   :  { %3910 = vmatpush.bf16.msrb.mxu2 %v6018_v31  ;;  %3936 = vmatpush.bf16.msra.mxu0 %v6146_v54  ;;  %v5347_v31 = vld [vmem:[#allocation11 + $0xe8] sm:$0xf0]  ;;  %v5243_v61 = vld [vmem:[#allocation11 + $0x18] sm:$0xf0]  ;;  %v6533_v62 = vld [vmem:[#allocation11 + $0x94] sm:$0xf] }
 0x1e1   :  { %v5475_v54 = vld [vmem:[#allocation11 + $0x1e8] sm:$0xf0]  ;;  %v5350_v42 = vor.u32 %v6543_v22, %v5347_v31  ;;  %v5326_v22 = vor.u32 %v6537_v15, %v5323_v20  ;;  %v6519_v31 = vld [vmem:[#allocation11 + $0x24] sm:$0xf] }
 0x1e2   :  { %3923 = vmatpush.bf16.msrb.mxu3 %v6082_v32  ;;  %3949 = vmatpush.bf16.msra.mxu1 %v6210_v47  ;;  %v6559_v32 = vld [vmem:[#allocation11 + $0x164] sm:$0xf]  ;;  %v5286_v47 = vor.u32 %v6527_v26, %v5283_v28  ;;  %v5478_v35 = vor.u32 %v6575_v39, %v5475_v54  ;;  %v5451_v26 = vld [vmem:[#allocation11 + $0x1b8] sm:$0xf0]  ;;  %v461_v28 = vperm.slane %v7153_v34, 6 }
 0x1e3   :  { %v5414_v49 = vor.u32 %v6559_v32, %v5411_v37  ;;  %v5251_v32 = vld [vmem:[#allocation11 + $0x28] sm:$0xf0]  ;;  %v6535_v37 = vld [vmem:[#allocation11 + $0xa4] sm:$0xf] }
 0x1e4   :  { %3911 = vmatpush.bf16.msrb.mxu2 %v6010_v52  ;;  %3937 = vmatpush.bf16.msra.mxu0 %v6138_v57  ;;  %v6557_v52 = vld [vmem:[#allocation11 + $0x154] sm:$0xf]  ;;  %v5342_v57 = vor.u32 %v6541_v38, %v5339_v51  ;;  %v5379_v38 = vld [vmem:[#allocation11 + $0x128] sm:$0xf0] }
 0x1e5   :  { %v5443_v51 = vld [vmem:[#allocation11 + $0x1a8] sm:$0xf0] }
 0x1e6   :  { %3924 = vmatpush.bf16.msrb.mxu3 %v6074_v23  ;;  %3950 = vmatpush.bf16.msra.mxu1 %v6202_v55  ;;  %v5403_v23 = vld [vmem:[#allocation11 + $0x158] sm:$0xf0]  ;;  %v462_v55 = vperm.slane %v7153_v34, 7  ;;  %v6567_v34 = vld [vmem:[#allocation11 + $0x1a4] sm:$0xf] }
 0x1e7   :  { %v5406_v63 = vor.u32 %v6557_v52, %v5403_v23  ;;  %v5299_v15 = vld [vmem:[#allocation11 + $0x88] sm:$0xf0] }
 0x1e8   :  { %3912 = vmatpush.bf16.msrb.mxu2 %v6002_v12  ;;  %3938 = vmatpush.bf16.msra.mxu0 %v6130_v17  ;;  %v2158_v10 = vpop.f32.mrf.mxu0  ;;  %v5334_v12 = vor.u32 %v6539_v45, %v5331_v3  ;;  %v5398_v17 = vor.u32 %v6555_v0, %v5395_v7  ;;  %v5307_v45 = vld [vmem:[#allocation11 + $0x98] sm:$0xf0]  ;;  %v6549_v3 = vld [vmem:[#allocation11 + $0x114] sm:$0xf] }
 0x1e9   :  { %v2159_v16 = vadd.f32 %v2158_v10, %v462_v55  ;;  %v6517_v55 = vld [vmem:[#allocation11 + $0x14] sm:$0xf]  ;;  %v5371_v0 = vld [vmem:[#allocation11 + $0x118] sm:$0xf0]  ;;  %v6515_v10 = vld [vmem:[#allocation11 + $0x4] sm:$0xf] }
 0x1ea   :  { %3925 = vmatpush.bf16.msrb.mxu3 %v6066_v13  ;;  %3951 = vmatpush.bf16.msra.mxu1 %v6194_v19  ;;  %v2171_v36 = vpop.f32.mrf.mxu1  ;;  %v6521_v13 = vld [vmem:[#allocation11 + $0x34] sm:$0xf]  ;;  %v5462_v19 = vor.u32 %v6571_v8, %v5459_v9  ;;  %v5435_v9 = vld [vmem:[#allocation11 + $0x198] sm:$0xf0] }
 0x1eb   :  { %3913 = vmatmul.bf16.vlgmr.msrb.gmra.mxu2 %v7185_v41  ;;  %v6565_v8 = vld [vmem:[#allocation11 + $0x194] sm:$0xf] }
 0x1ec   :  { %3957 = vmatpush.bf16.msra.mxu2 %v5294_v18  ;;  %3983 = vmatpush.bf16.msrb.mxu0 %v5422_v33  ;;  %v5387_v18 = vld [vmem:[#allocation11 + $0x138] sm:$0xf0]  ;;  %v2172_v33 = vadd.f32 %v2171_v36, %v2159_v16  ;;  %v5374_v16 = vor.u32 %v6549_v3, %v5371_v0  ;;  %v6605_v0 = vld [vmem:[#allocation11 + $0x2d4] sm:$0xf] }
 0x1ed   :  { %3926 = vmatmul.bf16.vlgmr.msrb.gmra.mxu3 %v7183_v40  ;;  %v5390_v54 = vor.u32 %v6553_v24, %v5387_v18  ;;  %v6547_v24 = vld [vmem:[#allocation11 + $0x104] sm:$0xf]  ;;  %v5363_v18 = vld [vmem:[#allocation11 + $0x108] sm:$0xf0] }
 0x1ee   :  { %3970 = vmatpush.bf16.msra.mxu3 %v5358_v21  ;;  %3996 = vmatpush.bf16.msrb.mxu1 %v5486_v29  ;;  %v6569_v21 = vld [vmem:[#allocation11 + $0x1b4] sm:$0xf]  ;;  %v5262_v29 = vor.u32 %v6521_v13, %v5259_v14  ;;  %v2190_v39 = vmax.f32 %v2172_v33, 0.0  ;;  %v5235_v13 = vld [vmem:[#allocation11 + $0x8] sm:$0xf0] }
 0x1ef   :  { %v6531_v14 = vld [vmem:[#allocation11 + $0x84] sm:$0xf]  ;;  %v5547_v33 = vld [vmem:[#allocation11 + $0x278] sm:$0xf0] }
 0x1f0   :  { %3958 = vmatpush.bf16.msra.mxu2 %v5286_v47  ;;  %3984 = vmatpush.bf16.msrb.mxu0 %v5414_v49  ;;  %v5454_v47 = vor.u32 %v6569_v21, %v5451_v26  ;;  %v2145_v44 = vpop.f32.mrf.mxu3  ;;  %v6551_v49 = vld [vmem:[#allocation11 + $0x124] sm:$0xf]  ;;  %v7191_v52 = vpack.c.bf16 %v2190_v39, %v2190_v39  ;;  %v2160_v53 = vpop.f32.mrf.mxu0  ;;  %v5427_v26 = vld [vmem:[#allocation11 + $0x188] sm:$0xf0]  ;;  %v5675_v39 = vld [vmem:[#allocation11 + $0x378] sm:$0xf0] }
 0x1f1   :  { %v6563_v21 = vld [vmem:[#allocation11 + $0x184] sm:$0xf]  ;;  %v5603_v53 = vld [vmem:[#allocation11 + $0x2e8] sm:$0xf0] }
 0x1f2   :  { %3971 = vmatpush.bf16.msra.mxu3 %v5350_v42  ;;  %3997 = vmatpush.bf16.msrb.mxu1 %v5478_v35  ;;  %v2132_v42 = vpop.f32.mrf.mxu2  ;;  %v2173_v56 = vpop.f32.mrf.mxu1 }
 0x1f3   :  { %v2133_v35 = vadd.f32 %v2132_v42, %v461_v28  ;;  %3952 = vmatmul.bf16.vlgmr.msra.gmra.mxu1 %v7191_v52  ;;  %v6593_v28 = vld [vmem:[#allocation11 + $0x274] sm:$0xf]  ;;  %v5366_v42 = vor.u32 %v6547_v24, %v5363_v18  ;;  %v6623_v56 = vld [vmem:[#allocation11 + $0x364] sm:$0xf]  ;;  %v5715_v18 = vld [vmem:[#allocation11 + $0x3c8] sm:$0xf0] }
 0x1f4   :  { %3959 = vmatpush.bf16.msra.mxu2 %v5278_v46  ;;  %3985 = vmatpush.bf16.msrb.mxu0 %v5406_v63  ;;  %v5254_v46 = vor.u32 %v6519_v31, %v5251_v32  ;;  %v5382_v63 = vor.u32 %v6551_v49, %v5379_v38  ;;  %v6625_v31 = vld [vmem:[#allocation11 + $0x374] sm:$0xf]  ;;  %v5238_v32 = vor.u32 %v6515_v10, %v5235_v13  ;;  %v5539_v38 = vld [vmem:[#allocation11 + $0x268] sm:$0xf0]  ;;  %v6619_v24 = vld [vmem:[#allocation11 + $0x344] sm:$0xf] }
 0x1f5   :  { %v2146_v23 = vadd.f32 %v2145_v44, %v2133_v35  ;;  %v5430_v44 = vor.u32 %v6563_v21, %v5427_v26  ;;  %v6591_v35 = vld [vmem:[#allocation11 + $0x264] sm:$0xf]  ;;  %v6637_v10 = vld [vmem:[#allocation11 + $0x3d4] sm:$0xf]  ;;  %v7203_v21 = vld [vmem:[%s7245_s7] sm:$0x3] }
 0x1f6   :  { %3972 = vmatpush.bf16.msra.mxu3 %v5342_v57  ;;  %3998 = vmatpush.bf16.msrb.mxu1 %v5470_v58  ;;  %v5318_v57 = vor.u32 %v6535_v37, %v5315_v48  ;;  %v5446_v58 = vor.u32 %v6567_v34, %v5443_v51  ;;  %v5302_v37 = vor.u32 %v6531_v14, %v5299_v15  ;;  %v6587_v14 = vld [vmem:[#allocation11 + $0x244] sm:$0xf]  ;;  %v5523_v15 = vld [vmem:[#allocation11 + $0x248] sm:$0xf0]  ;;  %s6975_s7 = smov [#allocation13]  }
 0x1f7   :  { %v2189_v7 = vmax.f32 %v2146_v23, 0.0  ;;  %v5550_v48 = vor.u32 %v6593_v28, %v5547_v33  ;;  %v5678_v34 = vor.u32 %v6625_v31, %v5675_v39  ;;  %v6607_v23 = vld [vmem:[#allocation11 + $0x2e4] sm:$0xf]  ;;  %v5526_v33 = vor.u32 %v6587_v14, %v5523_v15  ;;  %v5515_v31 = vld [vmem:[#allocation11 + $0x238] sm:$0xf0]  ;;  %s4174_s14 = sshll.u32 %s6975_s7, 4  ;;  %s4175_s14 = int_to_ptr.vmem [resolvable:$true] %s4174_s14 }
 0x1f8   :  { %3960 = vmatpush.bf16.msra.mxu2 %v5270_v1  ;;  %3986 = vmatpush.bf16.msrb.mxu0 %v5398_v17  ;;  %v5246_v1 = vor.u32 %v6517_v55, %v5243_v61  ;;  %v5438_v17 = vor.u32 %v6565_v8, %v5435_v9  ;;  %v2147_v20 = vpop.f32.mrf.mxu3  ;;  %v5731_v55 = vld [vmem:[#allocation11 + $0x3e8] sm:$0xf0]  ;;  %v5542_v61 = vor.u32 %v6591_v35, %v5539_v38  ;;  %v6621_v8 = vld [vmem:[#allocation11 + $0x354] sm:$0xf]  ;;  %v5659_v9 = vld [vmem:[#allocation11 + $0x358] sm:$0xf0] }
 0x1f9   :  { %v7194_v36 = vpack.c.bf16 %v2189_v7, %v2189_v7  ;;  %v5595_v7 = vld [vmem:[#allocation11 + $0x2d8] sm:$0xf0]  ;;  %v5587_v20 = vld [vmem:[#allocation11 + $0x2c8] sm:$0xf0]  ;;  %v6583_v38 = vld [vmem:[#allocation11 + $0x224] sm:$0xf] }
 0x1fa   :  { %3973 = vmatpush.bf16.msra.mxu3 %v5334_v12  ;;  %3999 = vmatpush.bf16.msrb.mxu1 %v5462_v19  ;;  %v5310_v12 = vor.u32 %v6533_v62, %v5307_v45  ;;  %v2134_v19 = vpop.f32.mrf.mxu2  ;;  %v5606_v62 = vor.u32 %v6607_v23, %v5603_v53  ;;  %v5598_v13 = vor.u32 %v6605_v0, %v5595_v7  ;;  %v5579_v39 = vld [vmem:[#allocation11 + $0x2b8] sm:$0xf0]  ;;  %v6613_v14 = vld [vmem:[#allocation11 + $0x314] sm:$0xf] }
 0x1fb   :  { %3939 = vmatmul.bf16.vlgmr.msra.gmra.mxu0 %v7194_v36  ;;  %v6603_v19 = vld [vmem:[#allocation11 + $0x2c4] sm:$0xf] }
 0x1fc   :  { %3961 = vmatpush.bf16.msra.mxu2 %v5262_v29  ;;  %3987 = vmatpush.bf16.msrb.mxu0 %v5390_v54  ;;  %v6609_v29 = vld [vmem:[#allocation11 + $0x2f4] sm:$0xf] }
 0x1fd   :  { %v6641_v54 = vld [vmem:[#allocation11 + $0x3f4] sm:$0xf] }
 0x1fe   :  { %3974 = vmatpush.bf16.msra.mxu3 %v5326_v22  ;;  %4000 = vmatpush.bf16.msrb.mxu1 %v5454_v47  ;;  %v5611_v22 = vld [vmem:[#allocation11 + $0x2f8] sm:$0xf0] }
 0x1ff   :  { %v5739_v47 = vld [vmem:[#allocation11 + $0x3f8] sm:$0xf0]  ;;  %v5614_v49 = vor.u32 %v6609_v29, %v5611_v22  ;;  %v5590_v29 = vor.u32 %v6603_v19, %v5587_v20  ;;  %v6585_v22 = vld [vmem:[#allocation11 + $0x234] sm:$0xf]  ;;  %v6579_v20 = vld [vmem:[#allocation11 + $0x204] sm:$0xf] }
 0x200   :  { %3962 = vmatpush.bf16.msra.mxu2 %v5254_v46  ;;  %3988 = vmatpush.bf16.msrb.mxu0 %v5382_v63  ;;  %v5742_v51 = vor.u32 %v6641_v54, %v5739_v47  ;;  %v5667_v46 = vld [vmem:[#allocation11 + $0x368] sm:$0xf0]  ;;  %v6589_v63 = vld [vmem:[#allocation11 + $0x254] sm:$0xf]  ;;  %v5643_v47 = vld [vmem:[#allocation11 + $0x338] sm:$0xf0] }
 0x201   :  { %v5670_v45 = vor.u32 %v6623_v56, %v5667_v46  ;;  %v6617_v54 = vld [vmem:[#allocation11 + $0x334] sm:$0xf]  ;;  %v6599_v46 = vld [vmem:[#allocation11 + $0x2a4] sm:$0xf]  ;;  %v5691_v19 = vld [vmem:[#allocation11 + $0x398] sm:$0xf0] }
 0x202   :  { %3975 = vmatpush.bf16.msra.mxu3 %v5318_v57  ;;  %4001 = vmatpush.bf16.msrb.mxu1 %v5446_v58  ;;  %v6639_v57 = vld [vmem:[#allocation11 + $0x3e4] sm:$0xf]  ;;  %v5531_v58 = vld [vmem:[#allocation11 + $0x258] sm:$0xf0] }
 0x203   :  { %v5734_v3 = vor.u32 %v6639_v57, %v5731_v55  ;;  %v5571_v57 = vld [vmem:[#allocation11 + $0x2a8] sm:$0xf0]  ;;  %v6615_v55 = vld [vmem:[#allocation11 + $0x324] sm:$0xf] }
 0x204   :  { %3963 = vmatpush.bf16.msra.mxu2 %v5246_v1  ;;  %3989 = vmatpush.bf16.msrb.mxu0 %v5374_v16  ;;  %v5723_v1 = vld [vmem:[#allocation11 + $0x3d8] sm:$0xf0]  ;;  %v5662_v16 = vor.u32 %v6621_v8, %v5659_v9  ;;  %v5574_v7 = vor.u32 %v6599_v46, %v5571_v57  ;;  %v6581_v8 = vld [vmem:[#allocation11 + $0x214] sm:$0xf]  ;;  %v6655_v57 = vld [vmem:[#allocation11 + $0x464] sm:$0xf] }
 0x205   :  { %v5499_v9 = vld [vmem:[#allocation11 + $0x218] sm:$0xf0] }
 0x206   :  { %3976 = vmatpush.bf16.msra.mxu3 %v5310_v12  ;;  %4002 = vmatpush.bf16.msrb.mxu1 %v5438_v17  ;;  %v5534_v12 = vor.u32 %v6589_v63, %v5531_v58  ;;  %v5726_v17 = vor.u32 %v6637_v10, %v5723_v1  ;;  %v5699_v63 = vld [vmem:[#allocation11 + $0x3a8] sm:$0xf0] }
 0x208   :  { %3964 = vmatpush.bf16.msra.mxu2 %v5238_v32  ;;  %3990 = vmatpush.bf16.msrb.mxu0 %v5366_v42  ;;  %v3784_v26 = vpop.f32.mrf.mxu0  ;;  %v6601_v32 = vld [vmem:[#allocation11 + $0x2b4] sm:$0xf] }
 0x209   :  { %v6633_v42 = vld [vmem:[#allocation11 + $0x3b4] sm:$0xf]  ;;  %v5582_v35 = vor.u32 %v6601_v32, %v5579_v39  ;;  %v6627_v39 = vld [vmem:[#allocation11 + $0x384] sm:$0xf] }
 0x20a   :  { %3977 = vmatpush.bf16.msra.mxu3 %v5302_v37  ;;  %4003 = vmatpush.bf16.msrb.mxu1 %v5430_v44  ;;  %v7205_v28 = vpop.f32.mrf.mxu1  ;;  %v5707_v44 = vld [vmem:[#allocation11 + $0x3b8] sm:$0xf0] }
 0x20b   :  { %3965 = vmatmul.bf16.vlgmr.msra.gmra.mxu2 %v7117_v60  ;;  %v5651_v60 = vld [vmem:[#allocation11 + $0x348] sm:$0xf0]  ;;  %3991 = vmatmul.bf16.vlgmr.msrb.gmra.mxu0 %v7121_v2  ;;  %v5710_v23 = vor.u32 %v6633_v42, %v5707_v44  ;;  %v5803_v42 = vld [vmem:[#allocation11 + $0x478] sm:$0xf0]  ;;  %v6673_v44 = vld [vmem:[#allocation11 + $0x4f4] sm:$0xf] }
 0x20c   :  { %4009 = vmatpush.bf16.msrb.mxu2 %v5550_v48  ;;  %4035 = vmatpush.bf16.msra.mxu0 %v5678_v34  ;;  %v2465_v48 = vperm.slane %v7203_v21, 0  ;;  %v5507_v34 = vld [vmem:[#allocation11 + $0x228] sm:$0xf0] }
 0x20d   :  { %3978 = vmatmul.bf16.vlgmr.msra.gmra.mxu3 %v7115_v59  ;;  %4004 = vmatmul.bf16.vlgmr.msrb.gmra.mxu1 %v7119_v27  ;;  %v6635_v59 = vld [vmem:[#allocation11 + $0x3c4] sm:$0xf]  ;;  %v5654_v27 = vor.u32 %v6619_v24, %v5651_v60  ;;  %v5510_v0 = vor.u32 %v6583_v38, %v5507_v34  ;;  %v5502_v24 = vor.u32 %v6581_v8, %v5499_v9  ;;  %v5931_v38 = vld [vmem:[#allocation11 + $0x578] sm:$0xf0]  ;;  %v6705_v34 = vld [vmem:[#allocation11 + $0x5f4] sm:$0xf] }
 0x20e   :  { %4022 = vmatpush.bf16.msrb.mxu3 %v5614_v49  ;;  %4048 = vmatpush.bf16.msra.mxu1 %v5742_v51  ;;  %v5718_v37 = vor.u32 %v6635_v59, %v5715_v18  ;;  %v5518_v49 = vor.u32 %v6585_v22, %v5515_v31  ;;  %v5646_v51 = vor.u32 %v6617_v54, %v5643_v47  ;;  %v3758_v53 = vpop.f32.mrf.mxu2  ;;  %v5491_v59 = vld [vmem:[#allocation11 + $0x208] sm:$0xf0]  ;;  %v6595_v18 = vld [vmem:[#allocation11 + $0x284] sm:$0xf]  ;;  %v6657_v47 = vld [vmem:[#allocation11 + $0x474] sm:$0xf] }
 0x20f   :  { %v3759_v2 = vadd.f32 %v3758_v53, %v2465_v48  ;;  %v5683_v54 = vld [vmem:[#allocation11 + $0x388] sm:$0xf0]  ;;  %v5867_v48 = vld [vmem:[#allocation11 + $0x4f8] sm:$0xf0]  ;;  %v6653_v9 = vld [vmem:[#allocation11 + $0x454] sm:$0xf] }
 0x210   :  { %4010 = vmatpush.bf16.msrb.mxu2 %v5542_v61  ;;  %4036 = vmatpush.bf16.msra.mxu0 %v5670_v45  ;;  %v3771_v56 = vpop.f32.mrf.mxu3  ;;  %v5635_v61 = vld [vmem:[#allocation11 + $0x328] sm:$0xf0]  ;;  %v3786_v45 = vpop.f32.mrf.mxu0  ;;  %v5686_v53 = vor.u32 %v6627_v39, %v5683_v54  ;;  %v5870_v46 = vor.u32 %v6673_v44, %v5867_v48  ;;  %v6649_v39 = vld [vmem:[#allocation11 + $0x434] sm:$0xf]  ;;  %v5771_v54 = vld [vmem:[#allocation11 + $0x438] sm:$0xf0] }
 0x211   :  { %v3772_v58 = vadd.f32 %v3771_v56, %v3759_v2  ;;  %v5638_v10 = vor.u32 %v6615_v55, %v5635_v61  ;;  %v5806_v56 = vor.u32 %v6657_v47, %v5803_v42  ;;  %v5795_v55 = vld [vmem:[#allocation11 + $0x468] sm:$0xf0]  ;;  %v6665_v44 = vld [vmem:[#allocation11 + $0x4b4] sm:$0xf]  ;;  %v5835_v48 = vld [vmem:[#allocation11 + $0x4b8] sm:$0xf0] }
 0x212   :  { %4023 = vmatpush.bf16.msrb.mxu3 %v5606_v62  ;;  %4049 = vmatpush.bf16.msra.mxu1 %v5734_v3  ;;  %v6631_v62 = vld [vmem:[#allocation11 + $0x3a4] sm:$0xf]  ;;  %v3799_v3 = vpop.f32.mrf.mxu1  ;;  %v5923_v45 = vld [vmem:[#allocation11 + $0x568] sm:$0xf0] }
 0x213   :  { %v5702_v1 = vor.u32 %v6631_v62, %v5699_v63  ;;  %v3785_v15 = vadd.f32 %v3784_v26, %v3772_v58  ;;  %v6671_v62 = vld [vmem:[#allocation11 + $0x4e4] sm:$0xf]  ;;  %v5859_v63 = vld [vmem:[#allocation11 + $0x4e8] sm:$0xf0] }
 0x214   :  { %4011 = vmatpush.bf16.msrb.mxu2 %v5534_v12  ;;  %4037 = vmatpush.bf16.msra.mxu0 %v5662_v16  ;;  %v6597_v12 = vld [vmem:[#allocation11 + $0x294] sm:$0xf]  ;;  %v5627_v16 = vld [vmem:[#allocation11 + $0x318] sm:$0xf0]  ;;  %v6687_v58 = vld [vmem:[#allocation11 + $0x564] sm:$0xf]  ;;  %v5862_v8 = vor.u32 %v6671_v62, %v5859_v63 }
 0x215   :  { %v5630_v22 = vor.u32 %v6613_v14, %v5627_v16  ;;  %v6703_v3 = vld [vmem:[#allocation11 + $0x5e4] sm:$0xf]  ;;  %v5851_v14 = vld [vmem:[#allocation11 + $0x4d8] sm:$0xf0] }
 0x216   :  { %4024 = vmatpush.bf16.msrb.mxu3 %v5598_v13  ;;  %4050 = vmatpush.bf16.msra.mxu1 %v5726_v17  ;;  %v5563_v13 = vld [vmem:[#allocation11 + $0x298] sm:$0xf0]  ;;  %v6629_v17 = vld [vmem:[#allocation11 + $0x394] sm:$0xf]  ;;  %v3760_v32 = vpop.f32.mrf.mxu2  ;;  %v6679_v62 = vld [vmem:[#allocation11 + $0x524] sm:$0xf] }
 0x217   :  { %v5566_v60 = vor.u32 %v6597_v12, %v5563_v13  ;;  %v5694_v31 = vor.u32 %v6629_v17, %v5691_v19  ;;  %v6669_v13 = vld [vmem:[#allocation11 + $0x4d4] sm:$0xf]  ;;  %v5915_v16 = vld [vmem:[#allocation11 + $0x558] sm:$0xf0]  ;;  %v6699_v32 = vld [vmem:[#allocation11 + $0x5c4] sm:$0xf] }
 0x218   :  { %4012 = vmatpush.bf16.msrb.mxu2 %v5526_v33  ;;  %4038 = vmatpush.bf16.msra.mxu0 %v5654_v27  ;;  %v5555_v33 = vld [vmem:[#allocation11 + $0x288] sm:$0xf0]  ;;  %v3773_v26 = vpop.f32.mrf.mxu3  ;;  %v6611_v27 = vld [vmem:[#allocation11 + $0x304] sm:$0xf]  ;;  %v6701_v17 = vld [vmem:[#allocation11 + $0x5d4] sm:$0xf] }
 0x219   :  { %v5979_v19 = vld [vmem:[#allocation11 + $0x5d8] sm:$0xf0]  ;;  %v5971_v26 = vld [vmem:[#allocation11 + $0x5c8] sm:$0xf0] }
 0x21a   :  { %4025 = vmatpush.bf16.msrb.mxu3 %v5590_v29  ;;  %4051 = vmatpush.bf16.msra.mxu1 %v5718_v37  ;;  %v7210_v29 = vadd.f32 %v7205_v28, %v3785_v15  ;;  %v5619_v37 = vld [vmem:[#allocation11 + $0x308] sm:$0xf0]  ;;  %v5558_v28 = vor.u32 %v6595_v18, %v5555_v33  ;;  %v6685_v15 = vld [vmem:[#allocation11 + $0x554] sm:$0xf]  ;;  %v5982_v33 = vor.u32 %v6701_v17, %v5979_v19  ;;  %v5883_v19 = vld [vmem:[#allocation11 + $0x518] sm:$0xf0] }
 0x21b   :  { %v5918_v18 = vor.u32 %v6685_v15, %v5915_v16  ;;  %v5974_v42 = vor.u32 %v6699_v32, %v5971_v26  ;;  %v6661_v15 = vld [vmem:[#allocation11 + $0x494] sm:$0xf]  ;;  %v5819_v16 = vld [vmem:[#allocation11 + $0x498] sm:$0xf0] }
 0x21c   :  { %4013 = vmatpush.bf16.msrb.mxu2 %v5518_v49  ;;  %4039 = vmatpush.bf16.msra.mxu0 %v5646_v51  ;;  %v6689_v49 = vld [vmem:[#allocation11 + $0x574] sm:$0xf]  ;;  %v5995_v51 = vld [vmem:[#allocation11 + $0x5f8] sm:$0xf0] }
 0x21d   :  { %v5934_v2 = vor.u32 %v6689_v49, %v5931_v38  ;;  %v5998_v61 = vor.u32 %v6705_v34, %v5995_v51  ;;  %v6681_v49 = vld [vmem:[#allocation11 + $0x534] sm:$0xf]  ;;  %v5963_v38 = vld [vmem:[#allocation11 + $0x5b8] sm:$0xf0]  ;;  %v5774_v34 = vor.u32 %v6649_v39, %v5771_v54  ;;  %v5838_v51 = vor.u32 %v6665_v44, %v5835_v48  ;;  %v6691_v39 = vld [vmem:[#allocation11 + $0x584] sm:$0xf] }
 0x21e   :  { %4026 = vmatpush.bf16.msrb.mxu3 %v5582_v35  ;;  %4052 = vmatpush.bf16.msra.mxu1 %v5710_v23  ;;  %v5494_v35 = vor.u32 %v6579_v20, %v5491_v59  ;;  %v5622_v23 = vor.u32 %v6611_v27, %v5619_v37  ;;  %v5779_v59 = vld [vmem:[#allocation11 + $0x448] sm:$0xf0]  ;;  %v6677_v17 = vld [vmem:[#allocation11 + $0x514] sm:$0xf]  ;;  %v6123_v48 = vld [vmem:[#allocation11 + $0x6f8] sm:$0xf0] }
 0x21f   :  { %v5939_v54 = vld [vmem:[#allocation11 + $0x588] sm:$0xf0]  ;;  %v6737_v44 = vld [vmem:[#allocation11 + $0x6f4] sm:$0xf] }
 0x220   :  { %4014 = vmatpush.bf16.msrb.mxu2 %v5510_v0  ;;  %4040 = vmatpush.bf16.msra.mxu0 %v5638_v10  ;;  %v5987_v0 = vld [vmem:[#allocation11 + $0x5e8] sm:$0xf0]  ;;  %v5787_v10 = vld [vmem:[#allocation11 + $0x458] sm:$0xf0] }
 0x221   :  { %v5990_v12 = vor.u32 %v6703_v3, %v5987_v0  ;;  %v5790_v20 = vor.u32 %v6653_v9, %v5787_v10  ;;  %v5955_v3 = vld [vmem:[#allocation11 + $0x5a8] sm:$0xf0] }
 0x222   :  { %4027 = vmatpush.bf16.msrb.mxu3 %v5574_v7  ;;  %4053 = vmatpush.bf16.msra.mxu1 %v5702_v1  ;;  %v5798_v7 = vor.u32 %v6655_v57, %v5795_v55  ;;  %v5926_v1 = vor.u32 %v6687_v58, %v5923_v45  ;;  %v5891_v58 = vld [vmem:[#allocation11 + $0x528] sm:$0xf0]  ;;  %v6695_v45 = vld [vmem:[#allocation11 + $0x5a4] sm:$0xf] }
 0x224   :  { %4015 = vmatpush.bf16.msrb.mxu2 %v5502_v24  ;;  %4041 = vmatpush.bf16.msra.mxu0 %v5630_v22  ;;  %v5854_v24 = vor.u32 %v6669_v13, %v5851_v14  ;;  %v5843_v22 = vld [vmem:[#allocation11 + $0x4c8] sm:$0xf0]  ;;  %v5894_v13 = vor.u32 %v6679_v62, %v5891_v58  ;;  %v5958_v14 = vor.u32 %v6695_v45, %v5955_v3  ;;  %v6767_v45 = vld [vmem:[#allocation11 + $0x7e4] sm:$0xf] }
 0x225   :  { %v6115_v62 = vld [vmem:[#allocation11 + $0x6e8] sm:$0xf0] }
 0x226   :  { %4028 = vmatpush.bf16.msrb.mxu3 %v5566_v60  ;;  %4054 = vmatpush.bf16.msra.mxu1 %v5694_v31  ;;  %v6651_v60 = vld [vmem:[#allocation11 + $0x444] sm:$0xf]  ;;  %v5907_v31 = vld [vmem:[#allocation11 + $0x548] sm:$0xf0] }
 0x227   :  { %v5782_v27 = vor.u32 %v6651_v60, %v5779_v59  ;;  %v6643_v60 = vld [vmem:[#allocation11 + $0x404] sm:$0xf]  ;;  %v6179_v58 = vld [vmem:[#allocation11 + $0x768] sm:$0xf0] }
 0x228   :  { %4016 = vmatpush.bf16.msrb.mxu2 %v5494_v35  ;;  %4042 = vmatpush.bf16.msra.mxu0 %v5622_v23  ;;  %v5899_v35 = vld [vmem:[#allocation11 + $0x538] sm:$0xf0]  ;;  %v6647_v23 = vld [vmem:[#allocation11 + $0x424] sm:$0xf]  ;;  %v6243_v3 = vld [vmem:[#allocation11 + $0x7e8] sm:$0xf0] }
 0x22a   :  { %4029 = vmatpush.bf16.msrb.mxu3 %v5558_v28  ;;  %4055 = vmatpush.bf16.msra.mxu1 %v5686_v53  ;;  %v6697_v28 = vld [vmem:[#allocation11 + $0x5b4] sm:$0xf]  ;;  %v5763_v53 = vld [vmem:[#allocation11 + $0x428] sm:$0xf0] }
 0x22b   :  { %4017 = vmatmul.bf16.vlgmr.msrb.gmra.mxu2 %v7143_v5  ;;  %4043 = vmatmul.bf16.vlgmr.msra.gmra.mxu0 %v7147_v11  ;;  %v6667_v5 = vld [vmem:[#allocation11 + $0x4c4] sm:$0xf]  ;;  %v3836_v11 = vpop.f32.mrf.mxu0  ;;  %v5766_v9 = vor.u32 %v6647_v23, %v5763_v53  ;;  %v5942_v23 = vor.u32 %v6691_v39, %v5939_v54  ;;  %v6729_v39 = vld [vmem:[#allocation11 + $0x6b4] sm:$0xf]  ;;  %v6091_v54 = vld [vmem:[#allocation11 + $0x6b8] sm:$0xf0] }
 0x22c   :  { %4061 = vmatpush.bf16.msra.mxu2 %v5806_v56  ;;  %4087 = vmatpush.bf16.msrb.mxu0 %v5934_v2  ;;  %v5846_v37 = vor.u32 %v6667_v5, %v5843_v22  ;;  %v5902_v56 = vor.u32 %v6681_v49, %v5899_v35  ;;  %v6663_v2 = vld [vmem:[#allocation11 + $0x4a4] sm:$0xf]  ;;  %v5811_v22 = vld [vmem:[#allocation11 + $0x488] sm:$0xf0]  ;;  %v6753_v49 = vld [vmem:[#allocation11 + $0x774] sm:$0xf] }
 0x22d   :  { %4030 = vmatmul.bf16.vlgmr.msrb.gmra.mxu3 %v7141_v4  ;;  %4056 = vmatmul.bf16.vlgmr.msra.gmra.mxu1 %v7145_v6  ;;  %v6683_v4 = vld [vmem:[#allocation11 + $0x544] sm:$0xf]  ;;  %v3849_v6 = vpop.f32.mrf.mxu1 }
 0x22e   :  { %4074 = vmatpush.bf16.msra.mxu3 %v5870_v46  ;;  %4100 = vmatpush.bf16.msrb.mxu1 %v5998_v61  ;;  %v5910_v47 = vor.u32 %v6683_v4, %v5907_v31  ;;  %v5966_v46 = vor.u32 %v6697_v28, %v5963_v38  ;;  %v3810_v57 = vpop.f32.mrf.mxu2  ;;  %v5827_v61 = vld [vmem:[#allocation11 + $0x4a8] sm:$0xf0]  ;;  %v6659_v5 = vld [vmem:[#allocation11 + $0x484] sm:$0xf]  ;;  %v5886_v31 = vor.u32 %v6677_v17, %v5883_v19  ;;  %v6187_v28 = vld [vmem:[#allocation11 + $0x778] sm:$0xf0] }
 0x22f   :  { %v3811_v63 = vadd.f32 %v3810_v57, %v7210_v29  ;;  %v5830_v10 = vor.u32 %v6663_v2, %v5827_v61  ;;  %v6769_v38 = vld [vmem:[#allocation11 + $0x7f4] sm:$0xf]  ;;  %v6051_v57 = vld [vmem:[#allocation11 + $0x668] sm:$0xf0]  ;;  %v6735_v61 = vld [vmem:[#allocation11 + $0x6e4] sm:$0xf] }
 0x230   :  { %4062 = vmatpush.bf16.msra.mxu2 %v5798_v7  ;;  %4088 = vmatpush.bf16.msrb.mxu0 %v5926_v1  ;;  %v3823_v55 = vpop.f32.mrf.mxu3  ;;  %v6645_v1 = vld [vmem:[#allocation11 + $0x414] sm:$0xf]  ;;  %v6235_v17 = vld [vmem:[#allocation11 + $0x7d8] sm:$0xf0] }
 0x231   :  { %v3824_v0 = vadd.f32 %v3823_v55, %v3811_v63  ;;  %v6190_v55 = vor.u32 %v6753_v49, %v6187_v28  ;;  %v6751_v63 = vld [vmem:[#allocation11 + $0x764] sm:$0xf]  ;;  %v6019_v28 = vld [vmem:[#allocation11 + $0x628] sm:$0xf0] }
 0x232   :  { %4075 = vmatpush.bf16.msra.mxu3 %v5862_v8  ;;  %4101 = vmatpush.bf16.msrb.mxu1 %v5990_v12  ;;  %v5755_v12 = vld [vmem:[#allocation11 + $0x418] sm:$0xf0] }
 0x233   :  { %v3838_v7 = vpop.f32.mrf.mxu0  ;;  %v3837_v29 = vadd.f32 %v3836_v11, %v3824_v0  ;;  %v5758_v59 = vor.u32 %v6645_v1, %v5755_v12  ;;  %v6675_v11 = vld [vmem:[#allocation11 + $0x504] sm:$0xf]  ;;  %v6246_v1 = vor.u32 %v6767_v45, %v6243_v3  ;;  %v6733_v12 = vld [vmem:[#allocation11 + $0x6d4] sm:$0xf]  ;;  %v6011_v3 = vld [vmem:[#allocation11 + $0x618] sm:$0xf0] }
 0x234   :  { %4063 = vmatpush.bf16.msra.mxu2 %v5790_v20  ;;  %4089 = vmatpush.bf16.msrb.mxu0 %v5918_v18  ;;  %v6693_v20 = vld [vmem:[#allocation11 + $0x594] sm:$0xf]  ;;  %v5822_v18 = vor.u32 %v6661_v15, %v5819_v16  ;;  %v6118_v7 = vor.u32 %v6735_v61, %v6115_v62  ;;  %v6171_v15 = vld [vmem:[#allocation11 + $0x758] sm:$0xf0] }
 0x235   :  { %v3851_v8 = vpop.f32.mrf.mxu1  ;;  %v7217_v4 = vadd.f32 %v3849_v6, %v3837_v29  ;;  %v5814_v6 = vor.u32 %v6659_v5, %v5811_v22  ;;  %v6765_v16 = vld [vmem:[#allocation11 + $0x7d4] sm:$0xf]  ;;  %v6763_v5 = vld [vmem:[#allocation11 + $0x7c4] sm:$0xf]  ;;  %v6227_v22 = vld [vmem:[#allocation11 + $0x7c8] sm:$0xf0] }
 0x236   :  { %4076 = vmatpush.bf16.msra.mxu3 %v5854_v24  ;;  %4102 = vmatpush.bf16.msrb.mxu1 %v5982_v33  ;;  %v5947_v24 = vld [vmem:[#allocation11 + $0x598] sm:$0xf0]  ;;  %v5747_v33 = vld [vmem:[#allocation11 + $0x408] sm:$0xf0]  ;;  %v3812_v26 = vpop.f32.mrf.mxu2  ;;  %v6717_v8 = vld [vmem:[#allocation11 + $0x654] sm:$0xf] }
 0x237   :  { %v5950_v32 = vor.u32 %v6693_v20, %v5947_v24  ;;  %v5750_v35 = vor.u32 %v6643_v60, %v5747_v33  ;;  %v6715_v20 = vld [vmem:[#allocation11 + $0x644] sm:$0xf]  ;;  %v6035_v24 = vld [vmem:[#allocation11 + $0x648] sm:$0xf0]  ;;  %v6713_v26 = vld [vmem:[#allocation11 + $0x634] sm:$0xf] }
 0x238   :  { %4064 = vmatpush.bf16.msra.mxu2 %v5782_v27  ;;  %4090 = vmatpush.bf16.msrb.mxu0 %v5910_v47  ;;  %v3825_v27 = vpop.f32.mrf.mxu3  ;;  %v6721_v47 = vld [vmem:[#allocation11 + $0x674] sm:$0xf]  ;;  %v6163_v33 = vld [vmem:[#allocation11 + $0x748] sm:$0xf0] }
 0x239   :  { %v6027_v27 = vld [vmem:[#allocation11 + $0x638] sm:$0xf0]  ;;  %v6709_v45 = vld [vmem:[#allocation11 + $0x614] sm:$0xf] }
 0x23a   :  { %4077 = vmatpush.bf16.msra.mxu3 %v5846_v37  ;;  %4103 = vmatpush.bf16.msrb.mxu1 %v5974_v42  ;;  %v5875_v37 = vld [vmem:[#allocation11 + $0x508] sm:$0xf0]  ;;  %v6059_v42 = vld [vmem:[#allocation11 + $0x678] sm:$0xf0]  ;;  %v6030_v49 = vor.u32 %v6713_v26, %v6027_v27 }
 0x23b   :  { %v6062_v53 = vor.u32 %v6721_v47, %v6059_v42  ;;  %v6745_v47 = vld [vmem:[#allocation11 + $0x734] sm:$0xf]  ;;  %v6155_v42 = vld [vmem:[#allocation11 + $0x738] sm:$0xf0] }
 0x23c   :  { %4065 = vmatpush.bf16.msra.mxu2 %v5774_v34  ;;  %4091 = vmatpush.bf16.msrb.mxu0 %v5902_v56  ;;  %v6251_v34 = vld [vmem:[#allocation11 + $0x7f8] sm:$0xf0]  ;;  %v6126_v56 = vor.u32 %v6737_v44, %v6123_v48  ;;  %v6761_v44 = vld [vmem:[#allocation11 + $0x7b4] sm:$0xf] }
 0x23d   :  { %v6254_v2 = vor.u32 %v6769_v38, %v6251_v34  ;;  %v6219_v48 = vld [vmem:[#allocation11 + $0x7b8] sm:$0xf0]  ;;  %v6158_v38 = vor.u32 %v6745_v47, %v6155_v42 }
 0x23e   :  { %4078 = vmatpush.bf16.msra.mxu3 %v5838_v51  ;;  %4104 = vmatpush.bf16.msrb.mxu1 %v5966_v46  ;;  %v5878_v51 = vor.u32 %v6675_v11, %v5875_v37  ;;  %v6719_v46 = vld [vmem:[#allocation11 + $0x664] sm:$0xf]  ;;  %v6230_v37 = vor.u32 %v6763_v5, %v6227_v22  ;;  %v6222_v34 = vor.u32 %v6761_v44, %v6219_v48 }
 0x23f   :  { %v6054_v0 = vor.u32 %v6719_v46, %v6051_v57  ;;  %v6743_v46 = vld [vmem:[#allocation11 + $0x724] sm:$0xf]  ;;  %v6147_v57 = vld [vmem:[#allocation11 + $0x728] sm:$0xf0] }
 0x240   :  { %4066 = vmatpush.bf16.msra.mxu2 %v5766_v9  ;;  %4092 = vmatpush.bf16.msrb.mxu0 %v5894_v13  ;;  %v6043_v9 = vld [vmem:[#allocation11 + $0x658] sm:$0xf0] }
 0x241   :  { %v6107_v13 = vld [vmem:[#allocation11 + $0x6d8] sm:$0xf0]  ;;  %v6046_v29 = vor.u32 %v6717_v8, %v6043_v9  ;;  %v6725_v8 = vld [vmem:[#allocation11 + $0x694] sm:$0xf] }
 0x242   :  { %4079 = vmatpush.bf16.msra.mxu3 %v5830_v10  ;;  %4105 = vmatpush.bf16.msrb.mxu1 %v5958_v14  ;;  %v6182_v10 = vor.u32 %v6751_v63, %v6179_v58  ;;  %v6749_v14 = vld [vmem:[#allocation11 + $0x754] sm:$0xf]  ;;  %v6110_v19 = vor.u32 %v6733_v12, %v6107_v13  ;;  %v6075_v9 = vld [vmem:[#allocation11 + $0x698] sm:$0xf0] }
 0x243   :  { %v6174_v60 = vor.u32 %v6749_v14, %v6171_v15  ;;  %v6757_v12 = vld [vmem:[#allocation11 + $0x794] sm:$0xf]  ;;  %v6203_v13 = vld [vmem:[#allocation11 + $0x798] sm:$0xf0]  ;;  %v6014_v14 = vor.u32 %v6709_v45, %v6011_v3  ;;  %v6078_v15 = vor.u32 %v6725_v8, %v6075_v9 }
 0x244   :  { %4067 = vmatpush.bf16.msra.mxu2 %v5758_v59  ;;  %4093 = vmatpush.bf16.msrb.mxu0 %v5886_v31  ;;  %v6238_v59 = vor.u32 %v6765_v16, %v6235_v17  ;;  %v6038_v31 = vor.u32 %v6715_v20, %v6035_v24  ;;  %v6707_v16 = vld [vmem:[#allocation11 + $0x604] sm:$0xf]  ;;  %v6003_v17 = vld [vmem:[#allocation11 + $0x608] sm:$0xf0] }
 0x245   :  { %v6006_v5 = vor.u32 %v6707_v16, %v6003_v17 }
 0x246   :  { %4080 = vmatpush.bf16.msra.mxu3 %v5822_v18  ;;  %4106 = vmatpush.bf16.msrb.mxu1 %v5950_v32  ;;  %v6099_v18 = vld [vmem:[#allocation11 + $0x6c8] sm:$0xf0] }
 0x248   :  { %4068 = vmatpush.bf16.msra.mxu2 %v5750_v35  ;;  %4094 = vmatpush.bf16.msrb.mxu0 %v5878_v51  ;;  %v6094_v35 = vor.u32 %v6729_v39, %v6091_v54 }
 0x24a   :  { %4081 = vmatpush.bf16.msra.mxu3 %v5814_v6  ;;  %4107 = vmatpush.bf16.msrb.mxu1 %v5942_v23  ;;  %v6711_v6 = vld [vmem:[#allocation11 + $0x624] sm:$0xf] }
 0x24b   :  { %4069 = vmatmul.bf16.vlgmr.msra.gmra.mxu2 %v7168_v25  ;;  %4095 = vmatmul.bf16.vlgmr.msrb.gmra.mxu0 %v7172_v30  ;;  %v6731_v25 = vld [vmem:[#allocation11 + $0x6c4] sm:$0xf]  ;;  %v7223_v30 = vpop.f32.mrf.mxu0  ;;  %v6022_v63 = vor.u32 %v6711_v6, %v6019_v28 }
 0x24c   :  { %4113 = vmatpush.bf16.msrb.mxu2 %v6062_v53  ;;  %4139 = vmatpush.bf16.msra.mxu0 %v6190_v55  ;;  %v6102_v32 = vor.u32 %v6731_v25, %v6099_v18  ;;  %v6727_v53 = vld [vmem:[#allocation11 + $0x6a4] sm:$0xf]  ;;  %v6131_v18 = vld [vmem:[#allocation11 + $0x708] sm:$0xf0] }
 0x24d   :  { %4082 = vmatmul.bf16.vlgmr.msra.gmra.mxu3 %v7166_v43  ;;  %4108 = vmatmul.bf16.vlgmr.msrb.gmra.mxu1 %v7170_v50  ;;  %v6747_v43 = vld [vmem:[#allocation11 + $0x744] sm:$0xf]  ;;  %v7225_v50 = vpop.f32.mrf.mxu1 }
 0x24e   :  { %4126 = vmatpush.bf16.msrb.mxu3 %v6126_v56  ;;  %4152 = vmatpush.bf16.msra.mxu1 %v6254_v2  ;;  %v6166_v11 = vor.u32 %v6747_v43, %v6163_v33  ;;  %v3862_v51 = vpop.f32.mrf.mxu2  ;;  %v6083_v56 = vld [vmem:[#allocation11 + $0x6a8] sm:$0xf0]  ;;  %v6759_v55 = vld [vmem:[#allocation11 + $0x7a4] sm:$0xf] }
 0x24f   :  { %v6211_v2 = vld [vmem:[#allocation11 + $0x7a8] sm:$0xf0]  ;;  %v6086_v58 = vor.u32 %v6727_v53, %v6083_v56  ;;  %v6739_v25 = vld [vmem:[#allocation11 + $0x704] sm:$0xf]  ;;  %v3863_v26 = vadd.f32 %v3862_v51, %v7217_v4  ;;  %v2466_v4 = vperm.slane %v7203_v21, 1 }
 0x250   :  { %4114 = vmatpush.bf16.msrb.mxu2 %v6054_v0  ;;  %4140 = vmatpush.bf16.msra.mxu0 %v6182_v10  ;;  %v3875_v23 = vpop.f32.mrf.mxu3  ;;  %v6150_v0 = vor.u32 %v6743_v46, %v6147_v57  ;;  %v6741_v10 = vld [vmem:[#allocation11 + $0x714] sm:$0xf]  ;;  %v6755_v43 = vld [vmem:[#allocation11 + $0x784] sm:$0xf]  ;;  %v6195_v33 = vld [vmem:[#allocation11 + $0x788] sm:$0xf0] }
 0x251   :  { %v3876_v27 = vadd.f32 %v3875_v23, %v3863_v26 }
 0x252   :  { %4127 = vmatpush.bf16.msrb.mxu3 %v6118_v7  ;;  %4153 = vmatpush.bf16.msra.mxu1 %v6246_v1  ;;  %v6214_v7 = vor.u32 %v6759_v55, %v6211_v2  ;;  %v6139_v1 = vld [vmem:[#allocation11 + $0x718] sm:$0xf0] }
 0x253   :  { %v3890_v61 = vpop.f32.mrf.mxu0  ;;  %v3889_v39 = vadd.f32 %v7223_v30, %v3876_v27 }
 0x254   :  { %4115 = vmatpush.bf16.msrb.mxu2 %v6046_v29  ;;  %4141 = vmatpush.bf16.msra.mxu0 %v6174_v60  ;;  %v6142_v29 = vor.u32 %v6741_v10, %v6139_v1  ;;  %v6723_v60 = vld [vmem:[#allocation11 + $0x684] sm:$0xf] }
 0x255   :  { %v3903_v62 = vpop.f32.mrf.mxu1  ;;  %v3902_v54 = vadd.f32 %v7225_v50, %v3889_v39 }
 0x256   :  { %4128 = vmatpush.bf16.msrb.mxu3 %v6110_v19  ;;  %4154 = vmatpush.bf16.msra.mxu1 %v6238_v59  ;;  %v6206_v19 = vor.u32 %v6757_v12, %v6203_v13  ;;  %v3864_v20 = vpop.f32.mrf.mxu2  ;;  %v6067_v59 = vld [vmem:[#allocation11 + $0x688] sm:$0xf0] }
 0x257   :  { %v6070_v22 = vor.u32 %v6723_v60, %v6067_v59 }
 0x258   :  { %4116 = vmatpush.bf16.msrb.mxu2 %v6038_v31  ;;  %4142 = vmatpush.bf16.msra.mxu0 %v6166_v11  ;;  %v3877_v24 = vpop.f32.mrf.mxu3  ;;  %v6134_v31 = vor.u32 %v6739_v25, %v6131_v18 }
 0x25a   :  { %4129 = vmatpush.bf16.msrb.mxu3 %v6102_v32  ;;  %4155 = vmatpush.bf16.msra.mxu1 %v6230_v37  ;;  %v6198_v32 = vor.u32 %v6755_v43, %v6195_v33 }
 0x25c   :  { %4117 = vmatpush.bf16.msrb.mxu2 %v6030_v49  ;;  %4143 = vmatpush.bf16.msra.mxu0 %v6158_v38 }
 0x25e   :  { %4130 = vmatpush.bf16.msrb.mxu3 %v6094_v35  ;;  %4156 = vmatpush.bf16.msra.mxu1 %v6222_v34 }
 0x260   :  { %4118 = vmatpush.bf16.msrb.mxu2 %v6022_v63  ;;  %4144 = vmatpush.bf16.msra.mxu0 %v6150_v0 }
 0x262   :  { %4131 = vmatpush.bf16.msrb.mxu3 %v6086_v58  ;;  %4157 = vmatpush.bf16.msra.mxu1 %v6214_v7 }
 0x264   :  { %4119 = vmatpush.bf16.msrb.mxu2 %v6014_v14  ;;  %4145 = vmatpush.bf16.msra.mxu0 %v6142_v29 }
 0x266   :  { %4132 = vmatpush.bf16.msrb.mxu3 %v6078_v15  ;;  %4158 = vmatpush.bf16.msra.mxu1 %v6206_v19 }
 0x268   :  { %4120 = vmatpush.bf16.msrb.mxu2 %v6006_v5  ;;  %4146 = vmatpush.bf16.msra.mxu0 %v6134_v31 }
 0x26a   :  { %4133 = vmatpush.bf16.msrb.mxu3 %v6070_v22  ;;  %4159 = vmatpush.bf16.msra.mxu1 %v6198_v32 }
 0x26b   :  { %4121 = vmatmul.bf16.vlgmr.msrb.gmra.mxu2 %v7185_v41  ;;  %4147 = vmatmul.bf16.vlgmr.msra.gmra.mxu0 %v7194_v36 }
 0x26d   :  { %4134 = vmatmul.bf16.vlgmr.msrb.gmra.mxu3 %v7183_v40  ;;  %4160 = vmatmul.bf16.vlgmr.msra.gmra.mxu1 %v7191_v52 }
 0x26e   :  { %v3914_v11 = vpop.f32.mrf.mxu2 }
 0x26f   :  { %v3915_v44 = vadd.f32 %v3914_v11, %v3902_v54 }
 0x270   :  { %v3927_v37 = vpop.f32.mrf.mxu3  ;;  %v3953_v48 = vpop.f32.mrf.mxu1 }
 0x271   :  { %v3928_v41 = vadd.f32 %v3927_v37, %v3915_v44 }
 0x276   :  { %v3916_v47 = vpop.f32.mrf.mxu2 }
 0x278   :  { %v3929_v42 = vpop.f32.mrf.mxu3  ;;  %v3940_v49 = vpop.f32.mrf.mxu0 }
 0x279   :  { %v3941_v40 = vadd.f32 %v3940_v49, %v3928_v41  ;;  %v3955_v36 = vpop.f32.mrf.mxu1 }
 0x27b   :  { %v3954_v35 = vadd.f32 %v3953_v48, %v3941_v40 }
 0x27d   :  { %6782 = vtanh.f32 %v3954_v35 }
 0x280   :  { %v3942_v52 = vpop.f32.mrf.mxu0 }
 0x283   :  { %v6783_v6 = vpop.eup %6782 }
 0x284   :  { %4167 = vst [vmem:[#allocation13] sm:$0xff] %v6783_v6 }
 0x288   :  { %v3992_v50 = vpop.f32.mrf.mxu0 }
 0x28a   :  { %v4005_v28 = vpop.f32.mrf.mxu1 }
 0x28e   :  { %v3966_v38 = vpop.f32.mrf.mxu2 }
 0x28f   :  { %v3967_v34 = vadd.f32 %v3966_v38, %v2466_v4 }
 0x290   :  { %v3979_v30 = vpop.f32.mrf.mxu3  ;;  %v3994_v55 = vpop.f32.mrf.mxu0 }
 0x291   :  { %v3980_v51 = vadd.f32 %v3979_v30, %v3967_v34 }
 0x292   :  { %v4007_v53 = vpop.f32.mrf.mxu1 }
 0x293   :  { %v3993_v23 = vadd.f32 %v3992_v50, %v3980_v51 }
 0x295   :  { %v4006_v56 = vadd.f32 %v4005_v28, %v3993_v23 }
 0x296   :  { %v3968_v46 = vpop.f32.mrf.mxu2 }
 0x298   :  { %v3981_v57 = vpop.f32.mrf.mxu3 }
 0x2a8   :  { %v4044_v2 = vpop.f32.mrf.mxu0 }
 0x2aa   :  { %v4057_v61 = vpop.f32.mrf.mxu1 }
 0x2ae   :  { %v4018_v62 = vpop.f32.mrf.mxu2 }
 0x2af   :  { %v4019_v10 = vadd.f32 %v4018_v62, %v4006_v56 }
 0x2b0   :  { %v4031_v63 = vpop.f32.mrf.mxu3  ;;  %v4046_v58 = vpop.f32.mrf.mxu0 }
 0x2b1   :  { %v4032_v13 = vadd.f32 %v4031_v63, %v4019_v10 }
 0x2b2   :  { %v4059_v45 = vpop.f32.mrf.mxu1 }
 0x2b3   :  { %v4045_v16 = vadd.f32 %v4044_v2, %v4032_v13 }
 0x2b5   :  { %v4058_v17 = vadd.f32 %v4057_v61, %v4045_v16 }
 0x2b6   :  { %v4020_v3 = vpop.f32.mrf.mxu2 }
 0x2b8   :  { %v4033_v21 = vpop.f32.mrf.mxu3 }
 0x2c8   :  { %v4096_v0 = vpop.f32.mrf.mxu0 }
 0x2ca   :  { %v4109_v7 = vpop.f32.mrf.mxu1 }
 0x2ce   :  { %v4070_v8 = vpop.f32.mrf.mxu2 }
 0x2cf   :  { %v4071_v29 = vadd.f32 %v4070_v8, %v4058_v17 }
 0x2d0   :  { %v4083_v9 = vpop.f32.mrf.mxu3  ;;  %v4098_v1 = vpop.f32.mrf.mxu0 }
 0x2d1   :  { %v4084_v19 = vadd.f32 %v4083_v9, %v4071_v29 }
 0x2d2   :  { %v4111_v12 = vpop.f32.mrf.mxu1 }
 0x2d3   :  { %v4097_v20 = vadd.f32 %v4096_v0, %v4084_v19 }
 0x2d5   :  { %v4110_v59 = vadd.f32 %v4109_v7, %v4097_v20 }
 0x2d6   :  { %v4072_v14 = vpop.f32.mrf.mxu2 }
 0x2d8   :  { %v4085_v15 = vpop.f32.mrf.mxu3 }
 0x2e8   :  { %v4148_v24 = vpop.f32.mrf.mxu0 }
 0x2ea   :  { %v4161_v60 = vpop.f32.mrf.mxu1 }
 0x2ee   :  { %v4122_v25 = vpop.f32.mrf.mxu2 }
 0x2ef   :  { %v4123_v43 = vadd.f32 %v4122_v25, %v4110_v59 }
 0x2f0   :  { %v4135_v18 = vpop.f32.mrf.mxu3  ;;  %v4150_v5 = vpop.f32.mrf.mxu0 }
 0x2f1   :  { %v4136_v33 = vadd.f32 %v4135_v18, %v4123_v43 }
 0x2f2   :  { %v4163_v22 = vpop.f32.mrf.mxu1 }
 0x2f3   :  { %v4149_v31 = vadd.f32 %v4148_v24, %v4136_v33 }
 0x2f5   :  { %v4162_v32 = vadd.f32 %v4161_v60, %v4149_v31 }
 0x2f6   :  { %v4124_v26 = vpop.f32.mrf.mxu2 }
 0x2f7   :  { %6784 = vtanh.f32 %v4162_v32 }
 0x2f8   :  { %v4137_v27 = vpop.f32.mrf.mxu3 }
 0x2fd   :  { %v6785_v11 = vpop.eup %6784 }
 0x2fe   :  { %4168 = vst [vmem:[#allocation13 + $0x8] sm:$0xff] %v6785_v11 }
 0x2ff   :  { %4179 = dma.vmem_to_hbm [thread:$0]  %s4175_s14, 256, %s4177_s17, [#allocation4]  }
 0x300   :  { %6963 = dma.done.wait [#allocation4], 256  }
 0x301   :  { %6964 = vsyncadd [#allocation4], 4294967040 }
 0x302   :  { %4184 = vsyncpa [#allocation3], 1 }
 0x303   :  { %4185 = vsyncpa [#allocation6], 1 }
 0x304   :  { %4186 = vsyncpa [#allocation9], 1 }
 0x305   :  { %4187 = vsyncpa [#allocation12], 1 }
 0x306   :  { %4188 = vsyncpa [#allocation4], 1 }

</bundles_post_ra>
